<compile_context>
chip_gen: v5e
topology: v5e:2x2
jax: 0.10.0
libtpu: 0.0.40
codegen_flags: <defaults>
</compile_context>

<pallas_src>
import numpy as np
import jax
import jax.numpy as jnp
from jax import lax
from jax.experimental import pallas as pl
from jax.experimental.pallas import tpu as pltpu

DIM = 16            # channels (== spatial W)
H = 8               # spatial height
N = 2               # batch
HID = 4 * DIM       # pwconv1 hidden width
K = 7               # depthwise kernel size
PAD = 3             # depthwise padding
EPS_LN = 1e-6
E_LAMBDA = 1e-4

HW = H * DIM        # flattened spatial size per channel (128 -> lane-dense)
HHID = H * HID      # flattened hidden size per channel (512)


def block_kernel(x_ref, taps_ref, dwb_ref, gamma_ref, lnw_ref, lnb_ref,
                 avg_ref, w1_ref, b1_ref, w2_ref, b2_ref, o_ref):
    # One program = one batch element, kept entirely in a lane-dense (C, H*W) layout:
    # channels in sublanes, flattened spatial index h*W + w in lanes.
    x = x_ref[0, :, :]                                     # (C, HW) residual input

    # ---- depthwise 7x7 conv, zero padding 3, groups=C --------------------------
    # A spatial tap (dh, dw) is one lane-roll of the flattened axis by dh*W + dw.
    # `taps` already carries (per-channel weight) x (zero-padding validity mask).
    acc = jnp.zeros((DIM, HW), jnp.float32)
    for kh in range(K):
        for kw in range(K):
            t = kh * K + kw
            s = (kh - PAD) * DIM + (kw - PAD)
            src = x if s == 0 else pltpu.roll(x, shift=(-s) % HW, axis=1)
            acc = acc + taps_ref[t] * src
    y = acc + dwb_ref[...]                                 # (C,1) bias, lane-broadcast

    # ---- LayerNorm over trailing W axis (groups of W lanes) --------------------
    # Group means (already broadcast to every lane of the group) come from a matmul
    # with a block-diagonal averaging matrix -> MXU, no cross-lane reshuffle.
    mean = jnp.dot(y, avg_ref[...], preferred_element_type=jnp.float32)
    d = y - mean
    var = jnp.dot(d * d, avg_ref[...], preferred_element_type=jnp.float32)
    yn = d / jnp.sqrt(var + EPS_LN)
    yn = yn * lnw_ref[...] + lnb_ref[...]                  # (1,HW) tiled LN params

    # ---- pwconv1 (Linear dim -> 4*dim, block-diagonal over h) + exact GELU -----
    h1 = jnp.dot(yn, w1_ref[...], preferred_element_type=jnp.float32) + b1_ref[...]
    g = 0.5 * h1 * (1.0 + lax.erf(h1 * np.float32(1.0 / np.sqrt(2.0))))

    # ---- SimAM over (H, 4*dim) of each channel == per-row over all lanes -------
    mu = jnp.mean(g, axis=1, keepdims=True)
    d2 = (g - mu) ** 2
    denom = 4.0 * (jnp.sum(d2, axis=1, keepdims=True) / (HHID - 1) + E_LAMBDA)
    att = d2 / denom + 0.5
    sact = g * jax.nn.sigmoid(att)

    # ---- pwconv2 (Linear 4*dim -> dim, block-diagonal), layer scale, residual --
    h2 = jnp.dot(sact, w2_ref[...], preferred_element_type=jnp.float32) + b2_ref[...]
    o_ref[0, :, :] = x + gamma_ref[...] * h2


def convnext_block(x, dwk, dwb, gamma, lnw, lnb, w1, b1, w2, b2):
    n, c, h, w = x.shape
    # The module's forward only type-checks when spatial W == C == dim.
    assert c == DIM and w == DIM and h == H, "Block requires W == C == dim"
    f32 = x.dtype
    hw = h * w

    xf = x.reshape(n, c, hw)                               # free, lane-dense (last dim 128)

    # Per-tap multiplier: depthwise weight per channel x zero-padding validity per lane.
    lane = jnp.arange(hw)
    hh, ww = lane // w, lane % w
    dh = (jnp.arange(K * K) // K) - PAD
    dwv = (jnp.arange(K * K) % K) - PAD
    valid = ((hh[None, :] + dh[:, None] >= 0) & (hh[None, :] + dh[:, None] < h) &
             (ww[None, :] + dwv[:, None] >= 0) & (ww[None, :] + dwv[:, None] < w))
    taps = dwk.reshape(c, K * K).T[:, :, None] * valid[:, None, :].astype(f32)  # (49,C,HW)

    # Block-diagonal operators that keep LN / pwconv1 / pwconv2 in the (C, H*W) layout.
    eye_h = jnp.eye(h, dtype=f32)
    avg = jnp.kron(eye_h, jnp.full((w, w), 1.0 / w, f32))  # (HW, HW) group-mean matrix
    w1b = jnp.kron(eye_h, w1)                              # (HW, H*HID)
    w2b = jnp.kron(eye_h, w2)                              # (H*HID, HW)
    lnwb = jnp.tile(lnw.reshape(1, w), (1, h))             # (1, HW)
    lnbb = jnp.tile(lnb.reshape(1, w), (1, h))             # (1, HW)
    b1b = jnp.tile(b1.reshape(1, HID), (1, h))             # (1, H*HID)
    b2b = jnp.tile(b2.reshape(1, w), (1, h))               # (1, HW)
    dwb_col = dwb.reshape(c, 1)
    gamma_col = gamma.reshape(c, 1)

    out = pl.pallas_call(
        block_kernel,
        out_shape=jax.ShapeDtypeStruct((n, c, hw), f32),
        grid_spec=pltpu.PrefetchScalarGridSpec(
            num_scalar_prefetch=0,
            grid=(n,),
            in_specs=[
                pl.BlockSpec((1, c, hw), lambda i: (i, 0, 0)),        # x (lane-dense)
                pl.BlockSpec((K * K, c, hw), lambda i: (0, 0, 0)),    # tap weight*mask
                pl.BlockSpec((c, 1), lambda i: (0, 0)),               # dwconv bias
                pl.BlockSpec((c, 1), lambda i: (0, 0)),               # gamma
                pl.BlockSpec((1, hw), lambda i: (0, 0)),              # LN weight (tiled)
                pl.BlockSpec((1, hw), lambda i: (0, 0)),              # LN bias   (tiled)
                pl.BlockSpec((hw, hw), lambda i: (0, 0)),             # LN group-mean mat
                pl.BlockSpec((hw, h * HID), lambda i: (0, 0)),        # pwconv1 W (blk-diag)
                pl.BlockSpec((1, h * HID), lambda i: (0, 0)),         # pwconv1 b (tiled)
                pl.BlockSpec((h * HID, hw), lambda i: (0, 0)),        # pwconv2 W (blk-diag)
                pl.BlockSpec((1, hw), lambda i: (0, 0)),              # pwconv2 b (tiled)
            ],
            out_specs=pl.BlockSpec((1, c, hw), lambda i: (i, 0, 0)),
        ),
        compiler_params=pltpu.CompilerParams(
            dimension_semantics=("parallel",)),
    )(xf, taps, dwb_col, gamma_col, lnwb, lnbb, avg, w1b, b1b, w2b, b2b)
    return out.reshape(n, c, h, w)


def reference(x, dwk, dwb, gamma, lnw, lnb, w1, b1, w2, b2):
    hp = lax.Precision.HIGHEST
    y = lax.conv_general_dilated(
        x, dwk[:, None, :, :], window_strides=(1, 1),
        padding=((PAD, PAD), (PAD, PAD)),
        dimension_numbers=("NCHW", "OIHW", "NCHW"),
        feature_group_count=DIM, precision=hp)
    y = y + dwb[None, :, None, None]
    mean = jnp.mean(y, axis=-1, keepdims=True)
    var = jnp.mean((y - mean) ** 2, axis=-1, keepdims=True)
    y = (y - mean) / jnp.sqrt(var + EPS_LN) * lnw[0] + lnb[0]
    h1 = jnp.dot(y, w1, precision=hp) + b1[0]
    g = 0.5 * h1 * (1.0 + lax.erf(h1 / np.sqrt(2.0)))
    mu = jnp.mean(g, axis=(2, 3), keepdims=True)
    d2 = (g - mu) ** 2
    n_el = g.shape[2] * g.shape[3] - 1
    att = d2 / (4.0 * (jnp.sum(d2, axis=(2, 3), keepdims=True) / n_el + E_LAMBDA)) + 0.5
    s = g * jax.nn.sigmoid(att)
    h2 = jnp.dot(s, w2, precision=hp) + b2[0]
    return x + gamma[None, :, None, None] * h2


if __name__ == "__main__":
    key = jax.random.PRNGKey(0)
    ks = jax.random.split(key, 8)
    x = jax.random.normal(ks[0], (N, DIM, H, DIM), jnp.float32)

    # Deterministic synthetic parameters (shapes follow the module __init__).
    dwk = jax.random.normal(ks[1], (DIM, K, K), jnp.float32) * 0.1      # Conv2d weight (dim,1,7,7) squeezed
    dwb = jax.random.normal(ks[2], (DIM,), jnp.float32) * 0.1           # Conv2d bias
    lnw = jnp.ones((1, DIM), jnp.float32)                               # LayerNorm weight (ones)
    lnb = jnp.zeros((1, DIM), jnp.float32)                              # LayerNorm bias  (zeros)
    w1 = jax.random.normal(ks[3], (DIM, HID), jnp.float32) * 0.1        # pwconv1.weight.T
    b1 = jax.random.normal(ks[4], (1, HID), jnp.float32) * 0.1
    w2 = jax.random.normal(ks[5], (HID, DIM), jnp.float32) * 0.1        # pwconv2.weight.T
    b2 = jax.random.normal(ks[6], (1, DIM), jnp.float32) * 0.1
    # Module inits gamma to zeros (block would collapse to identity); use nonzero values
    # so the whole compute path is exercised.
    gamma = jax.random.normal(ks[7], (DIM,), jnp.float32) * 0.1

    out = convnext_block(x, dwk, dwb, gamma, lnw, lnb, w1, b1, w2, b2)
    out = jax.block_until_ready(out)

    ref = reference(x, dwk, dwb, gamma, lnw, lnb, w1, b1, w2, b2)
    assert out.shape == x.shape
    np.testing.assert_allclose(np.asarray(out), np.asarray(ref), rtol=5e-3, atol=5e-3)
    print("KERNEL_OK")
</pallas_src>

<mosaic_0001>
module attributes {stable_mosaic.version = 11 : i64} {
  func.func @block_kernel(%arg0: i32, %arg1: memref<1x16x128xf32, #tpu.memory_space<vmem>>, %arg2: memref<49x16x128xf32, #tpu.memory_space<vmem>>, %arg3: memref<16x1xf32, #tpu.memory_space<vmem>>, %arg4: memref<16x1xf32, #tpu.memory_space<vmem>>, %arg5: memref<1x128xf32, #tpu.memory_space<vmem>>, %arg6: memref<1x128xf32, #tpu.memory_space<vmem>>, %arg7: memref<128x128xf32, #tpu.memory_space<vmem>>, %arg8: memref<128x512xf32, #tpu.memory_space<vmem>>, %arg9: memref<1x512xf32, #tpu.memory_space<vmem>>, %arg10: memref<512x128xf32, #tpu.memory_space<vmem>>, %arg11: memref<1x128xf32, #tpu.memory_space<vmem>>, %arg12: memref<1x16x128xf32, #tpu.memory_space<vmem>>) attributes {dimension_semantics = [#tpu.dimension_semantics<parallel>], iteration_bounds = array<i64: 2>, scalar_prefetch = 0 : i64, scratch_operands = 0 : i64, tpu.core_type = #tpu.core_type<tc>, window_params = [{transform_indices = @transform_0, window_bounds = array<i64: 1, 16, 128>}, {pipeline_mode = #tpu.pipeline_mode<synchronous>, transform_indices = @transform_1, window_bounds = array<i64: 49, 16, 128>}, {pipeline_mode = #tpu.pipeline_mode<synchronous>, transform_indices = @transform_2, window_bounds = array<i64: 16, 1>}, {pipeline_mode = #tpu.pipeline_mode<synchronous>, transform_indices = @transform_3, window_bounds = array<i64: 16, 1>}, {pipeline_mode = #tpu.pipeline_mode<synchronous>, transform_indices = @transform_4, window_bounds = array<i64: 1, 128>}, {pipeline_mode = #tpu.pipeline_mode<synchronous>, transform_indices = @transform_5, window_bounds = array<i64: 1, 128>}, {pipeline_mode = #tpu.pipeline_mode<synchronous>, transform_indices = @transform_6, window_bounds = array<i64: 128, 128>}, {pipeline_mode = #tpu.pipeline_mode<synchronous>, transform_indices = @transform_7, window_bounds = array<i64: 128, 512>}, {pipeline_mode = #tpu.pipeline_mode<synchronous>, transform_indices = @transform_8, window_bounds = array<i64: 1, 512>}, {pipeline_mode = #tpu.pipeline_mode<synchronous>, transform_indices = @transform_9, window_bounds = array<i64: 512, 128>}, {pipeline_mode = #tpu.pipeline_mode<synchronous>, transform_indices = @transform_10, window_bounds = array<i64: 1, 128>}, {transform_indices = @transform_11, window_bounds = array<i64: 1, 16, 128>}]} {
    %c0 = arith.constant 0 : index
    %c0_0 = arith.constant 0 : index
    %c0_1 = arith.constant 0 : index
    %0 = vector.load %arg1[%c0, %c0_0, %c0_1] : memref<1x16x128xf32, #tpu.memory_space<vmem>>, vector<1x16x128xf32>
    %1 = vector.shape_cast %0 : vector<1x16x128xf32> to vector<16x128xf32>
    %cst = arith.constant 0.000000e+00 : f32
    %2 = vector.broadcast %cst : f32 to vector<16x128xf32>
    %c51_i32 = arith.constant 51 : i32
    %3 = tpu.dynamic_rotate %1 by %c51_i32 dim 1 : vector<16x128xf32>, i32 -> vector<16x128xf32>
    %c0_2 = arith.constant 0 : index
    %c0_3 = arith.constant 0 : index
    %c0_4 = arith.constant 0 : index
    %4 = vector.load %arg2[%c0_2, %c0_3, %c0_4] : memref<49x16x128xf32, #tpu.memory_space<vmem>>, vector<1x16x128xf32>
    %5 = vector.shape_cast %4 : vector<1x16x128xf32> to vector<16x128xf32>
    %6 = arith.mulf %5, %3 : vector<16x128xf32>
    %7 = arith.addf %2, %6 : vector<16x128xf32>
    %c50_i32 = arith.constant 50 : i32
    %8 = tpu.dynamic_rotate %1 by %c50_i32 dim 1 : vector<16x128xf32>, i32 -> vector<16x128xf32>
    %c1 = arith.constant 1 : index
    %c0_5 = arith.constant 0 : index
    %c0_6 = arith.constant 0 : index
    %9 = vector.load %arg2[%c1, %c0_5, %c0_6] : memref<49x16x128xf32, #tpu.memory_space<vmem>>, vector<1x16x128xf32>
    %10 = vector.shape_cast %9 : vector<1x16x128xf32> to vector<16x128xf32>
    %11 = arith.mulf %10, %8 : vector<16x128xf32>
    %12 = arith.addf %7, %11 : vector<16x128xf32>
    %c49_i32 = arith.constant 49 : i32
    %13 = tpu.dynamic_rotate %1 by %c49_i32 dim 1 : vector<16x128xf32>, i32 -> vector<16x128xf32>
    %c2 = arith.constant 2 : index
    %c0_7 = arith.constant 0 : index
    %c0_8 = arith.constant 0 : index
    %14 = vector.load %arg2[%c2, %c0_7, %c0_8] : memref<49x16x128xf32, #tpu.memory_space<vmem>>, vector<1x16x128xf32>
    %15 = vector.shape_cast %14 : vector<1x16x128xf32> to vector<16x128xf32>
    %16 = arith.mulf %15, %13 : vector<16x128xf32>
    %17 = arith.addf %12, %16 : vector<16x128xf32>
    %c48_i32 = arith.constant 48 : i32
    %18 = tpu.dynamic_rotate %1 by %c48_i32 dim 1 : vector<16x128xf32>, i32 -> vector<16x128xf32>
    %c3 = arith.constant 3 : index
    %c0_9 = arith.constant 0 : index
    %c0_10 = arith.constant 0 : index
    %19 = vector.load %arg2[%c3, %c0_9, %c0_10] : memref<49x16x128xf32, #tpu.memory_space<vmem>>, vector<1x16x128xf32>
    %20 = vector.shape_cast %19 : vector<1x16x128xf32> to vector<16x128xf32>
    %21 = arith.mulf %20, %18 : vector<16x128xf32>
    %22 = arith.addf %17, %21 : vector<16x128xf32>
    %c47_i32 = arith.constant 47 : i32
    %23 = tpu.dynamic_rotate %1 by %c47_i32 dim 1 : vector<16x128xf32>, i32 -> vector<16x128xf32>
    %c4 = arith.constant 4 : index
    %c0_11 = arith.constant 0 : index
    %c0_12 = arith.constant 0 : index
    %24 = vector.load %arg2[%c4, %c0_11, %c0_12] : memref<49x16x128xf32, #tpu.memory_space<vmem>>, vector<1x16x128xf32>
    %25 = vector.shape_cast %24 : vector<1x16x128xf32> to vector<16x128xf32>
    %26 = arith.mulf %25, %23 : vector<16x128xf32>
    %27 = arith.addf %22, %26 : vector<16x128xf32>
    %c46_i32 = arith.constant 46 : i32
    %28 = tpu.dynamic_rotate %1 by %c46_i32 dim 1 : vector<16x128xf32>, i32 -> vector<16x128xf32>
    %c5 = arith.constant 5 : index
    %c0_13 = arith.constant 0 : index
    %c0_14 = arith.constant 0 : index
    %29 = vector.load %arg2[%c5, %c0_13, %c0_14] : memref<49x16x128xf32, #tpu.memory_space<vmem>>, vector<1x16x128xf32>
    %30 = vector.shape_cast %29 : vector<1x16x128xf32> to vector<16x128xf32>
    %31 = arith.mulf %30, %28 : vector<16x128xf32>
    %32 = arith.addf %27, %31 : vector<16x128xf32>
    %c45_i32 = arith.constant 45 : i32
    %33 = tpu.dynamic_rotate %1 by %c45_i32 dim 1 : vector<16x128xf32>, i32 -> vector<16x128xf32>
    %c6 = arith.constant 6 : index
    %c0_15 = arith.constant 0 : index
    %c0_16 = arith.constant 0 : index
    %34 = vector.load %arg2[%c6, %c0_15, %c0_16] : memref<49x16x128xf32, #tpu.memory_space<vmem>>, vector<1x16x128xf32>
    %35 = vector.shape_cast %34 : vector<1x16x128xf32> to vector<16x128xf32>
    %36 = arith.mulf %35, %33 : vector<16x128xf32>
    %37 = arith.addf %32, %36 : vector<16x128xf32>
    %c35_i32 = arith.constant 35 : i32
    %38 = tpu.dynamic_rotate %1 by %c35_i32 dim 1 : vector<16x128xf32>, i32 -> vector<16x128xf32>
    %c7 = arith.constant 7 : index
    %c0_17 = arith.constant 0 : index
    %c0_18 = arith.constant 0 : index
    %39 = vector.load %arg2[%c7, %c0_17, %c0_18] : memref<49x16x128xf32, #tpu.memory_space<vmem>>, vector<1x16x128xf32>
    %40 = vector.shape_cast %39 : vector<1x16x128xf32> to vector<16x128xf32>
    %41 = arith.mulf %40, %38 : vector<16x128xf32>
    %42 = arith.addf %37, %41 : vector<16x128xf32>
    %c34_i32 = arith.constant 34 : i32
    %43 = tpu.dynamic_rotate %1 by %c34_i32 dim 1 : vector<16x128xf32>, i32 -> vector<16x128xf32>
    %c8 = arith.constant 8 : index
    %c0_19 = arith.constant 0 : index
    %c0_20 = arith.constant 0 : index
    %44 = vector.load %arg2[%c8, %c0_19, %c0_20] : memref<49x16x128xf32, #tpu.memory_space<vmem>>, vector<1x16x128xf32>
    %45 = vector.shape_cast %44 : vector<1x16x128xf32> to vector<16x128xf32>
    %46 = arith.mulf %45, %43 : vector<16x128xf32>
    %47 = arith.addf %42, %46 : vector<16x128xf32>
    %c33_i32 = arith.constant 33 : i32
    %48 = tpu.dynamic_rotate %1 by %c33_i32 dim 1 : vector<16x128xf32>, i32 -> vector<16x128xf32>
    %c9 = arith.constant 9 : index
    %c0_21 = arith.constant 0 : index
    %c0_22 = arith.constant 0 : index
    %49 = vector.load %arg2[%c9, %c0_21, %c0_22] : memref<49x16x128xf32, #tpu.memory_space<vmem>>, vector<1x16x128xf32>
    %50 = vector.shape_cast %49 : vector<1x16x128xf32> to vector<16x128xf32>
    %51 = arith.mulf %50, %48 : vector<16x128xf32>
    %52 = arith.addf %47, %51 : vector<16x128xf32>
    %c32_i32 = arith.constant 32 : i32
    %53 = tpu.dynamic_rotate %1 by %c32_i32 dim 1 : vector<16x128xf32>, i32 -> vector<16x128xf32>
    %c10 = arith.constant 10 : index
    %c0_23 = arith.constant 0 : index
    %c0_24 = arith.constant 0 : index
    %54 = vector.load %arg2[%c10, %c0_23, %c0_24] : memref<49x16x128xf32, #tpu.memory_space<vmem>>, vector<1x16x128xf32>
    %55 = vector.shape_cast %54 : vector<1x16x128xf32> to vector<16x128xf32>
    %56 = arith.mulf %55, %53 : vector<16x128xf32>
    %57 = arith.addf %52, %56 : vector<16x128xf32>
    %c31_i32 = arith.constant 31 : i32
    %58 = tpu.dynamic_rotate %1 by %c31_i32 dim 1 : vector<16x128xf32>, i32 -> vector<16x128xf32>
    %c11 = arith.constant 11 : index
    %c0_25 = arith.constant 0 : index
    %c0_26 = arith.constant 0 : index
    %59 = vector.load %arg2[%c11, %c0_25, %c0_26] : memref<49x16x128xf32, #tpu.memory_space<vmem>>, vector<1x16x128xf32>
    %60 = vector.shape_cast %59 : vector<1x16x128xf32> to vector<16x128xf32>
    %61 = arith.mulf %60, %58 : vector<16x128xf32>
    %62 = arith.addf %57, %61 : vector<16x128xf32>
    %c30_i32 = arith.constant 30 : i32
    %63 = tpu.dynamic_rotate %1 by %c30_i32 dim 1 : vector<16x128xf32>, i32 -> vector<16x128xf32>
    %c12 = arith.constant 12 : index
    %c0_27 = arith.constant 0 : index
    %c0_28 = arith.constant 0 : index
    %64 = vector.load %arg2[%c12, %c0_27, %c0_28] : memref<49x16x128xf32, #tpu.memory_space<vmem>>, vector<1x16x128xf32>
    %65 = vector.shape_cast %64 : vector<1x16x128xf32> to vector<16x128xf32>
    %66 = arith.mulf %65, %63 : vector<16x128xf32>
    %67 = arith.addf %62, %66 : vector<16x128xf32>
    %c29_i32 = arith.constant 29 : i32
    %68 = tpu.dynamic_rotate %1 by %c29_i32 dim 1 : vector<16x128xf32>, i32 -> vector<16x128xf32>
    %c13 = arith.constant 13 : index
    %c0_29 = arith.constant 0 : index
    %c0_30 = arith.constant 0 : index
    %69 = vector.load %arg2[%c13, %c0_29, %c0_30] : memref<49x16x128xf32, #tpu.memory_space<vmem>>, vector<1x16x128xf32>
    %70 = vector.shape_cast %69 : vector<1x16x128xf32> to vector<16x128xf32>
    %71 = arith.mulf %70, %68 : vector<16x128xf32>
    %72 = arith.addf %67, %71 : vector<16x128xf32>
    %c19_i32 = arith.constant 19 : i32
    %73 = tpu.dynamic_rotate %1 by %c19_i32 dim 1 : vector<16x128xf32>, i32 -> vector<16x128xf32>
    %c14 = arith.constant 14 : index
    %c0_31 = arith.constant 0 : index
    %c0_32 = arith.constant 0 : index
    %74 = vector.load %arg2[%c14, %c0_31, %c0_32] : memref<49x16x128xf32, #tpu.memory_space<vmem>>, vector<1x16x128xf32>
    %75 = vector.shape_cast %74 : vector<1x16x128xf32> to vector<16x128xf32>
    %76 = arith.mulf %75, %73 : vector<16x128xf32>
    %77 = arith.addf %72, %76 : vector<16x128xf32>
    %c18_i32 = arith.constant 18 : i32
    %78 = tpu.dynamic_rotate %1 by %c18_i32 dim 1 : vector<16x128xf32>, i32 -> vector<16x128xf32>
    %c15 = arith.constant 15 : index
    %c0_33 = arith.constant 0 : index
    %c0_34 = arith.constant 0 : index
    %79 = vector.load %arg2[%c15, %c0_33, %c0_34] : memref<49x16x128xf32, #tpu.memory_space<vmem>>, vector<1x16x128xf32>
    %80 = vector.shape_cast %79 : vector<1x16x128xf32> to vector<16x128xf32>
    %81 = arith.mulf %80, %78 : vector<16x128xf32>
    %82 = arith.addf %77, %81 : vector<16x128xf32>
    %c17_i32 = arith.constant 17 : i32
    %83 = tpu.dynamic_rotate %1 by %c17_i32 dim 1 : vector<16x128xf32>, i32 -> vector<16x128xf32>
    %c16 = arith.constant 16 : index
    %c0_35 = arith.constant 0 : index
    %c0_36 = arith.constant 0 : index
    %84 = vector.load %arg2[%c16, %c0_35, %c0_36] : memref<49x16x128xf32, #tpu.memory_space<vmem>>, vector<1x16x128xf32>
    %85 = vector.shape_cast %84 : vector<1x16x128xf32> to vector<16x128xf32>
    %86 = arith.mulf %85, %83 : vector<16x128xf32>
    %87 = arith.addf %82, %86 : vector<16x128xf32>
    %c16_i32 = arith.constant 16 : i32
    %88 = tpu.dynamic_rotate %1 by %c16_i32 dim 1 : vector<16x128xf32>, i32 -> vector<16x128xf32>
    %c17 = arith.constant 17 : index
    %c0_37 = arith.constant 0 : index
    %c0_38 = arith.constant 0 : index
    %89 = vector.load %arg2[%c17, %c0_37, %c0_38] : memref<49x16x128xf32, #tpu.memory_space<vmem>>, vector<1x16x128xf32>
    %90 = vector.shape_cast %89 : vector<1x16x128xf32> to vector<16x128xf32>
    %91 = arith.mulf %90, %88 : vector<16x128xf32>
    %92 = arith.addf %87, %91 : vector<16x128xf32>
    %c15_i32 = arith.constant 15 : i32
    %93 = tpu.dynamic_rotate %1 by %c15_i32 dim 1 : vector<16x128xf32>, i32 -> vector<16x128xf32>
    %c18 = arith.constant 18 : index
    %c0_39 = arith.constant 0 : index
    %c0_40 = arith.constant 0 : index
    %94 = vector.load %arg2[%c18, %c0_39, %c0_40] : memref<49x16x128xf32, #tpu.memory_space<vmem>>, vector<1x16x128xf32>
    %95 = vector.shape_cast %94 : vector<1x16x128xf32> to vector<16x128xf32>
    %96 = arith.mulf %95, %93 : vector<16x128xf32>
    %97 = arith.addf %92, %96 : vector<16x128xf32>
    %c14_i32 = arith.constant 14 : i32
    %98 = tpu.dynamic_rotate %1 by %c14_i32 dim 1 : vector<16x128xf32>, i32 -> vector<16x128xf32>
    %c19 = arith.constant 19 : index
    %c0_41 = arith.constant 0 : index
    %c0_42 = arith.constant 0 : index
    %99 = vector.load %arg2[%c19, %c0_41, %c0_42] : memref<49x16x128xf32, #tpu.memory_space<vmem>>, vector<1x16x128xf32>
    %100 = vector.shape_cast %99 : vector<1x16x128xf32> to vector<16x128xf32>
    %101 = arith.mulf %100, %98 : vector<16x128xf32>
    %102 = arith.addf %97, %101 : vector<16x128xf32>
    %c13_i32 = arith.constant 13 : i32
    %103 = tpu.dynamic_rotate %1 by %c13_i32 dim 1 : vector<16x128xf32>, i32 -> vector<16x128xf32>
    %c20 = arith.constant 20 : index
    %c0_43 = arith.constant 0 : index
    %c0_44 = arith.constant 0 : index
    %104 = vector.load %arg2[%c20, %c0_43, %c0_44] : memref<49x16x128xf32, #tpu.memory_space<vmem>>, vector<1x16x128xf32>
    %105 = vector.shape_cast %104 : vector<1x16x128xf32> to vector<16x128xf32>
    %106 = arith.mulf %105, %103 : vector<16x128xf32>
    %107 = arith.addf %102, %106 : vector<16x128xf32>
    %c3_i32 = arith.constant 3 : i32
    %108 = tpu.dynamic_rotate %1 by %c3_i32 dim 1 : vector<16x128xf32>, i32 -> vector<16x128xf32>
    %c21 = arith.constant 21 : index
    %c0_45 = arith.constant 0 : index
    %c0_46 = arith.constant 0 : index
    %109 = vector.load %arg2[%c21, %c0_45, %c0_46] : memref<49x16x128xf32, #tpu.memory_space<vmem>>, vector<1x16x128xf32>
    %110 = vector.shape_cast %109 : vector<1x16x128xf32> to vector<16x128xf32>
    %111 = arith.mulf %110, %108 : vector<16x128xf32>
    %112 = arith.addf %107, %111 : vector<16x128xf32>
    %c2_i32 = arith.constant 2 : i32
    %113 = tpu.dynamic_rotate %1 by %c2_i32 dim 1 : vector<16x128xf32>, i32 -> vector<16x128xf32>
    %c22 = arith.constant 22 : index
    %c0_47 = arith.constant 0 : index
    %c0_48 = arith.constant 0 : index
    %114 = vector.load %arg2[%c22, %c0_47, %c0_48] : memref<49x16x128xf32, #tpu.memory_space<vmem>>, vector<1x16x128xf32>
    %115 = vector.shape_cast %114 : vector<1x16x128xf32> to vector<16x128xf32>
    %116 = arith.mulf %115, %113 : vector<16x128xf32>
    %117 = arith.addf %112, %116 : vector<16x128xf32>
    %c1_i32 = arith.constant 1 : i32
    %118 = tpu.dynamic_rotate %1 by %c1_i32 dim 1 : vector<16x128xf32>, i32 -> vector<16x128xf32>
    %c23 = arith.constant 23 : index
    %c0_49 = arith.constant 0 : index
    %c0_50 = arith.constant 0 : index
    %119 = vector.load %arg2[%c23, %c0_49, %c0_50] : memref<49x16x128xf32, #tpu.memory_space<vmem>>, vector<1x16x128xf32>
    %120 = vector.shape_cast %119 : vector<1x16x128xf32> to vector<16x128xf32>
    %121 = arith.mulf %120, %118 : vector<16x128xf32>
    %122 = arith.addf %117, %121 : vector<16x128xf32>
    %c24 = arith.constant 24 : index
    %c0_51 = arith.constant 0 : index
    %c0_52 = arith.constant 0 : index
    %123 = vector.load %arg2[%c24, %c0_51, %c0_52] : memref<49x16x128xf32, #tpu.memory_space<vmem>>, vector<1x16x128xf32>
    %124 = vector.shape_cast %123 : vector<1x16x128xf32> to vector<16x128xf32>
    %125 = arith.mulf %124, %1 : vector<16x128xf32>
    %126 = arith.addf %122, %125 : vector<16x128xf32>
    %c127_i32 = arith.constant 127 : i32
    %127 = tpu.dynamic_rotate %1 by %c127_i32 dim 1 : vector<16x128xf32>, i32 -> vector<16x128xf32>
    %c25 = arith.constant 25 : index
    %c0_53 = arith.constant 0 : index
    %c0_54 = arith.constant 0 : index
    %128 = vector.load %arg2[%c25, %c0_53, %c0_54] : memref<49x16x128xf32, #tpu.memory_space<vmem>>, vector<1x16x128xf32>
    %129 = vector.shape_cast %128 : vector<1x16x128xf32> to vector<16x128xf32>
    %130 = arith.mulf %129, %127 : vector<16x128xf32>
    %131 = arith.addf %126, %130 : vector<16x128xf32>
    %c126_i32 = arith.constant 126 : i32
    %132 = tpu.dynamic_rotate %1 by %c126_i32 dim 1 : vector<16x128xf32>, i32 -> vector<16x128xf32>
    %c26 = arith.constant 26 : index
    %c0_55 = arith.constant 0 : index
    %c0_56 = arith.constant 0 : index
    %133 = vector.load %arg2[%c26, %c0_55, %c0_56] : memref<49x16x128xf32, #tpu.memory_space<vmem>>, vector<1x16x128xf32>
    %134 = vector.shape_cast %133 : vector<1x16x128xf32> to vector<16x128xf32>
    %135 = arith.mulf %134, %132 : vector<16x128xf32>
    %136 = arith.addf %131, %135 : vector<16x128xf32>
    %c125_i32 = arith.constant 125 : i32
    %137 = tpu.dynamic_rotate %1 by %c125_i32 dim 1 : vector<16x128xf32>, i32 -> vector<16x128xf32>
    %c27 = arith.constant 27 : index
    %c0_57 = arith.constant 0 : index
    %c0_58 = arith.constant 0 : index
    %138 = vector.load %arg2[%c27, %c0_57, %c0_58] : memref<49x16x128xf32, #tpu.memory_space<vmem>>, vector<1x16x128xf32>
    %139 = vector.shape_cast %138 : vector<1x16x128xf32> to vector<16x128xf32>
    %140 = arith.mulf %139, %137 : vector<16x128xf32>
    %141 = arith.addf %136, %140 : vector<16x128xf32>
    %c115_i32 = arith.constant 115 : i32
    %142 = tpu.dynamic_rotate %1 by %c115_i32 dim 1 : vector<16x128xf32>, i32 -> vector<16x128xf32>
    %c28 = arith.constant 28 : index
    %c0_59 = arith.constant 0 : index
    %c0_60 = arith.constant 0 : index
    %143 = vector.load %arg2[%c28, %c0_59, %c0_60] : memref<49x16x128xf32, #tpu.memory_space<vmem>>, vector<1x16x128xf32>
    %144 = vector.shape_cast %143 : vector<1x16x128xf32> to vector<16x128xf32>
    %145 = arith.mulf %144, %142 : vector<16x128xf32>
    %146 = arith.addf %141, %145 : vector<16x128xf32>
    %c114_i32 = arith.constant 114 : i32
    %147 = tpu.dynamic_rotate %1 by %c114_i32 dim 1 : vector<16x128xf32>, i32 -> vector<16x128xf32>
    %c29 = arith.constant 29 : index
    %c0_61 = arith.constant 0 : index
    %c0_62 = arith.constant 0 : index
    %148 = vector.load %arg2[%c29, %c0_61, %c0_62] : memref<49x16x128xf32, #tpu.memory_space<vmem>>, vector<1x16x128xf32>
    %149 = vector.shape_cast %148 : vector<1x16x128xf32> to vector<16x128xf32>
    %150 = arith.mulf %149, %147 : vector<16x128xf32>
    %151 = arith.addf %146, %150 : vector<16x128xf32>
    %c113_i32 = arith.constant 113 : i32
    %152 = tpu.dynamic_rotate %1 by %c113_i32 dim 1 : vector<16x128xf32>, i32 -> vector<16x128xf32>
    %c30 = arith.constant 30 : index
    %c0_63 = arith.constant 0 : index
    %c0_64 = arith.constant 0 : index
    %153 = vector.load %arg2[%c30, %c0_63, %c0_64] : memref<49x16x128xf32, #tpu.memory_space<vmem>>, vector<1x16x128xf32>
    %154 = vector.shape_cast %153 : vector<1x16x128xf32> to vector<16x128xf32>
    %155 = arith.mulf %154, %152 : vector<16x128xf32>
    %156 = arith.addf %151, %155 : vector<16x128xf32>
    %c112_i32 = arith.constant 112 : i32
    %157 = tpu.dynamic_rotate %1 by %c112_i32 dim 1 : vector<16x128xf32>, i32 -> vector<16x128xf32>
    %c31 = arith.constant 31 : index
    %c0_65 = arith.constant 0 : index
    %c0_66 = arith.constant 0 : index
    %158 = vector.load %arg2[%c31, %c0_65, %c0_66] : memref<49x16x128xf32, #tpu.memory_space<vmem>>, vector<1x16x128xf32>
    %159 = vector.shape_cast %158 : vector<1x16x128xf32> to vector<16x128xf32>
    %160 = arith.mulf %159, %157 : vector<16x128xf32>
    %161 = arith.addf %156, %160 : vector<16x128xf32>
    %c111_i32 = arith.constant 111 : i32
    %162 = tpu.dynamic_rotate %1 by %c111_i32 dim 1 : vector<16x128xf32>, i32 -> vector<16x128xf32>
    %c32 = arith.constant 32 : index
    %c0_67 = arith.constant 0 : index
    %c0_68 = arith.constant 0 : index
    %163 = vector.load %arg2[%c32, %c0_67, %c0_68] : memref<49x16x128xf32, #tpu.memory_space<vmem>>, vector<1x16x128xf32>
    %164 = vector.shape_cast %163 : vector<1x16x128xf32> to vector<16x128xf32>
    %165 = arith.mulf %164, %162 : vector<16x128xf32>
    %166 = arith.addf %161, %165 : vector<16x128xf32>
    %c110_i32 = arith.constant 110 : i32
    %167 = tpu.dynamic_rotate %1 by %c110_i32 dim 1 : vector<16x128xf32>, i32 -> vector<16x128xf32>
    %c33 = arith.constant 33 : index
    %c0_69 = arith.constant 0 : index
    %c0_70 = arith.constant 0 : index
    %168 = vector.load %arg2[%c33, %c0_69, %c0_70] : memref<49x16x128xf32, #tpu.memory_space<vmem>>, vector<1x16x128xf32>
    %169 = vector.shape_cast %168 : vector<1x16x128xf32> to vector<16x128xf32>
    %170 = arith.mulf %169, %167 : vector<16x128xf32>
    %171 = arith.addf %166, %170 : vector<16x128xf32>
    %c109_i32 = arith.constant 109 : i32
    %172 = tpu.dynamic_rotate %1 by %c109_i32 dim 1 : vector<16x128xf32>, i32 -> vector<16x128xf32>
    %c34 = arith.constant 34 : index
    %c0_71 = arith.constant 0 : index
    %c0_72 = arith.constant 0 : index
    %173 = vector.load %arg2[%c34, %c0_71, %c0_72] : memref<49x16x128xf32, #tpu.memory_space<vmem>>, vector<1x16x128xf32>
    %174 = vector.shape_cast %173 : vector<1x16x128xf32> to vector<16x128xf32>
    %175 = arith.mulf %174, %172 : vector<16x128xf32>
    %176 = arith.addf %171, %175 : vector<16x128xf32>
    %c99_i32 = arith.constant 99 : i32
    %177 = tpu.dynamic_rotate %1 by %c99_i32 dim 1 : vector<16x128xf32>, i32 -> vector<16x128xf32>
    %c35 = arith.constant 35 : index
    %c0_73 = arith.constant 0 : index
    %c0_74 = arith.constant 0 : index
    %178 = vector.load %arg2[%c35, %c0_73, %c0_74] : memref<49x16x128xf32, #tpu.memory_space<vmem>>, vector<1x16x128xf32>
    %179 = vector.shape_cast %178 : vector<1x16x128xf32> to vector<16x128xf32>
    %180 = arith.mulf %179, %177 : vector<16x128xf32>
    %181 = arith.addf %176, %180 : vector<16x128xf32>
    %c98_i32 = arith.constant 98 : i32
    %182 = tpu.dynamic_rotate %1 by %c98_i32 dim 1 : vector<16x128xf32>, i32 -> vector<16x128xf32>
    %c36 = arith.constant 36 : index
    %c0_75 = arith.constant 0 : index
    %c0_76 = arith.constant 0 : index
    %183 = vector.load %arg2[%c36, %c0_75, %c0_76] : memref<49x16x128xf32, #tpu.memory_space<vmem>>, vector<1x16x128xf32>
    %184 = vector.shape_cast %183 : vector<1x16x128xf32> to vector<16x128xf32>
    %185 = arith.mulf %184, %182 : vector<16x128xf32>
    %186 = arith.addf %181, %185 : vector<16x128xf32>
    %c97_i32 = arith.constant 97 : i32
    %187 = tpu.dynamic_rotate %1 by %c97_i32 dim 1 : vector<16x128xf32>, i32 -> vector<16x128xf32>
    %c37 = arith.constant 37 : index
    %c0_77 = arith.constant 0 : index
    %c0_78 = arith.constant 0 : index
    %188 = vector.load %arg2[%c37, %c0_77, %c0_78] : memref<49x16x128xf32, #tpu.memory_space<vmem>>, vector<1x16x128xf32>
    %189 = vector.shape_cast %188 : vector<1x16x128xf32> to vector<16x128xf32>
    %190 = arith.mulf %189, %187 : vector<16x128xf32>
    %191 = arith.addf %186, %190 : vector<16x128xf32>
    %c96_i32 = arith.constant 96 : i32
    %192 = tpu.dynamic_rotate %1 by %c96_i32 dim 1 : vector<16x128xf32>, i32 -> vector<16x128xf32>
    %c38 = arith.constant 38 : index
    %c0_79 = arith.constant 0 : index
    %c0_80 = arith.constant 0 : index
    %193 = vector.load %arg2[%c38, %c0_79, %c0_80] : memref<49x16x128xf32, #tpu.memory_space<vmem>>, vector<1x16x128xf32>
    %194 = vector.shape_cast %193 : vector<1x16x128xf32> to vector<16x128xf32>
    %195 = arith.mulf %194, %192 : vector<16x128xf32>
    %196 = arith.addf %191, %195 : vector<16x128xf32>
    %c95_i32 = arith.constant 95 : i32
    %197 = tpu.dynamic_rotate %1 by %c95_i32 dim 1 : vector<16x128xf32>, i32 -> vector<16x128xf32>
    %c39 = arith.constant 39 : index
    %c0_81 = arith.constant 0 : index
    %c0_82 = arith.constant 0 : index
    %198 = vector.load %arg2[%c39, %c0_81, %c0_82] : memref<49x16x128xf32, #tpu.memory_space<vmem>>, vector<1x16x128xf32>
    %199 = vector.shape_cast %198 : vector<1x16x128xf32> to vector<16x128xf32>
    %200 = arith.mulf %199, %197 : vector<16x128xf32>
    %201 = arith.addf %196, %200 : vector<16x128xf32>
    %c94_i32 = arith.constant 94 : i32
    %202 = tpu.dynamic_rotate %1 by %c94_i32 dim 1 : vector<16x128xf32>, i32 -> vector<16x128xf32>
    %c40 = arith.constant 40 : index
    %c0_83 = arith.constant 0 : index
    %c0_84 = arith.constant 0 : index
    %203 = vector.load %arg2[%c40, %c0_83, %c0_84] : memref<49x16x128xf32, #tpu.memory_space<vmem>>, vector<1x16x128xf32>
    %204 = vector.shape_cast %203 : vector<1x16x128xf32> to vector<16x128xf32>
    %205 = arith.mulf %204, %202 : vector<16x128xf32>
    %206 = arith.addf %201, %205 : vector<16x128xf32>
    %c93_i32 = arith.constant 93 : i32
    %207 = tpu.dynamic_rotate %1 by %c93_i32 dim 1 : vector<16x128xf32>, i32 -> vector<16x128xf32>
    %c41 = arith.constant 41 : index
    %c0_85 = arith.constant 0 : index
    %c0_86 = arith.constant 0 : index
    %208 = vector.load %arg2[%c41, %c0_85, %c0_86] : memref<49x16x128xf32, #tpu.memory_space<vmem>>, vector<1x16x128xf32>
    %209 = vector.shape_cast %208 : vector<1x16x128xf32> to vector<16x128xf32>
    %210 = arith.mulf %209, %207 : vector<16x128xf32>
    %211 = arith.addf %206, %210 : vector<16x128xf32>
    %c83_i32 = arith.constant 83 : i32
    %212 = tpu.dynamic_rotate %1 by %c83_i32 dim 1 : vector<16x128xf32>, i32 -> vector<16x128xf32>
    %c42 = arith.constant 42 : index
    %c0_87 = arith.constant 0 : index
    %c0_88 = arith.constant 0 : index
    %213 = vector.load %arg2[%c42, %c0_87, %c0_88] : memref<49x16x128xf32, #tpu.memory_space<vmem>>, vector<1x16x128xf32>
    %214 = vector.shape_cast %213 : vector<1x16x128xf32> to vector<16x128xf32>
    %215 = arith.mulf %214, %212 : vector<16x128xf32>
    %216 = arith.addf %211, %215 : vector<16x128xf32>
    %c82_i32 = arith.constant 82 : i32
    %217 = tpu.dynamic_rotate %1 by %c82_i32 dim 1 : vector<16x128xf32>, i32 -> vector<16x128xf32>
    %c43 = arith.constant 43 : index
    %c0_89 = arith.constant 0 : index
    %c0_90 = arith.constant 0 : index
    %218 = vector.load %arg2[%c43, %c0_89, %c0_90] : memref<49x16x128xf32, #tpu.memory_space<vmem>>, vector<1x16x128xf32>
    %219 = vector.shape_cast %218 : vector<1x16x128xf32> to vector<16x128xf32>
    %220 = arith.mulf %219, %217 : vector<16x128xf32>
    %221 = arith.addf %216, %220 : vector<16x128xf32>
    %c81_i32 = arith.constant 81 : i32
    %222 = tpu.dynamic_rotate %1 by %c81_i32 dim 1 : vector<16x128xf32>, i32 -> vector<16x128xf32>
    %c44 = arith.constant 44 : index
    %c0_91 = arith.constant 0 : index
    %c0_92 = arith.constant 0 : index
    %223 = vector.load %arg2[%c44, %c0_91, %c0_92] : memref<49x16x128xf32, #tpu.memory_space<vmem>>, vector<1x16x128xf32>
    %224 = vector.shape_cast %223 : vector<1x16x128xf32> to vector<16x128xf32>
    %225 = arith.mulf %224, %222 : vector<16x128xf32>
    %226 = arith.addf %221, %225 : vector<16x128xf32>
    %c80_i32 = arith.constant 80 : i32
    %227 = tpu.dynamic_rotate %1 by %c80_i32 dim 1 : vector<16x128xf32>, i32 -> vector<16x128xf32>
    %c45 = arith.constant 45 : index
    %c0_93 = arith.constant 0 : index
    %c0_94 = arith.constant 0 : index
    %228 = vector.load %arg2[%c45, %c0_93, %c0_94] : memref<49x16x128xf32, #tpu.memory_space<vmem>>, vector<1x16x128xf32>
    %229 = vector.shape_cast %228 : vector<1x16x128xf32> to vector<16x128xf32>
    %230 = arith.mulf %229, %227 : vector<16x128xf32>
    %231 = arith.addf %226, %230 : vector<16x128xf32>
    %c79_i32 = arith.constant 79 : i32
    %232 = tpu.dynamic_rotate %1 by %c79_i32 dim 1 : vector<16x128xf32>, i32 -> vector<16x128xf32>
    %c46 = arith.constant 46 : index
    %c0_95 = arith.constant 0 : index
    %c0_96 = arith.constant 0 : index
    %233 = vector.load %arg2[%c46, %c0_95, %c0_96] : memref<49x16x128xf32, #tpu.memory_space<vmem>>, vector<1x16x128xf32>
    %234 = vector.shape_cast %233 : vector<1x16x128xf32> to vector<16x128xf32>
    %235 = arith.mulf %234, %232 : vector<16x128xf32>
    %236 = arith.addf %231, %235 : vector<16x128xf32>
    %c78_i32 = arith.constant 78 : i32
    %237 = tpu.dynamic_rotate %1 by %c78_i32 dim 1 : vector<16x128xf32>, i32 -> vector<16x128xf32>
    %c47 = arith.constant 47 : index
    %c0_97 = arith.constant 0 : index
    %c0_98 = arith.constant 0 : index
    %238 = vector.load %arg2[%c47, %c0_97, %c0_98] : memref<49x16x128xf32, #tpu.memory_space<vmem>>, vector<1x16x128xf32>
    %239 = vector.shape_cast %238 : vector<1x16x128xf32> to vector<16x128xf32>
    %240 = arith.mulf %239, %237 : vector<16x128xf32>
    %241 = arith.addf %236, %240 : vector<16x128xf32>
    %c77_i32 = arith.constant 77 : i32
    %242 = tpu.dynamic_rotate %1 by %c77_i32 dim 1 : vector<16x128xf32>, i32 -> vector<16x128xf32>
    %c48 = arith.constant 48 : index
    %c0_99 = arith.constant 0 : index
    %c0_100 = arith.constant 0 : index
    %243 = vector.load %arg2[%c48, %c0_99, %c0_100] : memref<49x16x128xf32, #tpu.memory_space<vmem>>, vector<1x16x128xf32>
    %244 = vector.shape_cast %243 : vector<1x16x128xf32> to vector<16x128xf32>
    %245 = arith.mulf %244, %242 : vector<16x128xf32>
    %246 = arith.addf %241, %245 : vector<16x128xf32>
    %c0_101 = arith.constant 0 : index
    %c0_102 = arith.constant 0 : index
    %247 = vector.load %arg3[%c0_101, %c0_102] : memref<16x1xf32, #tpu.memory_space<vmem>>, vector<16x1xf32>
    %248 = vector.broadcast %247 : vector<16x1xf32> to vector<16x128xf32>
    %249 = arith.addf %246, %248 : vector<16x128xf32>
    %c0_103 = arith.constant 0 : index
    %c0_104 = arith.constant 0 : index
    %250 = vector.load %arg7[%c0_103, %c0_104] : memref<128x128xf32, #tpu.memory_space<vmem>>, vector<128x128xf32>
    %cst_105 = arith.constant dense<0.000000e+00> : vector<16x128xf32>
    %251 = tpu.matmul %249, %250, %cst_105 {dimension_numbers = #tpu.dot_dimension_numbers<[1], [0], [0], [1], [0, 0, 1, 1], [], []>} : vector<16x128xf32>, vector<128x128xf32>, vector<16x128xf32> -> vector<16x128xf32>
    %252 = arith.subf %249, %251 : vector<16x128xf32>
    %253 = arith.mulf %252, %252 : vector<16x128xf32>
    %c0_106 = arith.constant 0 : index
    %c0_107 = arith.constant 0 : index
    %254 = vector.load %arg7[%c0_106, %c0_107] : memref<128x128xf32, #tpu.memory_space<vmem>>, vector<128x128xf32>
    %cst_108 = arith.constant dense<0.000000e+00> : vector<16x128xf32>
    %255 = tpu.matmul %253, %254, %cst_108 {dimension_numbers = #tpu.dot_dimension_numbers<[1], [0], [0], [1], [0, 0, 1, 1], [], []>} : vector<16x128xf32>, vector<128x128xf32>, vector<16x128xf32> -> vector<16x128xf32>
    %cst_109 = arith.constant 9.99999997E-7 : f32
    %256 = vector.broadcast %cst_109 : f32 to vector<16x128xf32>
    %257 = arith.addf %255, %256 : vector<16x128xf32>
    %258 = math.sqrt %257 : vector<16x128xf32>
    %259 = arith.divf %252, %258 : vector<16x128xf32>
    %c0_110 = arith.constant 0 : index
    %c0_111 = arith.constant 0 : index
    %260 = vector.load %arg5[%c0_110, %c0_111] : memref<1x128xf32, #tpu.memory_space<vmem>>, vector<1x128xf32>
    %261 = vector.broadcast %260 : vector<1x128xf32> to vector<16x128xf32>
    %262 = arith.mulf %259, %261 : vector<16x128xf32>
    %c0_112 = arith.constant 0 : index
    %c0_113 = arith.constant 0 : index
    %263 = vector.load %arg6[%c0_112, %c0_113] : memref<1x128xf32, #tpu.memory_space<vmem>>, vector<1x128xf32>
    %264 = vector.broadcast %263 : vector<1x128xf32> to vector<16x128xf32>
    %265 = arith.addf %262, %264 : vector<16x128xf32>
    %c0_114 = arith.constant 0 : index
    %c0_115 = arith.constant 0 : index
    %266 = vector.load %arg8[%c0_114, %c0_115] : memref<128x512xf32, #tpu.memory_space<vmem>>, vector<128x512xf32>
    %cst_116 = arith.constant dense<0.000000e+00> : vector<16x512xf32>
    %267 = tpu.matmul %265, %266, %cst_116 {dimension_numbers = #tpu.dot_dimension_numbers<[1], [0], [0], [1], [0, 0, 1, 1], [], []>} : vector<16x128xf32>, vector<128x512xf32>, vector<16x512xf32> -> vector<16x512xf32>
    %c0_117 = arith.constant 0 : index
    %c0_118 = arith.constant 0 : index
    %268 = vector.load %arg9[%c0_117, %c0_118] : memref<1x512xf32, #tpu.memory_space<vmem>>, vector<1x512xf32>
    %269 = vector.broadcast %268 : vector<1x512xf32> to vector<16x512xf32>
    %270 = arith.addf %267, %269 : vector<16x512xf32>
    %cst_119 = arith.constant 5.000000e-01 : f32
    %271 = vector.broadcast %cst_119 : f32 to vector<16x512xf32>
    %272 = arith.mulf %271, %270 : vector<16x512xf32>
    %cst_120 = arith.constant 0.707106769 : f32
    %273 = vector.broadcast %cst_120 : f32 to vector<16x512xf32>
    %274 = arith.mulf %270, %273 : vector<16x512xf32>
    %275 = math.erf %274 : vector<16x512xf32>
    %cst_121 = arith.constant 1.000000e+00 : f32
    %276 = vector.broadcast %cst_121 : f32 to vector<16x512xf32>
    %277 = arith.addf %276, %275 : vector<16x512xf32>
    %278 = arith.mulf %272, %277 : vector<16x512xf32>
    %cst_122 = arith.constant dense<0.000000e+00> : vector<16xf32>
    %279 = vector.multi_reduction <add>, %278, %cst_122 [1] : vector<16x512xf32> to vector<16xf32>
    %280 = vector.shape_cast %279 : vector<16xf32> to vector<16x1xf32>
    %cst_123 = arith.constant 5.120000e+02 : f32
    %281 = vector.broadcast %cst_123 : f32 to vector<16x1xf32>
    %282 = arith.divf %280, %281 : vector<16x1xf32>
    %283 = vector.broadcast %282 : vector<16x1xf32> to vector<16x512xf32>
    %284 = arith.subf %278, %283 : vector<16x512xf32>
    %285 = arith.mulf %284, %284 : vector<16x512xf32>
    %cst_124 = arith.constant dense<0.000000e+00> : vector<16xf32>
    %286 = vector.multi_reduction <add>, %285, %cst_124 [1] : vector<16x512xf32> to vector<16xf32>
    %287 = vector.shape_cast %286 : vector<16xf32> to vector<16x1xf32>
    %cst_125 = arith.constant 5.110000e+02 : f32
    %288 = vector.broadcast %cst_125 : f32 to vector<16x1xf32>
    %289 = arith.divf %287, %288 : vector<16x1xf32>
    %cst_126 = arith.constant 9.99999974E-5 : f32
    %290 = vector.broadcast %cst_126 : f32 to vector<16x1xf32>
    %291 = arith.addf %289, %290 : vector<16x1xf32>
    %cst_127 = arith.constant 4.000000e+00 : f32
    %292 = vector.broadcast %cst_127 : f32 to vector<16x1xf32>
    %293 = arith.mulf %292, %291 : vector<16x1xf32>
    %294 = vector.broadcast %293 : vector<16x1xf32> to vector<16x512xf32>
    %295 = arith.divf %285, %294 : vector<16x512xf32>
    %cst_128 = arith.constant 5.000000e-01 : f32
    %296 = vector.broadcast %cst_128 : f32 to vector<16x512xf32>
    %297 = arith.addf %295, %296 : vector<16x512xf32>
    %298 = arith.negf %297 : vector<16x512xf32>
    %299 = math.exp %298 : vector<16x512xf32>
    %cst_129 = arith.constant 1.000000e+00 : f32
    %300 = vector.broadcast %cst_129 : f32 to vector<16x512xf32>
    %301 = arith.addf %300, %299 : vector<16x512xf32>
    %302 = arith.divf %300, %301 : vector<16x512xf32>
    %303 = arith.mulf %278, %302 : vector<16x512xf32>
    %c0_130 = arith.constant 0 : index
    %c0_131 = arith.constant 0 : index
    %304 = vector.load %arg10[%c0_130, %c0_131] : memref<512x128xf32, #tpu.memory_space<vmem>>, vector<512x128xf32>
    %cst_132 = arith.constant dense<0.000000e+00> : vector<16x128xf32>
    %305 = tpu.matmul %303, %304, %cst_132 {dimension_numbers = #tpu.dot_dimension_numbers<[1], [0], [0], [1], [0, 0, 1, 1], [], []>} : vector<16x512xf32>, vector<512x128xf32>, vector<16x128xf32> -> vector<16x128xf32>
    %c0_133 = arith.constant 0 : index
    %c0_134 = arith.constant 0 : index
    %306 = vector.load %arg11[%c0_133, %c0_134] : memref<1x128xf32, #tpu.memory_space<vmem>>, vector<1x128xf32>
    %307 = vector.broadcast %306 : vector<1x128xf32> to vector<16x128xf32>
    %308 = arith.addf %305, %307 : vector<16x128xf32>
    %c0_135 = arith.constant 0 : index
    %c0_136 = arith.constant 0 : index
    %309 = vector.load %arg4[%c0_135, %c0_136] : memref<16x1xf32, #tpu.memory_space<vmem>>, vector<16x1xf32>
    %310 = vector.broadcast %309 : vector<16x1xf32> to vector<16x128xf32>
    %311 = arith.mulf %310, %308 : vector<16x128xf32>
    %312 = arith.addf %1, %311 : vector<16x128xf32>
    %c0_137 = arith.constant 0 : index
    %c0_138 = arith.constant 0 : index
    %c0_139 = arith.constant 0 : index
    %313 = vector.load %arg12[%c0_137, %c0_138, %c0_139] : memref<1x16x128xf32, #tpu.memory_space<vmem>>, vector<1x16x128xf32>
    %314 = vector.shape_cast %313 : vector<1x16x128xf32> to vector<16x128xf32>
    %315 = vector.shape_cast %312 : vector<16x128xf32> to vector<1x16x128xf32>
    tpu.vector_store %arg12[%c0_137, %c0_138, %c0_139], %315 {strides = array<i32>} : memref<1x16x128xf32, #tpu.memory_space<vmem>>, vector<1x16x128xf32>,
    return
  }
  func.func @transform_0(%arg0: i32) -> (i32, i32, i32) {
    %c0_i32 = arith.constant 0 : i32
    %c0_i32_0 = arith.constant 0 : i32
    %c0_i32_1 = arith.constant 0 : i32
    return %arg0, %c0_i32, %c0_i32_0 : i32, i32, i32
  }
  func.func @transform_1(%arg0: i32) -> (i32, i32, i32) {
    %c0_i32 = arith.constant 0 : i32
    %c0_i32_0 = arith.constant 0 : i32
    %c0_i32_1 = arith.constant 0 : i32
    %c0_i32_2 = arith.constant 0 : i32
    return %c0_i32, %c0_i32_0, %c0_i32_1 : i32, i32, i32
  }
  func.func @transform_2(%arg0: i32) -> (i32, i32) {
    %c0_i32 = arith.constant 0 : i32
    %c0_i32_0 = arith.constant 0 : i32
    %c0_i32_1 = arith.constant 0 : i32
    return %c0_i32, %c0_i32_0 : i32, i32
  }
  func.func @transform_3(%arg0: i32) -> (i32, i32) {
    %c0_i32 = arith.constant 0 : i32
    %c0_i32_0 = arith.constant 0 : i32
    %c0_i32_1 = arith.constant 0 : i32
    return %c0_i32, %c0_i32_0 : i32, i32
  }
  func.func @transform_4(%arg0: i32) -> (i32, i32) {
    %c0_i32 = arith.constant 0 : i32
    %c0_i32_0 = arith.constant 0 : i32
    %c0_i32_1 = arith.constant 0 : i32
    return %c0_i32, %c0_i32_0 : i32, i32
  }
  func.func @transform_5(%arg0: i32) -> (i32, i32) {
    %c0_i32 = arith.constant 0 : i32
    %c0_i32_0 = arith.constant 0 : i32
    %c0_i32_1 = arith.constant 0 : i32
    return %c0_i32, %c0_i32_0 : i32, i32
  }
  func.func @transform_6(%arg0: i32) -> (i32, i32) {
    %c0_i32 = arith.constant 0 : i32
    %c0_i32_0 = arith.constant 0 : i32
    %c0_i32_1 = arith.constant 0 : i32
    return %c0_i32, %c0_i32_0 : i32, i32
  }
  func.func @transform_7(%arg0: i32) -> (i32, i32) {
    %c0_i32 = arith.constant 0 : i32
    %c0_i32_0 = arith.constant 0 : i32
    %c0_i32_1 = arith.constant 0 : i32
    return %c0_i32, %c0_i32_0 : i32, i32
  }
  func.func @transform_8(%arg0: i32) -> (i32, i32) {
    %c0_i32 = arith.constant 0 : i32
    %c0_i32_0 = arith.constant 0 : i32
    %c0_i32_1 = arith.constant 0 : i32
    return %c0_i32, %c0_i32_0 : i32, i32
  }
  func.func @transform_9(%arg0: i32) -> (i32, i32) {
    %c0_i32 = arith.constant 0 : i32
    %c0_i32_0 = arith.constant 0 : i32
    %c0_i32_1 = arith.constant 0 : i32
    return %c0_i32, %c0_i32_0 : i32, i32
  }
  func.func @transform_10(%arg0: i32) -> (i32, i32) {
    %c0_i32 = arith.constant 0 : i32
    %c0_i32_0 = arith.constant 0 : i32
    %c0_i32_1 = arith.constant 0 : i32
    return %c0_i32, %c0_i32_0 : i32, i32
  }
  func.func @transform_11(%arg0: i32) -> (i32, i32, i32) {
    %c0_i32 = arith.constant 0 : i32
    %c0_i32_0 = arith.constant 0 : i32
    %c0_i32_1 = arith.constant 0 : i32
    return %arg0, %c0_i32, %c0_i32_0 : i32, i32, i32
  }
}

</mosaic_0001>

<bundles_post_ra>
// kernel: tpu_custom_call.1
= control target key start
LH: loop header
LB: loop body
LE: loop exit
PB: predicated region body
PF: predicated region fallthrough
CT: control target
= control target key end

     0   :  { %s3957_s0 = inlined_call_operand.vmem [shape: f32[2,16,128], index: 0, kind: input, shape index: {}]   ;;  %s3958_s1 = inlined_call_operand.hbm [shape: f32[49,16,128], index: 1, kind: input, shape index: {}]   ;;  %s3959_s2 = inlined_call_operand.vmem [shape: f32[16,1], index: 2, kind: input, shape index: {}]   ;;  %s3960_s3 = inlined_call_operand.vmem [shape: f32[16,1], index: 3, kind: input, shape index: {}]   ;;  %s3961_s4 = inlined_call_operand.vmem [shape: f32[1,128], index: 4, kind: input, shape index: {}]   ;;  %s3962_s5 = inlined_call_operand.hbm [shape: f32[1,128], index: 5, kind: input, shape index: {}]   ;;  %s3963_s6 = inlined_call_operand.hbm [shape: f32[128,128], index: 6, kind: input, shape index: {}]   ;;  %s3964_s7 = inlined_call_operand.hbm [shape: f32[128,512], index: 7, kind: input, shape index: {}]   ;;  %s3965_s8 = inlined_call_operand.vmem [shape: f32[1,512], index: 8, kind: input, shape index: {}]   ;;  %s3966_s9 = inlined_call_operand.hbm [shape: f32[512,128], index: 9, kind: input, shape index: {}]   ;;  %s3967_s10 = inlined_call_operand.vmem [shape: f32[1,128], index: 10, kind: input, shape index: {}]   ;;  %s3968_s11 = inlined_call_operand.hbm [shape: f32[2,16,128], index: 11, kind: output, shape index: {}]  }
   0x1   :  { %3974 = sst [smem:[#allocation21_spill]] %s3962_s5 }
   0x2   :  { %3975 = sst [smem:[#allocation22_spill]] %s3964_s7 }
   0x3   :  { %16 = vsyncpa [#allocation3], 0 }
   0x4   :  { %17 = vsyncpa [#allocation6], 0 }
   0x5   :  { %18 = vsyncpa [#allocation9], 0 }
   0x6   :  { %19 = vsyncpa [#allocation4], 0 }
   0x7   :  { %21 = vsyncpa [#allocation4 + $0x1], 0  ;;  %s2873_s17 = smov 0   ;;  %s2875_s18 = smov 0  }
   0x8   :  { %s2877_s19 = smov 0   ;;  %s2879_s20 = smov 0  }
   0x9 LB: > { %3976 = sst [smem:[#allocation16_spill]] %s2737_s17  ;;  %s2894_s21 = sadd.s32 4294967295, %s2749_s20   ;;  %s2749_s20 = sphi %s2879_s20, %s4015_s20   ;;  %s2745_s19 = sphi %s2877_s19, %s4017_s19   ;;  %s2741_s18 = sphi %s2875_s18, %s4019_s18   ;;  %s2737_s17 = sphi %s2873_s17, %s4018_s17  }
   0xa   : > { %3977 = sst [smem:[#allocation17_spill]] %s2745_s19  ;;  %s2234_s22 = sadd.s32 4294967294, %s2749_s20  }
   0xb   : > { %s2898_s23 = sadd.s32 1, %s2749_s20   ;;  %s270_s24 = sadd.s32 1, %s2745_s19 }
   0xc   : > { %3978 = sst [smem:[#allocation18_spill]] %s2898_s23  ;;  %s267_s25 = ssub.s32 %s2749_s20, %s2898_s23 }
   0xd   : > { %p280_p0 = scmp.ne.s32.totalorder %s2745_s19, %s2741_s18  ;;  %p268_p1 = scmp.eq.s32.totalorder %s267_s25, 0 }
   0xe   : > { %p281_p2 = scmp.eq.s32.totalorder %s2894_s21, 1  ;;  %p286_p3 = scmp.ne.s32.totalorder %s2741_s18, %s2737_s17 }
   0xf   : > { %p287_p4 = scmp.eq.s32.totalorder %s2234_s22, 1  ;;  %p2235_p7 = scmp.ge.s32.totalorder %s2749_s20, 1 }
  0x10   : > { %s2909_s26 = scalar_select %p268_p1, %s2745_s19, %s270_s24  }
  0x11   : > { %p2911_p5 = por %p281_p2, %p280_p0  ;;  %p2915_p6 = por %p287_p4, %p286_p3 }
  0x12   : > { %3979 = sst [smem:[#allocation19_spill]] %s2909_s26  ;;  %p294_p8 = scmp.lt.s32.totalorder %s2749_s20, 3 }
  0x13   : > { %s3981_s28 = scalar_select %p2915_p6, 1, 0 }
  0x14   : > { %p2348_p9 = scmp.eq.s32.totalorder %s2894_s21, 0  ;;  %p2922_p10 = pnand %p2235_p7, %p294_p8 }
  0x15   : > { %3982 = sst [smem:[#allocation20_spill]] %s3981_s28  ;;  %s2751_s14 = smov [#allocation5]  }
  0x16   : > { %s3984_s5 = sld [smem:[#allocation21_spill]]  ;;  %p2328_p11 = pneg %p2922_p10 }
  0x17   : > { %s331_s15 = sshll.u32 %s2751_s14, 4  ;;  %s3985_s7 = sld [smem:[#allocation22_spill]]  ;;  %s332_s15 = int_to_ptr.vmem [resolvable:$true] %s331_s15 }
  0x18   : > { %p2936_p12 = pnand %p2348_p9, %p2328_p11  ;;  %s2752_s30 = smov [#allocation8]  }
  0x19   : > { %s356_s12 = sshll.u32 %s2752_s30, 4  ;;  %s2753_s14 = smov 512   ;;  %s357_s12 = int_to_ptr.vmem [resolvable:$true] %s356_s12 }
  0x1a   : > { %s2755_s26 = smov [#allocation2]   ;;  %s340_s30 = sshll.u32 %s3963_s6, 4  ;;  %s341_s30 = int_to_ptr.hbm [resolvable:$true] %s340_s30 }
  0x1b   : > { %s307_s19 = sshll.u32 %s2755_s26, 4  ;;  %s2758_s17 = smov [#allocation7]   ;;  %s308_s19 = int_to_ptr.vmem [resolvable:$true] %s307_s19 }
  0x1c   : > { %s329_s13 = sshll.u32 %s3984_s5, 4  ;;  %s2754_s5 = smov 32   ;;  %s330_s13 = int_to_ptr.hbm [resolvable:$true] %s329_s13 }
  0x1d   : > { %s354_s24 = sshll.u32 %s3985_s7, 4  ;;  %s305_s7 = sshll.u32 %s3958_s1, 4  ;;  %s355_s24 = int_to_ptr.hbm [resolvable:$true] %s354_s24  ;;  %s306_s7 = int_to_ptr.hbm [resolvable:$true] %s305_s7 }
  0x1e   : > { %2334 = dma.hbm_to_vmem [thread:$0]  (!%p2936_p12), %s330_s13, 16, %s332_s15, [#allocation6]  }
  0x1f   : > { %2340 = dma.hbm_to_vmem [thread:$0]  (!%p2936_p12), %s355_s24, 8192, %s357_s12, [#allocation9], %s2753_s14, %s2753_s14, %s2754_s5  }
  0x20   : > { %s2756_s13 = smov 128   ;;  %s2757_s15 = smov 8  }
  0x21   : > { %2331 = dma.hbm_to_vmem [thread:$0]  (!%p2936_p12), %s306_s7, 12544, %s308_s19, [#allocation3], %s2756_s13, %s2756_s13, %s2757_s15  }
  0x22   : > { %s342_s5 = sshll.u32 %s2758_s17, 4  ;;  %s371_s14 = sshll.u32 %s3966_s9, 4  ;;  %s343_s5 = int_to_ptr.vmem [resolvable:$true] %s342_s5  ;;  %s372_s14 = int_to_ptr.hbm [resolvable:$true] %s371_s14 }
  0x23   : > { %2337 = dma.hbm_to_vmem [thread:$0]  (!%p2936_p12), %s341_s30, 2048, %s343_s5, [#allocation6], %s2756_s13, %s2756_s13, %s2757_s15  }
  0x24   : > { %s2759_s26 = smov [#allocation10]   ;;  %400 = sbr.rel (%p2922_p10) target bundleno = 1414 (0x586), region = 64 }
  0x25   : > { %s373_s16 = sshll.u32 %s2759_s26, 4  ;;  %s374_s16 = int_to_ptr.vmem [resolvable:$true] %s373_s16 }
  0x26   : > { %2343 = dma.hbm_to_vmem [thread:$0]  (!%p2936_p12), %s372_s14, 8192, %s374_s16, [#allocation9], %s2756_s13, %s2756_s13, %s2757_s15  }
  0x29   : > { %2720 = dma.done.wait (%p2348_p9), [#allocation3], 12544  }
  0x2a   : > { %2722 = vsyncadd (%p2348_p9), [#allocation3], 4294954752 }
  0x2b   : > { %2724 = dma.done.wait (%p2348_p9), [#allocation6], 2064  }
  0x2c   : > { %2726 = vsyncadd (%p2348_p9), [#allocation6], 4294965232 }
  0x2d   : > { %2728 = dma.done.wait (%p2348_p9), [#allocation9], 16384  }
  0x2e   : > { %2730 = vsyncadd (%p2348_p9), [#allocation9], 4294950912  ;;  %p461_p13 = scmp.lt.s32.totalorder %s2894_s21, 1  ;;  %s2760_s29 = smov 49   ;;  %v472_v8 = vld [vmem:[#allocation2] sm:$0xff]  ;;  %v483_v9 = vld [vmem:[#allocation2 + $0x10] sm:$0xff] }
  0x2f   : > { %s2761_s25 = smov 51   ;;  %s2762_s22 = smov 47   ;;  %v494_v10 = vld [vmem:[#allocation2 + $0x20] sm:$0xff]  ;;  %v505_v11 = vld [vmem:[#allocation2 + $0x30] sm:$0xff]  ;;  %v473_v22 = vld [vmem:[#allocation2 + $0x8] sm:$0xff] }
  0x30   : > { %s462_s7 = scalar_select %p461_p13, %s2894_s21, 1  ;;  %v516_v20 = vld [vmem:[#allocation2 + $0x40] sm:$0xff]  ;;  %v527_v23 = vld [vmem:[#allocation2 + $0x50] sm:$0xff]  ;;  %v484_v24 = vld [vmem:[#allocation2 + $0x18] sm:$0xff] }
  0x31   : > { %s2763_s30 = smov 48   ;;  %s2764_s13 = smov 50   ;;  %v495_v25 = vld [vmem:[#allocation2 + $0x28] sm:$0xff]  ;;  %v506_v39 = vld [vmem:[#allocation2 + $0x38] sm:$0xff]  ;;  %v538_v40 = vld [vmem:[#allocation2 + $0x60] sm:$0xff] }
  0x32   : > { %s2272_s17 = sshll.u32 %s462_s7, 4  ;;  %s2765_s15 = smov 46   ;;  %v549_v41 = vld [vmem:[#allocation2 + $0x70] sm:$0xff]  ;;  %v560_v51 = vld [vmem:[#allocation2 + $0x80] sm:$0xff]  ;;  %v517_v52 = vld [vmem:[#allocation2 + $0x48] sm:$0xff] }
  0x33   : > { %s2978_s28 = scalar_lea.vmem %s3957_s0, %s2272_s17  ;;  %s2766_s5 = smov 45   ;;  %v528_v53 = vld [vmem:[#allocation2 + $0x58] sm:$0xff]  ;;  %v539_v63 = vld [vmem:[#allocation2 + $0x68] sm:$0xff] }
  0x34   : > { %v2981_v0 = vld [vmem:[%s2978_s28] sm:$0xff]  ;;  %v2989_v1 = vld [vmem:[%s2978_s28 + $0x8] sm:$0xff]  ;;  %s2767_s24 = smov 35   ;;  %s2768_s12 = smov 34  }
  0x35   : > { %489 = vrot.lane.b32.xlu1 %v2981_v0, %s2760_s29  ;;  %468 = vrot.lane.b32.xlu0 %v2981_v0, %s2761_s25  ;;  %s2769_s14 = smov 33   ;;  %s2770_s26 = smov 32  }
  0x36   : > { %511 = vrot.lane.b32.xlu2 %v2981_v0, %s2762_s22  ;;  %s2771_s16 = smov 31   ;;  %s2772_s7 = smov 30  }
  0x37   : > { %s2773_s17 = smov 29   ;;  %s2774_s19 = smov 19  }
  0x38   : > { %s2775_s23 = smov 18  }
  0x3d   : > { %500 = vrot.lane.b32.xlu1 %v2981_v0, %s2763_s30  ;;  %478 = vrot.lane.b32.xlu0 %v2981_v0, %s2764_s13 }
  0x3e   : > { %470 = vrot.lane.b32.xlu2 %v2989_v1, %s2761_s25  ;;  %s2777_s25 = smov 16  }
  0x45   : > { %522 = vrot.lane.b32.xlu1 %v2981_v0, %s2765_s15  ;;  %480 = vrot.lane.b32.xlu0 %v2989_v1, %s2764_s13  ;;  %s2780_s13 = smov 13  }
  0x46   : > { %491 = vrot.lane.b32.xlu2 %v2989_v1, %s2760_s29  ;;  %s2776_s29 = smov 17  }
  0x4d   : > { %502 = vrot.lane.b32.xlu1 %v2989_v1, %s2763_s30  ;;  %533 = vrot.lane.b32.xlu0 %v2981_v0, %s2766_s5  ;;  %s2779_s30 = smov 14  }
  0x4e   : > { %544 = vrot.lane.b32.xlu2 %v2981_v0, %s2767_s24 }
  0x55   : > { %555 = vrot.lane.b32.xlu1 %v2981_v0, %s2768_s12  ;;  %513 = vrot.lane.b32.xlu0 %v2989_v1, %s2762_s22  ;;  %s2778_s22 = smov 15  }
  0x56   : > { %524 = vrot.lane.b32.xlu2 %v2989_v1, %s2765_s15  ;;  %s2781_s15 = smov 3  }
  0x5d   : > { %535 = vrot.lane.b32.xlu1 %v2989_v1, %s2766_s5  ;;  %566 = vrot.lane.b32.xlu0 %v2981_v0, %s2769_s14  ;;  %s2782_s5 = smov 2  }
  0x5e   : > { %577 = vrot.lane.b32.xlu2 %v2981_v0, %s2770_s26 }
  0x65   : > { %588 = vrot.lane.b32.xlu1 %v2981_v0, %s2771_s16  ;;  %546 = vrot.lane.b32.xlu0 %v2989_v1, %s2767_s24  ;;  %s2783_s24 = smov 1  }
  0x66   : > { %557 = vrot.lane.b32.xlu2 %v2989_v1, %s2768_s12  ;;  %s2784_s12 = smov 127  }
  0x6d   : > { %568 = vrot.lane.b32.xlu1 %v2989_v1, %s2769_s14  ;;  %599 = vrot.lane.b32.xlu0 %v2981_v0, %s2772_s7  ;;  %s2785_s14 = smov 126  }
  0x6e   : > { %610 = vrot.lane.b32.xlu2 %v2981_v0, %s2773_s17 }
  0x75   : > { %621 = vrot.lane.b32.xlu1 %v2981_v0, %s2774_s19  ;;  %579 = vrot.lane.b32.xlu0 %v2989_v1, %s2770_s26  ;;  %s2786_s26 = smov 125  }
  0x76   : > { %590 = vrot.lane.b32.xlu2 %v2989_v1, %s2771_s16  ;;  %s2787_s16 = smov 115  }
  0x7d   : > { %601 = vrot.lane.b32.xlu1 %v2989_v1, %s2772_s7  ;;  %632 = vrot.lane.b32.xlu0 %v2981_v0, %s2775_s23  ;;  %s2788_s7 = smov 114  }
  0x7e   : > { %643 = vrot.lane.b32.xlu2 %v2981_v0, %s2776_s29 }
  0x85   : > { %654 = vrot.lane.b32.xlu1 %v2981_v0, %s2777_s25  ;;  %612 = vrot.lane.b32.xlu0 %v2989_v1, %s2773_s17  ;;  %s2789_s17 = smov 113  }
  0x86   : > { %623 = vrot.lane.b32.xlu2 %v2989_v1, %s2774_s19  ;;  %s2790_s19 = smov 112  }
  0x8d   : > { %634 = vrot.lane.b32.xlu1 %v2989_v1, %s2775_s23  ;;  %665 = vrot.lane.b32.xlu0 %v2981_v0, %s2778_s22  ;;  %s2791_s23 = smov 111  }
  0x8e   : > { %676 = vrot.lane.b32.xlu2 %v2981_v0, %s2779_s30 }
  0x90   : > { %v512_v2 = vpop.permute.xlu2 %511 }
  0x91   : > { %v518_v26 = vmul.f32 %v516_v20, %v512_v2  ;;  %v571_v2 = vld [vmem:[#allocation2 + $0x90] sm:$0xff] }
  0x95   : > { %687 = vrot.lane.b32.xlu1 %v2981_v0, %s2780_s13  ;;  %645 = vrot.lane.b32.xlu0 %v2989_v1, %s2776_s29  ;;  %s2792_s29 = smov 110  }
  0x96   : > { %656 = vrot.lane.b32.xlu2 %v2989_v1, %s2777_s25  ;;  %s2793_s25 = smov 109  }
  0x98   : > { %v471_v3 = vpop.permute.xlu2 %470 }
  0x99   : > { %v475_v28 = vmul.f32 %v473_v22, %v471_v3  ;;  %v582_v3 = vld [vmem:[#allocation2 + $0xa0] sm:$0xff] }
  0x9d   : > { %667 = vrot.lane.b32.xlu1 %v2989_v1, %s2778_s22  ;;  %698 = vrot.lane.b32.xlu0 %v2981_v0, %s2781_s15  ;;  %s2794_s22 = smov 99  }
  0x9e   : > { %709 = vrot.lane.b32.xlu2 %v2981_v0, %s2782_s5 }
  0xa0   : > { %v492_v4 = vpop.permute.xlu2 %491 }
  0xa1   : > { %v497_v34 = vmul.f32 %v495_v25, %v492_v4  ;;  %v572_v25 = vld [vmem:[#allocation2 + $0x98] sm:$0xff] }
  0xa5   : > { %720 = vrot.lane.b32.xlu1 %v2981_v0, %s2783_s24  ;;  %678 = vrot.lane.b32.xlu0 %v2989_v1, %s2779_s30  ;;  %s2795_s30 = smov 98  }
  0xa6   : > { %689 = vrot.lane.b32.xlu2 %v2989_v1, %s2780_s13  ;;  %s2796_s13 = smov 97  }
  0xa7   : > { %v490_v5 = vpop.permute.xlu1 %489  ;;  %v469_v6 = vpop.permute.xlu0 %468 }
  0xa8   : > { %v545_v7 = vpop.permute.xlu2 %544  ;;  %v474_v14 = vmul.f32 %v472_v8, %v469_v6  ;;  %v496_v17 = vmul.f32 %v494_v10, %v490_v5 }
  0xa9   : > { %v551_v46 = vmul.f32 %v549_v41, %v545_v7 }
  0xad   : > { %738 = vrot.lane.b32.xlu1 %v2981_v0, %s2784_s12  ;;  %700 = vrot.lane.b32.xlu0 %v2989_v1, %s2781_s15  ;;  %s2797_s15 = smov 96  }
  0xae   : > { %711 = vrot.lane.b32.xlu2 %v2989_v1, %s2782_s5  ;;  %s2798_s5 = smov 95  }
  0xaf   : > { %v501_v12 = vpop.permute.xlu1 %500  ;;  %v479_v13 = vpop.permute.xlu0 %478 }
  0xb0   : > { %v485_v15 = vmul.f32 %v483_v9, %v479_v13  ;;  %v525_v16 = vpop.permute.xlu2 %524  ;;  %v507_v18 = vmul.f32 %v505_v11, %v501_v12  ;;  %v593_v13 = vld [vmem:[#allocation2 + $0xb0] sm:$0xff] }
  0xb1   : > { %v530_v58 = vmul.f32 %v528_v53, %v525_v16 }
  0xb2   : > { %v487_v19 = vadd.f32 %v485_v15, %v474_v14  ;;  %v550_v14 = vld [vmem:[#allocation2 + $0x78] sm:$0xff]  ;;  %v561_v15 = vld [vmem:[#allocation2 + $0x88] sm:$0xff] }
  0xb4   : > { %v498_v21 = vadd.f32 %v496_v17, %v487_v19 }
  0xb5   : > { %722 = vrot.lane.b32.xlu1 %v2989_v1, %s2783_s24  ;;  %749 = vrot.lane.b32.xlu0 %v2981_v0, %s2785_s14  ;;  %s2799_s24 = smov 94  }
  0xb6   : > { %v509_v27 = vadd.f32 %v507_v18, %v498_v21  ;;  %760 = vrot.lane.b32.xlu2 %v2981_v0, %s2786_s26 }
  0xb7   : > { %v523_v29 = vpop.permute.xlu1 %522  ;;  %v481_v30 = vpop.permute.xlu0 %480 }
  0xb8   : > { %v520_v31 = vadd.f32 %v518_v26, %v509_v27  ;;  %v529_v32 = vmul.f32 %v527_v23, %v523_v29  ;;  %v486_v33 = vmul.f32 %v484_v24, %v481_v30  ;;  %v578_v35 = vpop.permute.xlu2 %577  ;;  %v604_v26 = vld [vmem:[#allocation2 + $0xc0] sm:$0xff]  ;;  %v615_v27 = vld [vmem:[#allocation2 + $0xd0] sm:$0xff] }
  0xb9   : > { %v584_v8 = vmul.f32 %v582_v3, %v578_v35 }
  0xba   : > { %v531_v36 = vadd.f32 %v529_v32, %v520_v31  ;;  %v488_v37 = vadd.f32 %v486_v33, %v475_v28 }
  0xbc   : > { %v499_v38 = vadd.f32 %v497_v34, %v488_v37  ;;  %v626_v37 = vld [vmem:[#allocation2 + $0xe0] sm:$0xff] }
  0xbd   : > { %740 = vrot.lane.b32.xlu1 %v2989_v1, %s2784_s12  ;;  %771 = vrot.lane.b32.xlu0 %v2981_v0, %s2787_s16  ;;  %s2800_s12 = smov 93  }
  0xbe   : > { %782 = vrot.lane.b32.xlu2 %v2981_v0, %s2788_s7 }
  0xbf   : > { %v503_v42 = vpop.permute.xlu1 %502  ;;  %v534_v43 = vpop.permute.xlu0 %533 }
  0xc0   : > { %v508_v44 = vmul.f32 %v506_v39, %v503_v42  ;;  %v540_v45 = vmul.f32 %v538_v40, %v534_v43  ;;  %v558_v47 = vpop.permute.xlu2 %557  ;;  %v594_v39 = vld [vmem:[#allocation2 + $0xb8] sm:$0xff] }
  0xc1   : > { %v563_v20 = vmul.f32 %v561_v15, %v558_v47 }
  0xc2   : > { %v510_v48 = vadd.f32 %v508_v44, %v499_v38  ;;  %v542_v49 = vadd.f32 %v540_v45, %v531_v36  ;;  %v583_v38 = vld [vmem:[#allocation2 + $0xa8] sm:$0xff] }
  0xc4   : > { %v553_v50 = vadd.f32 %v551_v46, %v542_v49  ;;  %v605_v49 = vld [vmem:[#allocation2 + $0xc8] sm:$0xff] }
  0xc5   : > { %793 = vrot.lane.b32.xlu1 %v2981_v0, %s2789_s17  ;;  %751 = vrot.lane.b32.xlu0 %v2989_v1, %s2785_s14  ;;  %s2801_s14 = smov 83  }
  0xc6   : > { %762 = vrot.lane.b32.xlu2 %v2989_v1, %s2786_s26  ;;  %s2803_s26 = smov 82  }
  0xc7   : > { %v556_v54 = vpop.permute.xlu1 %555  ;;  %v514_v55 = vpop.permute.xlu0 %513 }
  0xc8   : > { %v562_v56 = vmul.f32 %v560_v51, %v556_v54  ;;  %v519_v57 = vmul.f32 %v517_v52, %v514_v55  ;;  %v611_v59 = vpop.permute.xlu2 %610  ;;  %v648_v51 = vld [vmem:[#allocation2 + $0x100] sm:$0xff] }
  0xc9   : > { %v617_v32 = vmul.f32 %v615_v27, %v611_v59 }
  0xca   : > { %v564_v60 = vadd.f32 %v562_v56, %v553_v50  ;;  %v521_v61 = vadd.f32 %v519_v57, %v510_v48  ;;  %v637_v50 = vld [vmem:[#allocation2 + $0xf0] sm:$0xff] }
  0xcc   : > { %v532_v62 = vadd.f32 %v530_v58, %v521_v61  ;;  %v659_v61 = vld [vmem:[#allocation2 + $0x110] sm:$0xff] }
  0xcd   : > { %773 = vrot.lane.b32.xlu1 %v2989_v1, %s2787_s16  ;;  %804 = vrot.lane.b32.xlu0 %v2981_v0, %s2790_s19  ;;  %s2804_s16 = smov 81  }
  0xce   : > { %815 = vrot.lane.b32.xlu2 %v2981_v0, %s2791_s23 }
  0xcf   : > { %v536_v4 = vpop.permute.xlu1 %535  ;;  %v567_v5 = vpop.permute.xlu0 %566 }
  0xd0   : > { %v541_v6 = vmul.f32 %v539_v63, %v536_v4  ;;  %v573_v7 = vmul.f32 %v571_v2, %v567_v5  ;;  %v591_v9 = vpop.permute.xlu2 %590  ;;  %v627_v63 = vld [vmem:[#allocation2 + $0xe8] sm:$0xff] }
  0xd1   : > { %v596_v44 = vmul.f32 %v594_v39, %v591_v9 }
  0xd2   : > { %v543_v10 = vadd.f32 %v541_v6, %v532_v62  ;;  %v575_v11 = vadd.f32 %v573_v7, %v564_v60  ;;  %v616_v62 = vld [vmem:[#allocation2 + $0xd8] sm:$0xff] }
  0xd4   : > { %v586_v12 = vadd.f32 %v584_v8, %v575_v11  ;;  %v638_v11 = vld [vmem:[#allocation2 + $0xf8] sm:$0xff] }
  0xd5   : > { %826 = vrot.lane.b32.xlu1 %v2981_v0, %s2792_s29  ;;  %784 = vrot.lane.b32.xlu0 %v2989_v1, %s2788_s7  ;;  %s2805_s7 = smov 80  }
  0xd6   : > { %795 = vrot.lane.b32.xlu2 %v2989_v1, %s2789_s17  ;;  %s2806_s17 = smov 79  }
  0xd7   : > { %v589_v16 = vpop.permute.xlu1 %588  ;;  %v547_v17 = vpop.permute.xlu0 %546 }
  0xd8   : > { %v595_v18 = vmul.f32 %v593_v13, %v589_v16  ;;  %v552_v19 = vmul.f32 %v550_v14, %v547_v17  ;;  %v644_v21 = vpop.permute.xlu2 %643  ;;  %v681_v13 = vld [vmem:[#allocation2 + $0x130] sm:$0xff] }
  0xd9   : > { %v650_v56 = vmul.f32 %v648_v51, %v644_v21 }
  0xda   : > { %v597_v22 = vadd.f32 %v595_v18, %v586_v12  ;;  %v554_v23 = vadd.f32 %v552_v19, %v543_v10  ;;  %v670_v12 = vld [vmem:[#allocation2 + $0x120] sm:$0xff] }
  0xdc   : > { %v565_v24 = vadd.f32 %v563_v20, %v554_v23  ;;  %v692_v23 = vld [vmem:[#allocation2 + $0x140] sm:$0xff] }
  0xdd   : > { %806 = vrot.lane.b32.xlu1 %v2989_v1, %s2790_s19  ;;  %837 = vrot.lane.b32.xlu0 %v2981_v0, %s2793_s25  ;;  %s2807_s19 = smov 78  }
  0xde   : > { %848 = vrot.lane.b32.xlu2 %v2981_v0, %s2794_s22 }
  0xdf   : > { %v569_v28 = vpop.permute.xlu1 %568  ;;  %v600_v29 = vpop.permute.xlu0 %599 }
  0xe0   : > { %v574_v30 = vmul.f32 %v572_v25, %v569_v28  ;;  %v606_v31 = vmul.f32 %v604_v26, %v600_v29  ;;  %v624_v33 = vpop.permute.xlu2 %623  ;;  %v660_v25 = vld [vmem:[#allocation2 + $0x118] sm:$0xff] }
  0xe1   : > { %v629_v6 = vmul.f32 %v627_v63, %v624_v33  ;;  %v704_v63 = vld [vmem:[#allocation2 + $0x158] sm:$0xff] }
  0xe2   : > { %v576_v34 = vadd.f32 %v574_v30, %v565_v24  ;;  %v608_v35 = vadd.f32 %v606_v31, %v597_v22  ;;  %v649_v24 = vld [vmem:[#allocation2 + $0x108] sm:$0xff] }
  0xe4   : > { %v619_v36 = vadd.f32 %v617_v32, %v608_v35  ;;  %v2802_v35 = vmov 0  }
  0xe5   : > { %859 = vrot.lane.b32.xlu1 %v2981_v0, %s2795_s30  ;;  %817 = vrot.lane.b32.xlu0 %v2989_v1, %s2791_s23  ;;  %s2808_s23 = smov 77  }
  0xe6   : > { %828 = vrot.lane.b32.xlu2 %v2989_v1, %s2792_s29  ;;  %2453 = vset.pattern.permute.xlu1 %v2802_v35 }
  0xe7   : > { %v622_v40 = vpop.permute.xlu1 %621  ;;  %v580_v41 = vpop.permute.xlu0 %579  ;;  %2455 = vset.pattern.permute.xlu0 %v2802_v35  ;;  %2454 = vset.pattern.permute.xlu2 %v2802_v35 }
  0xe8   : > { %v628_v42 = vmul.f32 %v626_v37, %v622_v40  ;;  %v585_v43 = vmul.f32 %v583_v38, %v580_v41  ;;  %v677_v45 = vpop.permute.xlu2 %676  ;;  %v703_v37 = vld [vmem:[#allocation2 + $0x150] sm:$0xff]  ;;  %v714_v38 = vld [vmem:[#allocation2 + $0x160] sm:$0xff] }
  0xe9   : > { %v683_v18 = vmul.f32 %v681_v13, %v677_v45  ;;  %v726_v13 = vld [vmem:[#allocation2 + $0x178] sm:$0xff] }
  0xea   : > { %v630_v46 = vadd.f32 %v628_v42, %v619_v36  ;;  %v587_v47 = vadd.f32 %v585_v43, %v576_v34  ;;  %v671_v36 = vld [vmem:[#allocation2 + $0x128] sm:$0xff] }
  0xec   : > { %v598_v48 = vadd.f32 %v596_v44, %v587_v47 }
  0xed   : > { %839 = vrot.lane.b32.xlu1 %v2989_v1, %s2793_s25  ;;  %870 = vrot.lane.b32.xlu0 %v2981_v0, %s2796_s13  ;;  %s2273_s25 = sshll.u32 %s2894_s21, 4 }
  0xee   : > { %881 = vrot.lane.b32.xlu2 %v2981_v0, %s2797_s15 }
  0xef   : > { %v602_v52 = vpop.permute.xlu1 %601  ;;  %v633_v53 = vpop.permute.xlu0 %632 }
  0xf0   : > { %v607_v54 = vmul.f32 %v605_v49, %v602_v52  ;;  %v639_v55 = vmul.f32 %v637_v50, %v633_v53  ;;  %v657_v57 = vpop.permute.xlu2 %656  ;;  %v682_v49 = vld [vmem:[#allocation2 + $0x138] sm:$0xff]  ;;  %v693_v50 = vld [vmem:[#allocation2 + $0x148] sm:$0xff] }
  0xf1   : > { %v662_v30 = vmul.f32 %v660_v25, %v657_v57  ;;  %v732_v57 = vld [vmem:[#allocation2 + $0x180] sm:$0xff] }
  0xf2   : > { %v609_v58 = vadd.f32 %v607_v54, %v598_v48  ;;  %v641_v59 = vadd.f32 %v639_v55, %v630_v46  ;;  %v725_v48 = vld [vmem:[#allocation2 + $0x170] sm:$0xff] }
  0xf4   : > { %v652_v60 = vadd.f32 %v650_v56, %v641_v59 }
  0xf5   : > { %892 = vrot.lane.b32.xlu1 %v2981_v0, %s2798_s5  ;;  %850 = vrot.lane.b32.xlu0 %v2989_v1, %s2794_s22 }
  0xf6   : > { %861 = vrot.lane.b32.xlu2 %v2989_v1, %s2795_s30 }
  0xf7   : > { %v655_v2 = vpop.permute.xlu1 %654  ;;  %v613_v3 = vpop.permute.xlu0 %612 }
  0xf8   : > { %v661_v4 = vmul.f32 %v659_v61, %v655_v2  ;;  %v618_v5 = vmul.f32 %v616_v62, %v613_v3  ;;  %v710_v7 = vpop.permute.xlu2 %709  ;;  %v734_v61 = vmul.f32 %v732_v57, %v2981_v0  ;;  %v743_v62 = vld [vmem:[#allocation2 + $0x190] sm:$0xff]  ;;  %v715_v2 = vld [vmem:[#allocation2 + $0x168] sm:$0xff] }
  0xf9   : > { %v716_v43 = vmul.f32 %v714_v38, %v710_v7  ;;  %v1003_v38 = vld [vmem:[%s3959_s2 + $0x8] sm:$0xff] }
  0xfa   : > { %v663_v8 = vadd.f32 %v661_v4, %v652_v60  ;;  %v620_v9 = vadd.f32 %v618_v5, %v609_v58 }
  0xfc   : > { %v631_v10 = vadd.f32 %v629_v6, %v620_v9 }
  0xfd   : > { %872 = vrot.lane.b32.xlu1 %v2989_v1, %s2796_s13  ;;  %903 = vrot.lane.b32.xlu0 %v2981_v0, %s2799_s24  ;;  %s2118_s13 = scalar_lea.hbm %s3968_s11, %s2273_s25 }
  0xfe   : > { %914 = vrot.lane.b32.xlu2 %v2981_v0, %s2800_s12 }
  0xff   : > { %v635_v14 = vpop.permute.xlu1 %634  ;;  %v666_v15 = vpop.permute.xlu0 %665 }
 0x100   : > { %v640_v16 = vmul.f32 %v638_v11, %v635_v14  ;;  %v672_v17 = vmul.f32 %v670_v12, %v666_v15  ;;  %v690_v19 = vpop.permute.xlu2 %689  ;;  %v754_v14 = vld [vmem:[#allocation2 + $0x1a0] sm:$0xff]  ;;  %v765_v15 = vld [vmem:[#allocation2 + $0x1b0] sm:$0xff] }
 0x101   : > { %v695_v55 = vmul.f32 %v693_v50, %v690_v19 }
 0x102   : > { %v642_v20 = vadd.f32 %v640_v16, %v631_v10  ;;  %v674_v21 = vadd.f32 %v672_v17, %v663_v8 }
 0x104   : > { %v685_v22 = vadd.f32 %v683_v18, %v674_v21 }
 0x105   : > { %925 = vrot.lane.b32.xlu1 %v2981_v0, %s2801_s14  ;;  %883 = vrot.lane.b32.xlu0 %v2989_v1, %s2797_s15 }
 0x106   : > { %894 = vrot.lane.b32.xlu2 %v2989_v1, %s2798_s5  ;;  %s2121_s5 = sshll.u32 %s2118_s13, 4  ;;  %s2122_s5 = int_to_ptr.hbm [resolvable:$true] %s2121_s5 }
 0x107   : > { %v688_v26 = vpop.permute.xlu1 %687  ;;  %v646_v27 = vpop.permute.xlu0 %645 }
 0x108   : > { %v694_v28 = vmul.f32 %v692_v23, %v688_v26  ;;  %v651_v29 = vmul.f32 %v649_v24, %v646_v27  ;;  %v712_v31 = vpop.permute.xlu2 %711  ;;  %v744_v27 = vld [vmem:[#allocation2 + $0x198] sm:$0xff] }
 0x109   : > { %v717_v8 = vmul.f32 %v715_v2, %v712_v31 }
 0x10a   : > { %v696_v32 = vadd.f32 %v694_v28, %v685_v22  ;;  %v653_v33 = vadd.f32 %v651_v29, %v642_v20  ;;  %v733_v22 = vld [vmem:[#allocation2 + $0x188] sm:$0xff]  ;;  %v776_v28 = vld [vmem:[#allocation2 + $0x1c0] sm:$0xff]  ;;  %v787_v29 = vld [vmem:[#allocation2 + $0x1d0] sm:$0xff] }
 0x10b   : > { %v735_v26 = vmul.f32 %v733_v22, %v2989_v1  ;;  %v788_v22 = vld [vmem:[#allocation2 + $0x1d8] sm:$0xff] }
 0x10c   : > { %v664_v34 = vadd.f32 %v662_v30, %v653_v33 }
 0x10d   : > { %905 = vrot.lane.b32.xlu1 %v2989_v1, %s2799_s24  ;;  %936 = vrot.lane.b32.xlu0 %v2981_v0, %s2803_s26  ;;  %s2689_s24 = sshra.s32 %s2122_s5, 4  ;;  %s2690_s24 = int_to_ptr.hbm [resolvable:$true] %s2689_s24 }
 0x10e   : > { %947 = vrot.lane.b32.xlu2 %v2981_v0, %s2804_s16  ;;  %p2696_p3 = scmp.lt.s32.totalorder %s2690_s24, %s3968_s11 }
 0x10f   : > { %v668_v39 = vpop.permute.xlu1 %667  ;;  %v699_v40 = vpop.permute.xlu0 %698 }
 0x110   : > { %v673_v41 = vmul.f32 %v671_v36, %v668_v39  ;;  %v705_v42 = vmul.f32 %v703_v37, %v699_v40  ;;  %v761_v44 = vpop.permute.xlu2 %760 }
 0x111   : > { %v767_v20 = vmul.f32 %v765_v15, %v761_v44 }
 0x112   : > { %v675_v45 = vadd.f32 %v673_v41, %v664_v34  ;;  %v707_v46 = vadd.f32 %v705_v42, %v696_v32  ;;  %v798_v41 = vld [vmem:[#allocation2 + $0x1e0] sm:$0xff]  ;;  %v755_v42 = vld [vmem:[#allocation2 + $0x1a8] sm:$0xff] }
 0x114   : > { %v718_v47 = vadd.f32 %v716_v43, %v707_v46  ;;  %v766_v43 = vld [vmem:[#allocation2 + $0x1b8] sm:$0xff] }
 0x115   : > { %958 = vrot.lane.b32.xlu1 %v2981_v0, %s2805_s7  ;;  %916 = vrot.lane.b32.xlu0 %v2989_v1, %s2800_s12  ;;  %s2691_s12 = scalar_lea.hbm %s2690_s24, 16 }
 0x116   : > { %927 = vrot.lane.b32.xlu2 %v2989_v1, %s2801_s14  ;;  %p2692_p0 = scmp.ne.s32.totalorder %s2690_s24, %s2691_s12 }
 0x117   : > { %v721_v51 = vpop.permute.xlu1 %720  ;;  %v679_v52 = vpop.permute.xlu0 %678 }
 0x118   : > { %v727_v53 = vmul.f32 %v725_v48, %v721_v51  ;;  %v684_v54 = vmul.f32 %v682_v49, %v679_v52  ;;  %v783_v56 = vpop.permute.xlu2 %782  ;;  %p2693_p1 = pnand %p2692_p0, %p2911_p5 }
 0x119   : > { %v789_v35 = vmul.f32 %v787_v29, %v783_v56 }
 0x11a   : > { %v729_v58 = vadd.f32 %v727_v53, %v718_v47  ;;  %v686_v59 = vadd.f32 %v684_v54, %v675_v45  ;;  %v777_v53 = vld [vmem:[#allocation2 + $0x1c8] sm:$0xff]  ;;  %p2694_p2 = pneg %p2693_p1 }
 0x11c   : > { %v697_v60 = vadd.f32 %v695_v55, %v686_v59  ;;  %v736_v5 = vadd.f32 %v734_v61, %v729_v58 }
 0x11d   : > { %938 = vrot.lane.b32.xlu1 %v2989_v1, %s2803_s26  ;;  %969 = vrot.lane.b32.xlu0 %v2981_v0, %s2806_s17 }
 0x11e   : > { %980 = vrot.lane.b32.xlu2 %v2981_v0, %s2807_s19 }
 0x11f   : > { %v739_v3 = vpop.permute.xlu1 %738  ;;  %v701_v4 = vpop.permute.xlu0 %700 }
 0x120   : > { %v745_v6 = vmul.f32 %v743_v62, %v739_v3  ;;  %v706_v7 = vmul.f32 %v704_v63, %v701_v4  ;;  %v763_v9 = vpop.permute.xlu2 %762 }
 0x121   : > { %v768_v48 = vmul.f32 %v766_v43, %v763_v9  ;;  %v1029_v9 = vld [vmem:[#allocation7 + $0x68] sm:$0xff] }
 0x122   : > { %v747_v10 = vadd.f32 %v745_v6, %v736_v5  ;;  %v708_v11 = vadd.f32 %v706_v7, %v697_v60  ;;  %v1031_v6 = vld [vmem:[#allocation7 + $0x78] sm:$0xff] }
 0x123   : > { %1032 = vmatpush.msra.mxu0 %v1031_v6  ;;  %1059 = vmatpush.msra.mxu1 %v1031_v6 }
 0x124   : > { %v719_v12 = vadd.f32 %v717_v8, %v708_v11  ;;  %v1030_v8 = vld [vmem:[#allocation7 + $0x70] sm:$0xff] }
 0x125   : > { %991 = vrot.lane.b32.xlu1 %v2981_v0, %s2808_s23  ;;  %949 = vrot.lane.b32.xlu0 %v2989_v1, %s2804_s16  ;;  %v1002_v0 = vld [vmem:[%s3959_s2] sm:$0xff]  ;;  %s2695_s16 = scalar_lea.hbm %s3968_s11, 32 }
 0x126   : > { %960 = vrot.lane.b32.xlu2 %v2989_v1, %s2805_s7  ;;  %1033 = vmatpush.msra.mxu0 %v1030_v8  ;;  %p2697_p4 = scmp.lt.s32.totalorder %s2695_s16, %s2691_s12 }
 0x127   : > { %v723_v16 = vpop.permute.xlu1 %722  ;;  %v750_v17 = vpop.permute.xlu0 %749  ;;  %1060 = vmatpush.msra.mxu1 %v1030_v8 }
 0x128   : > { %v728_v18 = vmul.f32 %v726_v13, %v723_v16  ;;  %v756_v19 = vmul.f32 %v754_v14, %v750_v17  ;;  %v3125_v21 = vpop.permute.xlu2 %815  ;;  %1034 = vmatpush.msra.mxu0 %v1029_v9  ;;  %v809_v13 = vld [vmem:[#allocation2 + $0x1f0] sm:$0xff]  ;;  %v1026_v16 = vld [vmem:[#allocation7 + $0x50] sm:$0xff]  ;;  %v1025_v17 = vld [vmem:[#allocation7 + $0x48] sm:$0xff]  ;;  %p2698_p7 = por %p2697_p4, %p2696_p3 }
 0x129   : > { %1061 = vmatpush.msra.mxu1 %v1029_v9  ;;  %v1027_v14 = vld [vmem:[#allocation7 + $0x58] sm:$0xff] }
 0x12a   : > { %v730_v23 = vadd.f32 %v728_v18, %v719_v12  ;;  %v758_v24 = vadd.f32 %v756_v19, %v747_v10  ;;  %v1028_v12 = vld [vmem:[#allocation7 + $0x60] sm:$0xff]  ;;  %v820_v18 = vld [vmem:[#allocation2 + $0x200] sm:$0xff]  ;;  %p2699_p8 = pnand %p2698_p7, %p2694_p2 }
 0x12b   : > { %1035 = vmatpush.msra.mxu0 %v1028_v12  ;;  %1062 = vmatpush.msra.mxu1 %v1028_v12  ;;  %v897_v9 = vld [vmem:[#allocation2 + $0x270] sm:$0xff] }
 0x12c   : > { %v769_v25 = vadd.f32 %v767_v20, %v758_v24  ;;  %v737_v32 = vadd.f32 %v735_v26, %v730_v23  ;;  %v831_v20 = vld [vmem:[#allocation2 + $0x210] sm:$0xff] }
 0x12d   : > { %1006 = vperm.xlu1 %2453, %v1002_v0   ;;  %971 = vrot.lane.b32.xlu0 %v2989_v1, %s2806_s17  ;;  %v1024_v26 = vld [vmem:[#allocation7 + $0x40] sm:$0xff] }
 0x12e   : > { %982 = vrot.lane.b32.xlu2 %v2989_v1, %s2807_s19  ;;  %1036 = vmatpush.msra.mxu0 %v1027_v14  ;;  %s458_s19 = sand.u32 1, %s2741_s18  }
 0x12f   : > { %v741_v30 = vpop.permute.xlu1 %740  ;;  %v772_v31 = vpop.permute.xlu0 %771  ;;  %1063 = vmatpush.msra.mxu1 %v1027_v14  ;;  %s2107_s21 = scalar_lea.sflag [#allocation4], %s458_s19 }
 0x130   : > { %v746_v33 = vmul.f32 %v744_v27, %v741_v30  ;;  %v778_v34 = vmul.f32 %v776_v28, %v772_v31  ;;  %v3138_v39 = vpop.permute.xlu2 %795  ;;  %1037 = vmatpush.msra.mxu0 %v1026_v16  ;;  %v842_v27 = vld [vmem:[#allocation2 + $0x220] sm:$0xff]  ;;  %v1023_v30 = vld [vmem:[#allocation7 + $0x38] sm:$0xff] }
 0x131   : > { %1064 = vmatpush.msra.mxu1 %v1026_v16  ;;  %v799_v31 = vld [vmem:[#allocation2 + $0x1e8] sm:$0xff]  ;;  %v1016_v16 = vld [vmem:[#allocation7] sm:$0xff] }
 0x132   : > { %v748_v36 = vadd.f32 %v746_v33, %v737_v32  ;;  %v780_v37 = vadd.f32 %v778_v34, %v769_v25  ;;  %1038 = vmatpush.msra.mxu0 %v1025_v17  ;;  %v822_v25 = vmul.f32 %v820_v18, %v3125_v21  ;;  %v1022_v34 = vld [vmem:[#allocation7 + $0x30] sm:$0xff] }
 0x133   : > { %1065 = vmatpush.msra.mxu1 %v1025_v17  ;;  %v908_v17 = vld [vmem:[#allocation2 + $0x280] sm:$0xff] }
 0x134   : > { %v791_v40 = vadd.f32 %v789_v35, %v780_v37  ;;  %1039 = vmatpush.msra.mxu0 %v1024_v26  ;;  %v1021_v35 = vld [vmem:[#allocation7 + $0x28] sm:$0xff]  ;;  %v853_v37 = vld [vmem:[#allocation2 + $0x230] sm:$0xff] }
 0x135   : > { %1011 = vperm.xlu1 %2453, %v1003_v38   ;;  %993 = vrot.lane.b32.xlu0 %v2989_v1, %s2808_s23  ;;  %s2248_s23 = sshll.u32 %s458_s19, 4 }
 0x136   : > { %1066 = vmatpush.msra.mxu1 %v1024_v26  ;;  %1040 = vmatpush.msra.mxu0 %v1023_v30  ;;  %s460_s29 = scalar_lea.vmem [#allocation11], %s2248_s23 }
 0x137   : > { %v794_v44 = vpop.permute.xlu1 %793  ;;  %v752_v45 = vpop.permute.xlu0 %751  ;;  %s2119_s15 = sshll.u32 %s460_s29, 4  ;;  %s2120_s15 = int_to_ptr.vmem [resolvable:$true] %s2119_s15 }
 0x138   : > { %v800_v46 = vmul.f32 %v798_v41, %v794_v44  ;;  %v757_v47 = vmul.f32 %v755_v42, %v752_v45  ;;  %v3142_v52 = vpop.permute.xlu2 %848  ;;  %1067 = vmatpush.msra.mxu1 %v1023_v30  ;;  %1041 = vmatpush.msra.mxu0 %v1022_v34  ;;  %v864_v41 = vld [vmem:[#allocation2 + $0x240] sm:$0xff]  ;;  %v821_v42 = vld [vmem:[#allocation2 + $0x208] sm:$0xff] }
 0x13a   : > { %v802_v49 = vadd.f32 %v800_v46, %v791_v40  ;;  %v759_v50 = vadd.f32 %v757_v47, %v748_v36  ;;  %v810_v36 = vld [vmem:[#allocation2 + $0x1f8] sm:$0xff]  ;;  %1068 = vmatpush.msra.mxu1 %v1022_v34  ;;  %v801_v40 = vmul.f32 %v799_v31, %v3138_v39  ;;  %1042 = vmatpush.msra.mxu0 %v1021_v35  ;;  %v930_v31 = vld [vmem:[#allocation2 + $0x2a0] sm:$0xff] }
 0x13b   : > { %v855_v47 = vmul.f32 %v853_v37, %v3142_v52  ;;  %v1018_v52 = vld [vmem:[#allocation7 + $0x10] sm:$0xff] }
 0x13c   : > { %v770_v51 = vadd.f32 %v768_v48, %v759_v50  ;;  %1069 = vmatpush.msra.mxu1 %v1021_v35  ;;  %v875_v50 = vld [vmem:[#allocation2 + $0x250] sm:$0xff] }
 0x13f   : > { %v774_v54 = vpop.permute.xlu1 %773  ;;  %v805_v55 = vpop.permute.xlu0 %804 }
 0x140   : > { %v779_v56 = vmul.f32 %v777_v53, %v774_v54  ;;  %v3146_v1 = vpop.permute.xlu2 %828  ;;  %v811_v15 = vmul.f32 %v809_v13, %v805_v55  ;;  %v1019_v54 = vld [vmem:[#allocation7 + $0x18] sm:$0xff]  ;;  %v832_v55 = vld [vmem:[#allocation2 + $0x218] sm:$0xff] }
 0x142   : > { %v3144_v57 = vadd.f32 %v779_v56, %v770_v51  ;;  %v813_v0 = vadd.f32 %v811_v15, %v802_v49  ;;  %v1020_v49 = vld [vmem:[#allocation7 + $0x20] sm:$0xff] }
 0x143   : > { %1043 = vmatpush.msra.mxu0 %v1020_v49  ;;  %1070 = vmatpush.msra.mxu1 %v1020_v49 }
 0x144   : > { %v824_v32 = vadd.f32 %v822_v25, %v813_v0  ;;  %v865_v0 = vld [vmem:[#allocation2 + $0x248] sm:$0xff] }
 0x145   : > { %1044 = vmatpush.msra.mxu0 %v1019_v54  ;;  %1071 = vmatpush.msra.mxu1 %v1019_v54 }
 0x147   : > { %v827_v58 = vpop.permute.xlu1 %826  ;;  %v785_v59 = vpop.permute.xlu0 %784  ;;  %1045 = vmatpush.msra.mxu0 %v1018_v52  ;;  %1072 = vmatpush.msra.mxu1 %v1018_v52 }
 0x148   : > { %v3150_v62 = vpop.permute.xlu2 %881  ;;  %v833_v28 = vmul.f32 %v831_v20, %v827_v58  ;;  %v790_v29 = vmul.f32 %v788_v22, %v785_v59  ;;  %v1017_v59 = vld [vmem:[#allocation7 + $0x8] sm:$0xff] }
 0x149   : > { %1046 = vmatpush.msra.mxu0 %v1017_v59  ;;  %1073 = vmatpush.msra.mxu1 %v1017_v59 }
 0x14a   : > { %v835_v38 = vadd.f32 %v833_v28, %v824_v32  ;;  %v792_v21 = vadd.f32 %v790_v29, %v3144_v57  ;;  %v876_v28 = vld [vmem:[#allocation2 + $0x258] sm:$0xff]  ;;  %v887_v32 = vld [vmem:[#allocation2 + $0x268] sm:$0xff] }
 0x14b   : > { %1047 = vmatpush.msra.mxu0 %v1016_v16  ;;  %1074 = vmatpush.msra.mxu1 %v1016_v16 }
 0x14c   : > { %v803_v39 = vadd.f32 %v801_v40, %v792_v21  ;;  %v898_v21 = vld [vmem:[#allocation2 + $0x278] sm:$0xff] }
 0x14f   : > { %v3148_v60 = vpop.permute.xlu1 %806  ;;  %v838_v61 = vpop.permute.xlu0 %837 }
 0x150   : > { %v3156_v3 = vpop.permute.xlu2 %861  ;;  %v844_v33 = vmul.f32 %v842_v27, %v838_v61  ;;  %v812_v45 = vmul.f32 %v810_v36, %v3148_v60  ;;  %v843_v60 = vld [vmem:[#allocation2 + $0x228] sm:$0xff]  ;;  %v886_v61 = vld [vmem:[#allocation2 + $0x260] sm:$0xff]  ;;  %v941_v36 = vld [vmem:[#allocation2 + $0x2b0] sm:$0xff] }
 0x152   : > { %v846_v46 = vadd.f32 %v844_v33, %v835_v38  ;;  %v814_v56 = vadd.f32 %v812_v45, %v803_v39  ;;  %v909_v45 = vld [vmem:[#allocation2 + $0x288] sm:$0xff]  ;;  %v920_v39 = vld [vmem:[#allocation2 + $0x298] sm:$0xff] }
 0x154   : > { %v857_v57 = vadd.f32 %v855_v47, %v846_v46  ;;  %v952_v46 = vld [vmem:[#allocation2 + $0x2c0] sm:$0xff] }
 0x157   : > { %v3152_v63 = vpop.permute.xlu1 %859  ;;  %v3154_v2 = vpop.permute.xlu0 %817 }
 0x158   : > { %v3162_v7 = vpop.permute.xlu2 %914  ;;  %v866_v51 = vmul.f32 %v864_v41, %v3152_v63  ;;  %v823_v53 = vmul.f32 %v821_v42, %v3154_v2  ;;  %v834_v63 = vmul.f32 %v832_v55, %v3146_v1  ;;  %v854_v2 = vld [vmem:[#allocation2 + $0x238] sm:$0xff] }
 0x15a   : > { %v868_v6 = vadd.f32 %v866_v51, %v857_v57  ;;  %v825_v8 = vadd.f32 %v823_v53, %v814_v56 }
 0x15c   : > { %v836_v18 = vadd.f32 %v834_v63, %v825_v8 }
 0x15f   : > { %v3158_v4 = vpop.permute.xlu1 %839  ;;  %v3160_v5 = vpop.permute.xlu0 %870 }
 0x160   : > { %v3168_v19 = vpop.permute.xlu2 %894  ;;  %v877_v58 = vmul.f32 %v875_v50, %v3160_v5  ;;  %v845_v14 = vmul.f32 %v843_v60, %v3158_v4  ;;  %v888_v5 = vmul.f32 %v886_v61, %v3150_v62  ;;  %v919_v4 = vld [vmem:[#allocation2 + $0x290] sm:$0xff]  ;;  %v867_v62 = vmul.f32 %v865_v0, %v3156_v3  ;;  %v942_v61 = vld [vmem:[#allocation2 + $0x2b8] sm:$0xff] }
 0x161   : > { %v963_v50 = vld [vmem:[#allocation2 + $0x2d0] sm:$0xff] }
 0x162   : > { %v879_v15 = vadd.f32 %v877_v58, %v868_v6  ;;  %v847_v25 = vadd.f32 %v845_v14, %v836_v18  ;;  %v931_v58 = vld [vmem:[#allocation2 + $0x2a8] sm:$0xff]  ;;  %v985_v6 = vld [vmem:[#allocation2 + $0x2f0] sm:$0xff] }
 0x164   : > { %v890_v26 = vadd.f32 %v888_v5, %v879_v15 }
 0x167   : > { %v3164_v10 = vpop.permute.xlu1 %892  ;;  %v3166_v11 = vpop.permute.xlu0 %850 }
 0x168   : > { %v3183_v48 = vpop.permute.xlu2 %947  ;;  %v899_v20 = vmul.f32 %v897_v9, %v3164_v10  ;;  %v856_v1 = vmul.f32 %v854_v2, %v3166_v11  ;;  %v921_v11 = vmul.f32 %v919_v4, %v3162_v7  ;;  %v996_v2 = vld [vmem:[#allocation2 + $0x300] sm:$0xff] }
 0x16a   : > { %v901_v29 = vadd.f32 %v899_v20, %v890_v26  ;;  %v858_v30 = vadd.f32 %v856_v1, %v847_v25  ;;  %v964_v20 = vld [vmem:[#allocation2 + $0x2d8] sm:$0xff]  ;;  %v975_v25 = vld [vmem:[#allocation2 + $0x2e8] sm:$0xff] }
 0x16c   : > { %v869_v37 = vadd.f32 %v867_v62, %v858_v30  ;;  %v986_v62 = vld [vmem:[#allocation2 + $0x2f8] sm:$0xff] }
 0x16f   : > { %v3170_v23 = vpop.permute.xlu1 %872  ;;  %v3172_v24 = vpop.permute.xlu0 %903 }
 0x170   : > { %v928_v22 = vpop.permute.xlu2 %927  ;;  %v910_v27 = vmul.f32 %v908_v17, %v3172_v24  ;;  %v878_v10 = vmul.f32 %v876_v28, %v3170_v23  ;;  %v900_v23 = vmul.f32 %v898_v21, %v3168_v19 }
 0x171   : > { %v933_v63 = vmul.f32 %v931_v58, %v928_v22  ;;  %v1199_v58 = vld [vmem:[#allocation8 + $0x198] sm:$0xff] }
 0x172   : > { %v912_v35 = vadd.f32 %v910_v27, %v901_v29  ;;  %v880_v40 = vadd.f32 %v878_v10, %v869_v37  ;;  %v997_v10 = vld [vmem:[#allocation2 + $0x308] sm:$0xff] }
 0x174   : > { %v923_v41 = vadd.f32 %v921_v11, %v912_v35 }
 0x177   : > { %v3177_v43 = vpop.permute.xlu1 %925  ;;  %v3179_v44 = vpop.permute.xlu0 %883 }
 0x178   : > { %v932_v38 = vmul.f32 %v930_v31, %v3177_v43  ;;  %v889_v24 = vmul.f32 %v887_v32, %v3179_v44  ;;  %v981_v3 = vpop.permute.xlu2 %980  ;;  %v954_v43 = vmul.f32 %v952_v46, %v3183_v48  ;;  %v974_v44 = vld [vmem:[#allocation2 + $0x2e0] sm:$0xff]  ;;  %v1208_v46 = vld [vmem:[#allocation8 + $0x1e0] sm:$0xff] }
 0x179   : > { %v987_v5 = vmul.f32 %v985_v6, %v981_v3  ;;  %1222 = vmatpush.msra.mxu2 %v1208_v46  ;;  %v1188_v6 = vld [vmem:[#allocation8 + $0x140] sm:$0xff]  ;;  %v1154_v46 = vld [vmem:[#allocation8 + $0x30] sm:$0xff] }
 0x17a   : > { %v934_v47 = vadd.f32 %v932_v38, %v923_v41  ;;  %v891_v49 = vadd.f32 %v889_v24, %v880_v40 }
 0x17c   : > { %v902_v55 = vadd.f32 %v900_v23, %v891_v49  ;;  %v1210_v49 = vld [vmem:[#allocation8 + $0x1f0] sm:$0xff]  ;;  %v1211_v23 = vld [vmem:[#allocation8 + $0x1f8] sm:$0xff] }
 0x17d   : > { %1268 = vmatpush.msrb.mxu0 %v1210_v49  ;;  %1291 = vmatpush.msrb.mxu1 %v1211_v23  ;;  %v1148_v49 = vld [vmem:[#allocation8] sm:$0xff]  ;;  %v1149_v23 = vld [vmem:[#allocation8 + $0x8] sm:$0xff] }
 0x17f   : > { %v906_v12 = vpop.permute.xlu1 %905  ;;  %v937_v13 = vpop.permute.xlu0 %936 }
 0x180   : > { %v943_v42 = vmul.f32 %v941_v36, %v937_v13  ;;  %v911_v53 = vmul.f32 %v909_v45, %v906_v12  ;;  %v961_v9 = vpop.permute.xlu2 %960  ;;  %v953_v12 = vld [vmem:[#allocation2 + $0x2c8] sm:$0xff] }
 0x181   : > { %v966_v27 = vmul.f32 %v964_v20, %v961_v9  ;;  %v1184_v9 = vld [vmem:[#allocation8 + $0x120] sm:$0xff] }
 0x182   : > { %v945_v54 = vadd.f32 %v943_v42, %v934_v47  ;;  %v913_v52 = vadd.f32 %v911_v53, %v902_v55  ;;  %v1209_v47 = vld [vmem:[#allocation8 + $0x1e8] sm:$0xff]  ;;  %v1200_v53 = vld [vmem:[#allocation8 + $0x1a0] sm:$0xff] }
 0x183   : > { %1245 = vmatpush.msra.mxu3 %v1209_v47  ;;  %v1196_v55 = vld [vmem:[#allocation8 + $0x180] sm:$0xff]  ;;  %v1155_v47 = vld [vmem:[#allocation8 + $0x38] sm:$0xff] }
 0x184   : > { %v956_v59 = vadd.f32 %v954_v43, %v945_v54  ;;  %v1201_v54 = vld [vmem:[#allocation8 + $0x1a8] sm:$0xff]  ;;  %v1202_v43 = vld [vmem:[#allocation8 + $0x1b0] sm:$0xff] }
 0x187   : > { %v959_v33 = vpop.permute.xlu1 %958  ;;  %v917_v34 = vpop.permute.xlu0 %916 }
 0x188   : > { %v965_v56 = vmul.f32 %v963_v50, %v959_v33  ;;  %v922_v57 = vmul.f32 %v920_v39, %v917_v34  ;;  %v983_v31 = vpop.permute.xlu2 %982  ;;  %v1204_v50 = vld [vmem:[#allocation8 + $0x1c0] sm:$0xff]  ;;  %v1205_v39 = vld [vmem:[#allocation8 + $0x1c8] sm:$0xff] }
 0x189   : > { %v988_v34 = vmul.f32 %v986_v62, %v983_v31  ;;  %1223 = vmatpush.msra.mxu2 %v1204_v50  ;;  %1246 = vmatpush.msra.mxu3 %v1205_v39  ;;  %v1164_v62 = vld [vmem:[#allocation8 + $0x80] sm:$0xff]  ;;  %v1165_v31 = vld [vmem:[#allocation8 + $0x88] sm:$0xff] }
 0x18a   : > { %v967_v8 = vadd.f32 %v965_v56, %v956_v59  ;;  %v924_v19 = vadd.f32 %v922_v57, %v913_v52  ;;  %v1197_v56 = vld [vmem:[#allocation8 + $0x188] sm:$0xff]  ;;  %v1198_v57 = vld [vmem:[#allocation8 + $0x190] sm:$0xff]  ;;  %v1192_v52 = vld [vmem:[#allocation8 + $0x160] sm:$0xff] }
 0x18b   : > { %1224 = vmatpush.msra.mxu2 %v1200_v53  ;;  %1247 = vmatpush.msra.mxu3 %v1201_v54  ;;  %v1193_v59 = vld [vmem:[#allocation8 + $0x168] sm:$0xff] }
 0x18c   : > { %v935_v16 = vadd.f32 %v933_v63, %v924_v19  ;;  %v1190_v19 = vld [vmem:[#allocation8 + $0x150] sm:$0xff]  ;;  %v1191_v63 = vld [vmem:[#allocation8 + $0x158] sm:$0xff] }
 0x18d   : > { %1225 = vmatpush.msra.mxu2 %v1196_v55  ;;  %1248 = vmatpush.msra.mxu3 %v1197_v56 }
 0x18f   : > { %v939_v7 = vpop.permute.xlu1 %938  ;;  %v970_v51 = vpop.permute.xlu0 %969  ;;  %1226 = vmatpush.msra.mxu2 %v1192_v52  ;;  %1249 = vmatpush.msra.mxu3 %v1193_v59 }
 0x190   : > { %v976_v60 = vmul.f32 %v974_v44, %v970_v51  ;;  %v944_v15 = vmul.f32 %v942_v61, %v939_v7  ;;  %v1206_v7 = vld [vmem:[#allocation8 + $0x1d0] sm:$0xff]  ;;  %v1207_v51 = vld [vmem:[#allocation8 + $0x1d8] sm:$0xff] }
 0x191   : > { %1269 = vmatpush.msrb.mxu0 %v1206_v7  ;;  %1292 = vmatpush.msrb.mxu1 %v1207_v51  ;;  %v1203_v44 = vld [vmem:[#allocation8 + $0x1b8] sm:$0xff]  ;;  %v1150_v7 = vld [vmem:[#allocation8 + $0x10] sm:$0xff] }
 0x192   : > { %v978_v48 = vadd.f32 %v976_v60, %v967_v8  ;;  %v946_v1 = vadd.f32 %v944_v15, %v935_v16  ;;  %v1194_v60 = vld [vmem:[#allocation8 + $0x170] sm:$0xff]  ;;  %v1195_v61 = vld [vmem:[#allocation8 + $0x178] sm:$0xff]  ;;  %v1189_v8 = vld [vmem:[#allocation8 + $0x148] sm:$0xff]  ;;  %1227 = vmatpush.msra.mxu2 %v1188_v6 }
 0x193   : > { %1270 = vmatpush.msrb.mxu0 %v1202_v43  ;;  %1293 = vmatpush.msrb.mxu1 %v1203_v44  ;;  %v1181_v15 = vld [vmem:[#allocation8 + $0x108] sm:$0xff]  ;;  %v1176_v16 = vld [vmem:[#allocation8 + $0xe0] sm:$0xff]  ;;  %v1151_v51 = vld [vmem:[#allocation8 + $0x18] sm:$0xff] }
 0x194   : > { %v989_v0 = vadd.f32 %v987_v5, %v978_v48  ;;  %1250 = vmatpush.msra.mxu3 %v1189_v8  ;;  %1228 = vmatpush.msra.mxu2 %v1184_v9  ;;  %v1182_v48 = vld [vmem:[#allocation8 + $0x110] sm:$0xff]  ;;  %v1183_v5 = vld [vmem:[#allocation8 + $0x118] sm:$0xff] }
 0x195   : > { %1271 = vmatpush.msrb.mxu0 %v1198_v57  ;;  %1294 = vmatpush.msrb.mxu1 %v1199_v58 }
 0x197   : > { %v992_v13 = vpop.permute.xlu1 %991  ;;  %v950_v14 = vpop.permute.xlu0 %949  ;;  %1272 = vmatpush.msrb.mxu0 %v1194_v60  ;;  %1295 = vmatpush.msrb.mxu1 %v1195_v61 }
 0x198   : > { %v998_v17 = vmul.f32 %v996_v2, %v992_v13  ;;  %v955_v18 = vmul.f32 %v953_v12, %v950_v14  ;;  %v1185_v2 = vld [vmem:[#allocation8 + $0x128] sm:$0xff]  ;;  %v1186_v13 = vld [vmem:[#allocation8 + $0x130] sm:$0xff]  ;;  %v1187_v12 = vld [vmem:[#allocation8 + $0x138] sm:$0xff] }
 0x199   : > { %1273 = vmatpush.msrb.mxu0 %v1190_v19  ;;  %1296 = vmatpush.msrb.mxu1 %v1191_v63  ;;  %v1180_v14 = vld [vmem:[#allocation8 + $0x100] sm:$0xff] }
 0x19a   : > { %v957_v26 = vadd.f32 %v955_v18, %v946_v1  ;;  %v1000_v28 = vadd.f32 %v998_v17, %v989_v0  ;;  %1251 = vmatpush.msra.mxu3 %v1185_v2  ;;  %1229 = vmatpush.msra.mxu2 %v1180_v14  ;;  %v1177_v17 = vld [vmem:[#allocation8 + $0xe8] sm:$0xff]  ;;  %v1178_v18 = vld [vmem:[#allocation8 + $0xf0] sm:$0xff]  ;;  %v1179_v1 = vld [vmem:[#allocation8 + $0xf8] sm:$0xff] }
 0x19b   : > { %1274 = vmatpush.msrb.mxu0 %v1186_v13  ;;  %1297 = vmatpush.msrb.mxu1 %v1187_v12  ;;  %v1172_v0 = vld [vmem:[#allocation8 + $0xc0] sm:$0xff] }
 0x19c   : > { %v968_v32 = vadd.f32 %v966_v27, %v957_v26  ;;  %1252 = vmatpush.msra.mxu3 %v1181_v15  ;;  %1230 = vmatpush.msra.mxu2 %v1176_v16  ;;  %v1174_v27 = vld [vmem:[#allocation8 + $0xd0] sm:$0xff] }
 0x19d   : > { %1275 = vmatpush.msrb.mxu0 %v1182_v48  ;;  %1298 = vmatpush.msrb.mxu1 %v1183_v5 }
 0x19e   : > { %1253 = vmatpush.msra.mxu3 %v1177_v17  ;;  %1231 = vmatpush.msra.mxu2 %v1172_v0 }
 0x19f   : > { %v1007_v4 = vpop.permute.xlu1 %1006  ;;  %v972_v22 = vpop.permute.xlu0 %971  ;;  %1276 = vmatpush.msrb.mxu0 %v1178_v18  ;;  %1299 = vmatpush.msrb.mxu1 %v1179_v1 }
 0x1a0   : > { %v1014_v29 = vadd.f32 %v1007_v4, %v1000_v28  ;;  %v977_v30 = vmul.f32 %v975_v25, %v972_v22  ;;  %v1173_v25 = vld [vmem:[#allocation8 + $0xc8] sm:$0xff]  ;;  %v1175_v28 = vld [vmem:[#allocation8 + $0xd8] sm:$0xff]  ;;  %v1168_v4 = vld [vmem:[#allocation8 + $0xa0] sm:$0xff] }
 0x1a1   : > { %1254 = vmatpush.msra.mxu3 %v1173_v25  ;;  %v1169_v22 = vld [vmem:[#allocation8 + $0xa8] sm:$0xff]  ;;  %1277 = vmatpush.msrb.mxu0 %v1174_v27  ;;  %v2457_v25 = vld [vmem:[#allocation5] ss:$0 sm:$0xff] }
 0x1a2   : > { %1048 = vmatmul.f32.vlgmr.msra.gmra.mxu0 %v1014_v29  ;;  %v979_v33 = vadd.f32 %v977_v30, %v968_v32  ;;  %v1171_v30 = vld [vmem:[#allocation8 + $0xb8] sm:$0xff]  ;;  %1300 = vmatpush.msrb.mxu1 %v1175_v28  ;;  %v1166_v32 = vld [vmem:[#allocation8 + $0x90] sm:$0xff] }
 0x1a3   : > { %1232 = vmatpush.msra.mxu2 %v1168_v4  ;;  %1255 = vmatpush.msra.mxu3 %v1169_v22 }
 0x1a4   : > { %v990_v11 = vadd.f32 %v988_v34, %v979_v33  ;;  %v1167_v33 = vld [vmem:[#allocation8 + $0x98] sm:$0xff]  ;;  %1301 = vmatpush.msrb.mxu1 %v1171_v30  ;;  %v1160_v34 = vld [vmem:[#allocation8 + $0x60] sm:$0xff] }
 0x1a5   : > { %1233 = vmatpush.msra.mxu2 %v1164_v62  ;;  %1256 = vmatpush.msra.mxu3 %v1165_v31 }
 0x1a6   : > { %1302 = vmatpush.msrb.mxu1 %v1167_v33 }
 0x1a7   : > { %v994_v35 = vpop.permute.xlu0 %993  ;;  %v1012_v38 = vpop.permute.xlu1 %1011  ;;  %1234 = vmatpush.msra.mxu2 %v1160_v34 }
 0x1a8   : > { %v999_v36 = vmul.f32 %v997_v10, %v994_v35  ;;  %v1161_v10 = vld [vmem:[#allocation8 + $0x68] sm:$0xff]  ;;  %v1162_v35 = vld [vmem:[#allocation8 + $0x70] sm:$0xff] }
 0x1a9   : > { %1257 = vmatpush.msra.mxu3 %v1161_v10 }
 0x1aa   : > { %v1001_v37 = vadd.f32 %v999_v36, %v990_v11  ;;  %v1163_v11 = vld [vmem:[#allocation8 + $0x78] sm:$0xff]  ;;  %v1156_v36 = vld [vmem:[#allocation8 + $0x40] sm:$0xff] }
 0x1ab   : > { %1303 = vmatpush.msrb.mxu1 %v1163_v11  ;;  %1235 = vmatpush.msra.mxu2 %v1156_v36  ;;  %v3226_v11 = vld [vmem:[%s3965_s8] sm:$0xf] }
 0x1ac   : > { %v1015_v24 = vadd.f32 %v1012_v38, %v1001_v37  ;;  %v1157_v37 = vld [vmem:[#allocation8 + $0x48] sm:$0xff]  ;;  %v1158_v38 = vld [vmem:[#allocation8 + $0x50] sm:$0xff]  ;;  %v1216_v36 = vperm.slane %v3226_v11, 2 }
 0x1ad   : > { %1258 = vmatpush.msra.mxu3 %v1157_v37  ;;  %v1217_v37 = vperm.slane %v3226_v11, 3 }
 0x1ae   : > { %1051 = vmatmul.f32.gmra.mxu0 %v1015_v24 }
 0x21f   : > { %v1049_v21 = vpop.f32.mrf.mxu0 }
 0x220   : > { %v3201_v40 = vsub.f32 %v1014_v29, %v1049_v21  ;;  %v1170_v29 = vld [vmem:[#allocation8 + $0xb0] sm:$0xff] }
 0x221   : > { %1278 = vmatpush.msrb.mxu0 %v1170_v29 }
 0x222   : > { %v1057_v41 = vmul.f32 %v3201_v40, %v3201_v40 }
 0x223   : > { %1279 = vmatpush.msrb.mxu0 %v1166_v32 }
 0x224   : > { %1075 = vmatmul.f32.vlgmr.msra.gmra.mxu1 %v1057_v41  ;;  %v1152_v41 = vld [vmem:[#allocation8 + $0x20] sm:$0xff] }
 0x225   : > { %1280 = vmatpush.msrb.mxu0 %v1162_v35  ;;  %1236 = vmatpush.msra.mxu2 %v1152_v41  ;;  %v1214_v41 = vperm.slane %v3226_v11, 0 }
 0x227   : > { %1281 = vmatpush.msrb.mxu0 %v1158_v38  ;;  %1237 = vmatpush.msra.mxu2 %v1148_v49 }
 0x229   : > { %1282 = vmatpush.msrb.mxu0 %v1154_v46 }
 0x22b   : > { %v1052_v42 = vpop.f32.mrf.mxu0  ;;  %1283 = vmatpush.msrb.mxu0 %v1150_v7 }
 0x22c   : > { %v3205_v3 = vsub.f32 %v1015_v24, %v1052_v42  ;;  %v1159_v24 = vld [vmem:[#allocation8 + $0x58] sm:$0xff]  ;;  %v1153_v42 = vld [vmem:[#allocation8 + $0x28] sm:$0xff] }
 0x22d   : > { %1304 = vmatpush.msrb.mxu1 %v1159_v24  ;;  %1259 = vmatpush.msra.mxu3 %v1153_v42  ;;  %v1215_v42 = vperm.slane %v3226_v11, 1 }
 0x22e   : > { %v1058_v45 = vmul.f32 %v3205_v3, %v3205_v3 }
 0x22f   : > { %1305 = vmatpush.msrb.mxu1 %v1155_v47  ;;  %1260 = vmatpush.msra.mxu3 %v1149_v23 }
 0x230   : > { %1078 = vmatmul.f32.gmra.mxu1 %v1058_v45 }
 0x231   : > { %1306 = vmatpush.msrb.mxu1 %v1151_v51 }
 0x2a1   : > { %v1076_v20 = vpop.f32.mrf.mxu1 }
 0x2a2   : > { %v3209_v26 = vadd.f32 1e-06, %v1076_v20  ;;  %v2456_v20 = vld [vmem:[%s3961_s4] ss:$0 sm:$0xff] }
 0x2a4   : > { %2459 = vrsqrt.f32 %v3209_v26  ;;  %vm1089_vm0 = vcmp.eq.f32.partialorder %v3209_v26, inf  ;;  %v1092_v57 = vand.u32 2147483648, %v3209_v26  ;;  %vm1091_vm1 = vcmp.eq.f32.partialorder %v3209_v26, 0.0 }
 0x2aa   : > { %v2460_v21 = vpop.eup %2459 }
 0x2ab   : > { %v1083_v45 = vmul.f32 %v2460_v21, %v3209_v26 }
 0x2ad   : > { %v1084_v50 = vmul.f32 %v2460_v21, %v1083_v45  ;;  %v1079_v39 = vpop.f32.mrf.mxu1 }
 0x2ae   : > { %v1080_v53 = vadd.f32 1e-06, %v1079_v39 }
 0x2af   : > { %v1085_v54 = vmul.f32 0.5, %v1084_v50 }
 0x2b0   : > { %2461 = vrsqrt.f32 %v1080_v53  ;;  %vm1101_vm2 = vcmp.eq.f32.partialorder %v1080_v53, inf  ;;  %v1104_v2 = vand.u32 2147483648, %v1080_v53  ;;  %vm1103_vm3 = vcmp.eq.f32.partialorder %v1080_v53, 0.0 }
 0x2b1   : > { %v1086_v43 = vsub.f32 1.5, %v1085_v54 }
 0x2b3   : > { %v1087_v44 = vmul.f32 %v2460_v21, %v1086_v43 }
 0x2b5   : > { %v1088_v55 = vmul.f32 %v1087_v44, %v3209_v26 }
 0x2b6   : > { %v2462_v56 = vpop.eup %2461 }
 0x2b7   : > { %v1095_v58 = vmul.f32 %v2462_v56, %v1080_v53  ;;  %v1090_v52 = vsel %vm1089_vm0, %v3209_v26, %v1088_v55 }
 0x2b8   : > { %v1093_v59 = vsel %vm1091_vm1, %v1092_v57, %v1090_v52 }
 0x2b9   : > { %v1096_v60 = vmul.f32 %v2462_v56, %v1095_v58  ;;  %2463 = vrcp.f32 %v1093_v59  ;;  %v1117_v12 = vand.u32 2147483648, %v1093_v59  ;;  %v1115_v48 = vand.u32 2147483647, %v1093_v59 }
 0x2ba   : > { %vm1111_vm5 = vweird.f32 %v1093_v59 }
 0x2bb   : > { %v1097_v61 = vmul.f32 0.5, %v1096_v60  ;;  %v1118_v17 = vor.u32 1.1754944e-38, %v1117_v12  ;;  %vm1116_vm7 = vcmp.eq.f32.partialorder %v1115_v48, 8.507059e+37 }
 0x2bd   : > { %v1098_v6 = vsub.f32 1.5, %v1097_v61 }
 0x2bf   : > { %v2464_v8 = vpop.eup %2463  ;;  %v1099_v19 = vmul.f32 %v2462_v56, %v1098_v6 }
 0x2c0   : > { %v1107_v63 = vmul.f32 %v2464_v8, %v1093_v59  ;;  %vm1112_vm4 = vweird.f32 %v2464_v8 }
 0x2c1   : > { %v1100_v9 = vmul.f32 %v1099_v19, %v1080_v53  ;;  %vm1113_vm6 = vmor %vm1111_vm5, %vm1112_vm4 }
 0x2c2   : > { %v1108_v13 = vsub.f32 1.0, %v1107_v63 }
 0x2c3   : > { %v1102_v14 = vsel %vm1101_vm2, %v1080_v53, %v1100_v9 }
 0x2c4   : > { %v1109_v15 = vmul.f32 %v2464_v8, %v1108_v13  ;;  %v1105_v5 = vsel %vm1103_vm3, %v1104_v2, %v1102_v14 }
 0x2c5   : > { %2465 = vrcp.f32 %v1105_v5  ;;  %v1132_v29 = vand.u32 2147483648, %v1105_v5  ;;  %v1130_v62 = vand.u32 2147483647, %v1105_v5  ;;  %vm1126_vm9 = vweird.f32 %v1105_v5 }
 0x2c6   : > { %v1110_v16 = vadd.f32 %v2464_v8, %v1109_v15 }
 0x2c7   : > { %v1133_v32 = vor.u32 1.1754944e-38, %v1132_v29  ;;  %vm1131_vm11 = vcmp.eq.f32.partialorder %v1130_v62, 8.507059e+37 }
 0x2c8   : > { %v1114_v18 = vsel %vm1113_vm6, %v2464_v8, %v1110_v16 }
 0x2c9   : > { %v1119_v1 = vsel %vm1116_vm7, %v1118_v17, %v1114_v18 }
 0x2ca   : > { %v1120_v0 = vmul.f32 %v1119_v1, %v3201_v40 }
 0x2cb   : > { %v2466_v26 = vpop.eup %2465 }
 0x2cc   : > { %v1140_v27 = vmul.f32 %v2456_v20, %v1120_v0  ;;  %v1122_v28 = vmul.f32 %v2466_v26, %v1105_v5  ;;  %vm1127_vm8 = vweird.f32 %v2466_v26 }
 0x2cd   : > { %vm1128_vm10 = vmor %vm1126_vm9, %vm1127_vm8 }
 0x2ce   : > { %v1146_v4 = vadd.f32 %v2457_v25, %v1140_v27  ;;  %v1123_v22 = vsub.f32 1.0, %v1122_v28 }
 0x2d0   : > { %1238 = vmatmul.f32.vlgmr.msra.gmra.mxu2 %v1146_v4  ;;  %1261 = vmatmul.f32.vlgmr.msra.gmra.mxu3 %v1146_v4  ;;  %v1124_v30 = vmul.f32 %v2466_v26, %v1123_v22 }
 0x2d1   : > { %1284 = vmatmul.f32.vlgmr.msrb.gmra.mxu0 %v1146_v4  ;;  %1307 = vmatmul.f32.vlgmr.msrb.gmra.mxu1 %v1146_v4 }
 0x2d2   : > { %v1125_v31 = vadd.f32 %v2466_v26, %v1124_v30 }
 0x2d4   : > { %v1129_v33 = vsel %vm1128_vm10, %v2466_v26, %v1125_v31 }
 0x2d5   : > { %v1134_v40 = vsel %vm1131_vm11, %v1133_v32, %v1129_v33 }
 0x2d6   : > { %v1135_v34 = vmul.f32 %v1134_v40, %v3205_v3 }
 0x2d8   : > { %v1141_v10 = vmul.f32 %v2456_v20, %v1135_v34 }
 0x2da   : > { %v1147_v35 = vadd.f32 %v2457_v25, %v1141_v10 }
 0x2dc   : > { %1241 = vmatmul.f32.gmra.mxu2 %v1147_v35  ;;  %1264 = vmatmul.f32.gmra.mxu3 %v1147_v35 }
 0x2dd   : > { %1287 = vmatmul.f32.gmra.mxu0 %v1147_v35  ;;  %1310 = vmatmul.f32.gmra.mxu1 %v1147_v35 }
 0x34e   : > { %v1285_v38 = vpop.f32.mrf.mxu0  ;;  %v1308_v24 = vpop.f32.mrf.mxu1 }
 0x34f   : > { %v3232_v3 = vadd.f32 %v1285_v38, %v1216_v36  ;;  %v3236_v21 = vadd.f32 %v1308_v24, %v1217_v37 }
 0x351   : > { %v3241_v45 = vmul.f32 0.70710677, %v3232_v3  ;;  %v3244_v46 = vmul.f32 0.70710677, %v3236_v21 }
 0x353   : > { %v1410_v47 = vmul.f32 %v3241_v45, %v3241_v45  ;;  %v1450_v49 = vmul.f32 %v3244_v46, %v3244_v46  ;;  %v1239_v23 = vpop.f32.mrf.mxu2  ;;  %v1262_v50 = vpop.f32.mrf.mxu3 }
 0x354   : > { %v3252_v39 = vadd.f32 %v1239_v23, %v1214_v41  ;;  %v3256_v7 = vadd.f32 %v1262_v50, %v1215_v42 }
 0x355   : > { %v3258_v51 = vmin.f32 %v1410_v47, 16.0  ;;  %v3260_v53 = vmin.f32 %v1450_v49, 16.0 }
 0x356   : > { %v3263_v54 = vmul.f32 0.70710677, %v3252_v39  ;;  %v3266_v43 = vmul.f32 0.70710677, %v3256_v7 }
 0x357   : > { %v1412_v44 = vmul.f32 2.1237322e-06, %v3258_v51  ;;  %v1423_v55 = vmul.f32 3.8918573e-05, %v3258_v51  ;;  %v1452_v56 = vmul.f32 2.1237322e-06, %v3260_v53 }
 0x358   : > { %v1463_v57 = vmul.f32 3.8918573e-05, %v3260_v53  ;;  %v1330_v58 = vmul.f32 %v3263_v54, %v3263_v54  ;;  %v1370_v52 = vmul.f32 %v3266_v43, %v3266_v43 }
 0x359   : > { %v1413_v59 = vadd.f32 0.00028619796, %v1412_v44  ;;  %v1424_v60 = vadd.f32 0.001143296, %v1423_v55  ;;  %v1453_v61 = vadd.f32 0.00028619796, %v1452_v56 }
 0x35a   : > { %v1464_v6 = vadd.f32 0.001143296, %v1463_v57  ;;  %v3276_v8 = vmin.f32 %v1330_v58, 16.0  ;;  %v3278_v19 = vmin.f32 %v1370_v52, 16.0 }
 0x35b   : > { %v1414_v63 = vmul.f32 %v1413_v59, %v3258_v51  ;;  %v1425_v9 = vmul.f32 %v1424_v60, %v3258_v51  ;;  %v1454_v48 = vmul.f32 %v1453_v61, %v3260_v53  ;;  %v1288_v59 = vpop.f32.mrf.mxu0 }
 0x35c   : > { %v1465_v2 = vmul.f32 %v1464_v6, %v3260_v53  ;;  %v1332_v13 = vmul.f32 2.1237322e-06, %v3276_v8  ;;  %v1343_v12 = vmul.f32 3.8918573e-05, %v3276_v8  ;;  %v1372_v14 = vmul.f32 2.1237322e-06, %v3278_v19 }
 0x35d   : > { %v1426_v15 = vadd.f32 0.014752088, %v1425_v9  ;;  %v1415_v18 = vadd.f32 0.0036580483, %v1414_v63  ;;  %v1383_v27 = vmul.f32 3.8918573e-05, %v3278_v19  ;;  %v1311_v9 = vpop.f32.mrf.mxu1 }
 0x35e   : > { %v1466_v5 = vadd.f32 0.014752088, %v1465_v2  ;;  %v1333_v16 = vadd.f32 0.00028619796, %v1332_v13  ;;  %v1344_v17 = vadd.f32 0.001143296, %v1343_v12  ;;  %v3310_v13 = vadd.f32 %v1288_v59, %v1216_v36 }
 0x35f   : > { %v1427_v20 = vmul.f32 %v1426_v15, %v3258_v51  ;;  %v1373_v1 = vadd.f32 0.00028619796, %v1372_v14  ;;  %v1455_v4 = vadd.f32 0.0036580483, %v1454_v48  ;;  %v1416_v30 = vmul.f32 %v1415_v18, %v3258_v51 }
 0x360   : > { %v1467_v0 = vmul.f32 %v1466_v5, %v3260_v53  ;;  %v1334_v25 = vmul.f32 %v1333_v16, %v3276_v8  ;;  %v1345_v26 = vmul.f32 %v1344_v17, %v3276_v8  ;;  %v1384_v34 = vadd.f32 0.001143296, %v1383_v27 }
 0x361   : > { %v1428_v28 = vadd.f32 0.112945676, %v1427_v20  ;;  %v1374_v31 = vmul.f32 %v1373_v1, %v3278_v19  ;;  %v1456_v35 = vmul.f32 %v1455_v4, %v3260_v53  ;;  %v1417_v49 = vadd.f32 0.05243302, %v1416_v30  ;;  %v1242_v30 = vpop.f32.mrf.mxu2 }
 0x362   : > { %v1468_v22 = vadd.f32 0.112945676, %v1467_v0  ;;  %v1346_v29 = vadd.f32 0.014752088, %v1345_v26  ;;  %v1335_v33 = vadd.f32 0.0036580483, %v1334_v25  ;;  %v1385_v47 = vmul.f32 %v1384_v34, %v3278_v19 }
 0x363   : > { %v1429_v62 = vmul.f32 %v1428_v28, %v3258_v51  ;;  %v1375_v50 = vadd.f32 0.0036580483, %v1374_v31  ;;  %v1457_v58 = vadd.f32 0.05243302, %v1456_v35  ;;  %v1418_v6 = vmul.f32 %v1417_v49, %v3258_v51 }
 0x364   : > { %v1469_v32 = vmul.f32 %v1468_v22, %v3260_v53  ;;  %v1347_v40 = vmul.f32 %v1346_v29, %v3276_v8  ;;  %v1336_v44 = vmul.f32 %v1335_v33, %v3276_v8  ;;  %v1386_v56 = vadd.f32 0.014752088, %v1385_v47 }
 0x365   : > { %v1430_v10 = vadd.f32 0.4994258, %v1429_v62  ;;  %v1376_v63 = vmul.f32 %v1375_v50, %v3278_v19  ;;  %v1458_v12 = vmul.f32 %v1457_v58, %v3260_v53  ;;  %v3319_v5 = vadd.f32 %v1311_v9, %v1217_v37 }
 0x366   : > { %v1470_v38 = vadd.f32 0.4994258, %v1469_v32  ;;  %v1348_v24 = vadd.f32 0.112945676, %v1347_v40  ;;  %v1387_v61 = vmul.f32 %v1386_v56, %v3278_v19  ;;  %v1337_v2 = vadd.f32 0.05243302, %v1336_v44 }
 0x367   : > { %v1431_v23 = vmul.f32 %v1430_v10, %v3258_v51  ;;  %v1419_v16 = vadd.f32 0.18741608, %v1418_v6  ;;  %v1377_v17 = vadd.f32 0.05243302, %v1376_v63  ;;  %v3326_v1 = vmul.f32 0.70710677, %v3310_v13 }
 0x368   : > { %v1349_v55 = vmul.f32 %v1348_v24, %v3276_v8  ;;  %v1471_v52 = vmul.f32 %v1470_v38, %v3260_v53  ;;  %v1388_v48 = vadd.f32 0.112945676, %v1387_v61  ;;  %v1338_v18 = vmul.f32 %v1337_v2, %v3276_v8 }
 0x369   : > { %v3302_v57 = vadd.f32 1.0, %v1431_v23  ;;  %v1459_v0 = vadd.f32 0.18741608, %v1458_v12  ;;  %v3331_v25 = vmul.f32 0.70710677, %v3319_v5  ;;  %v1420_v26 = vmul.f32 %v1419_v16, %v3258_v51 }
 0x36a   : > { %v1350_v60 = vadd.f32 0.4994258, %v1349_v55  ;;  %v3314_v14 = vadd.f32 1.0, %v1471_v52  ;;  %v1389_v36 = vmul.f32 %v1388_v48, %v3278_v19  ;;  %v1378_v27 = vmul.f32 %v1377_v17, %v3278_v19 }
 0x36b   : > { %2467 = vrcp.f32 %v3302_v57  ;;  %v1339_v28 = vadd.f32 0.18741608, %v1338_v18  ;;  %v1570_v22 = vmul.f32 %v3326_v1, %v3326_v1  ;;  %v1460_v29 = vmul.f32 %v1459_v0, %v3260_v53 }
 0x36c   : > { %v1351_v15 = vmul.f32 %v1350_v60, %v3276_v8  ;;  %2469 = vrcp.f32 %v3314_v14  ;;  %v1390_v4 = vadd.f32 0.4994258, %v1389_v36  ;;  %v1610_v51 = vmul.f32 %v3331_v25, %v3331_v25 }
 0x36d   : > { %v3343_v32 = vmin.f32 %v1570_v22, 16.0  ;;  %v1421_v40 = vadd.f32 1.1283791, %v1420_v26  ;;  %v1379_v34 = vadd.f32 0.18741608, %v1378_v27  ;;  %v1340_v35 = vmul.f32 %v1339_v28, %v3276_v8 }
 0x36e   : > { %v3322_v20 = vadd.f32 1.0, %v1351_v15  ;;  %v1391_v31 = vmul.f32 %v1390_v4, %v3278_v19  ;;  %v3356_v38 = vadd.f32 %v1242_v30, %v1214_v41  ;;  %v3358_v24 = vadd.f32 1.1283791, %v1460_v29 }
 0x36f   : > { %v1583_v49 = vmul.f32 3.8918573e-05, %v3343_v32  ;;  %v1444_v50 = vand.u32 2147483648, %v3302_v57  ;;  %v3365_v44 = vmin.f32 %v1610_v51, 16.0  ;;  %v3368_v8 = vmul.f32 %v1421_v40, %v3241_v45 }
 0x370   : > { %2471 = vrcp.f32 %v3322_v20  ;;  %v3352_v53 = vadd.f32 1.0, %v1391_v31  ;;  %v1380_v56 = vmul.f32 %v1379_v34, %v3278_v19  ;;  %vm1438_vm12 = vweird.f32 %v3302_v57 }
 0x371   : > { %v3333_v37 = vpop.eup %2467  ;;  %v1442_v58 = vand.u32 2147483647, %v3302_v57  ;;  %v1341_v52 = vadd.f32 1.1283791, %v1340_v35  ;;  %v3376_v59 = vmul.f32 0.70710677, %v3356_v38  ;;  %vm1478_vm15 = vweird.f32 %v3314_v14 }
 0x372   : > { %v1434_v62 = vmul.f32 %v3333_v37, %v3302_v57  ;;  %v3347_v33 = vpop.eup %2469  ;;  %2473 = vrcp.f32 %v3352_v53  ;;  %v1482_v60 = vand.u32 2147483647, %v3314_v14  ;;  %v1484_v61 = vand.u32 2147483648, %v3314_v14 }
 0x373   : > { %v1474_v41 = vmul.f32 %v3347_v33, %v3314_v14  ;;  %v1584_v6 = vadd.f32 0.001143296, %v1583_v49  ;;  %v1445_v9 = vor.u32 1.1754944e-38, %v1444_v50  ;;  %v1362_v19 = vand.u32 2147483647, %v3322_v20 }
 0x374   : > { %v1435_v23 = vsub.f32 1.0, %v1434_v62  ;;  %v1623_v2 = vmul.f32 3.8918573e-05, %v3365_v44  ;;  %v1364_v15 = vand.u32 2147483648, %v3322_v20  ;;  %v1381_v48 = vadd.f32 1.1283791, %v1380_v56 }
 0x375   : > { %v1475_v12 = vsub.f32 1.0, %v1474_v41  ;;  %v1585_v16 = vmul.f32 %v1584_v6, %v3343_v32  ;;  %vm1439_vm13 = vweird.f32 %v3333_v37  ;;  %vm3387_vm14 = vcmp.eq.f32.partialorder %v1442_v58, 8.507059e+37 }
 0x376   : > { %v3349_v10 = vpop.eup %2471  ;;  %v1436_v63 = vmul.f32 %v3333_v37, %v1435_v23  ;;  %v1342_v36 = vmul.f32 %v1341_v52, %v3263_v54  ;;  %v1624_v0 = vadd.f32 0.001143296, %v1623_v2  ;;  %v1490_v26 = vmul.f32 %v3376_v59, %v3376_v59  ;;  %vm3420_vm5 = vmor %vm1438_vm12, %vm1439_vm13 }
 0x377   : > { %v1354_v47 = vmul.f32 %v3349_v10, %v3322_v20  ;;  %vm1358_vm0 = vweird.f32 %v3322_v20  ;;  %vm1359_vm1 = vweird.f32 %v3349_v10  ;;  %vm1479_vm2 = vweird.f32 %v3347_v33  ;;  %v1265_v20 = vpop.f32.mrf.mxu3 }
 0x378   : > { %v2474_v17 = vpop.eup %2473  ;;  %v1437_v4 = vadd.f32 %v3333_v37, %v1436_v63  ;;  %vm3401_vm3 = vcmp.eq.f32.partialorder %v1362_v19, 8.507059e+37  ;;  %v1586_v22 = vadd.f32 0.014752088, %v1585_v16  ;;  %v1476_v29 = vmul.f32 %v3347_v33, %v1475_v12  ;;  %vm3407_vm4 = vmor %vm1358_vm0, %vm1359_vm1 }
 0x379   : > { %v1355_v55 = vsub.f32 1.0, %v1354_v47  ;;  %v1394_v28 = vmul.f32 %v2474_v17, %v3352_v53  ;;  %v1365_v30 = vor.u32 1.1754944e-38, %v1364_v15  ;;  %v1382_v62 = vmul.f32 %v1381_v48, %v3266_v43  ;;  %vm3448_vm10 = vmor %vm1478_vm15, %vm1479_vm2 }
 0x37a   : > { %v1404_v40 = vand.u32 2147483648, %v3352_v53  ;;  %v1587_v34 = vmul.f32 %v1586_v22, %v3343_v32  ;;  %v1625_v35 = vmul.f32 %v1624_v0, %v3365_v44  ;;  %v3414_v47 = vmin.f32 %v1490_v26, 16.0 }
 0x37b   : > { %v1356_v45 = vmul.f32 %v3349_v10, %v1355_v55  ;;  %v1395_v31 = vsub.f32 1.0, %v1394_v28  ;;  %vm1399_vm6 = vweird.f32 %v2474_v17  ;;  %v1402_v50 = vand.u32 2147483647, %v3352_v53 }
 0x37c   : > { %v1441_v41 = vsel %vm3420_vm5, %v3333_v37, %v1437_v4  ;;  %v1588_v55 = vadd.f32 0.112945676, %v1587_v34  ;;  %v1626_v56 = vadd.f32 0.014752088, %v1625_v35  ;;  %v3433_v57 = vadd.f32 %v1265_v20, %v1215_v42 }
 0x37d   : > { %v1357_v27 = vadd.f32 %v3349_v10, %v1356_v45  ;;  %v1396_v23 = vmul.f32 %v2474_v17, %v1395_v31  ;;  %v1477_v58 = vadd.f32 %v3347_v33, %v1476_v29  ;;  %vm1398_vm7 = vweird.f32 %v3352_v53 }
 0x37e   : > { %vm1400_vm8 = vmor %vm1398_vm7, %vm1399_vm6  ;;  %v1405_v6 = vor.u32 1.1754944e-38, %v1404_v40  ;;  %v1572_v37 = vmul.f32 2.1237322e-06, %v3343_v32  ;;  %v1627_v63 = vmul.f32 %v1626_v56, %v3365_v44  ;;  %v1446_v11 = vsel %vm3387_vm14, %v1445_v9, %v1441_v41 }
 0x37f   : > { %v1361_v49 = vsel %vm3407_vm4, %v3349_v10, %v1357_v27  ;;  %v1397_v52 = vadd.f32 %v2474_v17, %v1396_v23  ;;  %v1503_v10 = vmul.f32 3.8918573e-05, %v3414_v47  ;;  %vm1403_vm9 = vcmp.eq.f32.partialorder %v1402_v50, 8.507059e+37 }
 0x380   : > { %v1366_v45 = vsel %vm3401_vm3, %v1365_v30, %v1361_v49  ;;  %v1589_v12 = vmul.f32 %v1588_v55, %v3343_v32  ;;  %v1628_v15 = vadd.f32 0.112945676, %v1627_v63  ;;  %v1492_v48 = vmul.f32 2.1237322e-06, %v3414_v47 }
 0x381   : > { %v1401_v42 = vsel %vm1400_vm8, %v2474_v17, %v1397_v52  ;;  %v1504_v19 = vadd.f32 0.001143296, %v1503_v10  ;;  %v1481_v9 = vsel %vm3448_vm10, %v3347_v33, %v1477_v58  ;;  %v1367_v16 = vmul.f32 %v1366_v45, %v1342_v36 }
 0x382   : > { %v1406_v2 = vsel %vm1403_vm9, %v1405_v6, %v1401_v42  ;;  %v1462_v0 = vmul.f32 %v3358_v24, %v3244_v46  ;;  %v1485_v26 = vor.u32 1.1754944e-38, %v1484_v61  ;;  %v1629_v27 = vmul.f32 %v1628_v15, %v3365_v44 }
 0x383   : > { %v1407_v17 = vmul.f32 %v1406_v2, %v1382_v62  ;;  %v1505_v18 = vmul.f32 %v1504_v19, %v3414_v47  ;;  %v3464_v28 = vmul.f32 0.70710677, %v3433_v57  ;;  %v1447_v4 = vmul.f32 %v1446_v11, %v3368_v8 }
 0x384   : > { %vm1483_vm11 = vcmp.eq.f32.partialorder %v1482_v60, 8.507059e+37  ;;  %v1573_v33 = vadd.f32 0.00028619796, %v1572_v37  ;;  %v1590_v22 = vadd.f32 0.4994258, %v1589_v12  ;;  %v2251_v24 = vclamps-f32 %v1367_v16, 1.0 }
 0x385   : > { %v1506_v36 = vadd.f32 0.014752088, %v1505_v18  ;;  %v1486_v54 = vsel %vm1483_vm11, %v1485_v26, %v1481_v9  ;;  %v1493_v29 = vadd.f32 0.00028619796, %v1492_v48  ;;  %v1530_v46 = vmul.f32 %v3464_v28, %v3464_v28 }
 0x386   : > { %v2252_v61 = vclamps-f32 %v1407_v17, 1.0  ;;  %v1630_v30 = vadd.f32 0.4994258, %v1629_v27  ;;  %v1612_v31 = vmul.f32 2.1237322e-06, %v3365_v44  ;;  %v1487_v20 = vmul.f32 %v1486_v54, %v1462_v0 }
 0x387   : > { %v1507_v62 = vmul.f32 %v1506_v36, %v3414_v47  ;;  %v1574_v8 = vmul.f32 %v1573_v33, %v3343_v32  ;;  %v1591_v14 = vmul.f32 %v1590_v22, %v3343_v32  ;;  %v1494_v60 = vmul.f32 %v1493_v29, %v3414_v47 }
 0x388   : > { %v3476_v40 = vmin.f32 %v1530_v46, 16.0  ;;  %v2253_v34 = vclamps-f32 %v1447_v4, 1.0  ;;  %v1650_v35 = vadd.f32 1.0, %v2251_v24  ;;  %v1651_v43 = vadd.f32 1.0, %v2252_v61 }
 0x389   : > { %v1508_v51 = vadd.f32 0.112945676, %v1507_v62  ;;  %v1631_v49 = vmul.f32 %v1630_v30, %v3365_v44  ;;  %v1613_v23 = vadd.f32 0.00028619796, %v1612_v31  ;;  %v1314_v56 = vmul.f32 0.5, %v3252_v39 }
 0x38a   : > { %v1532_v41 = vmul.f32 2.1237322e-06, %v3476_v40  ;;  %v1543_v55 = vmul.f32 3.8918573e-05, %v3476_v40  ;;  %v1315_v58 = vmul.f32 0.5, %v3256_v7  ;;  %v2254_v10 = vclamps-f32 %v1487_v20, 1.0 }
 0x38b   : > { %v1509_v50 = vmul.f32 %v1508_v51, %v3414_v47  ;;  %v1575_v52 = vadd.f32 0.0036580483, %v1574_v8  ;;  %v3484_v45 = vadd.f32 1.0, %v1591_v14  ;;  %v1495_v6 = vadd.f32 0.0036580483, %v1494_v60 }
 0x38c   : > { %v3486_v63 = vmul.f32 %v1650_v35, %v1314_v56  ;;  %v3488_v11 = vmul.f32 %v1651_v43, %v1315_v58  ;;  %v3490_v42 = vadd.f32 1.0, %v1631_v49  ;;  %v1533_v19 = vadd.f32 0.00028619796, %v1532_v41 }
 0x38d   : > { %v1510_v37 = vadd.f32 0.4994258, %v1509_v50  ;;  %v1652_v53 = vadd.f32 1.0, %v2253_v34  ;;  %v1614_v2 = vmul.f32 %v1613_v23, %v3365_v44  ;;  %v1544_v12 = vadd.f32 0.001143296, %v1543_v55 }
 0x38e   : > { %v1316_v7 = vmul.f32 0.5, %v3232_v3  ;;  %v1576_v15 = vmul.f32 %v1575_v52, %v3343_v32  ;;  %2475 = vrcp.f32 %v3484_v45  ;;  %v1496_v48 = vmul.f32 %v1495_v6, %v3414_v47 }
 0x38f   : > { %v1511_v39 = vmul.f32 %v1510_v37, %v3414_v47  ;;  %v1545_v16 = vmul.f32 %v1544_v12, %v3476_v40  ;;  %v1653_v17 = vadd.f32 1.0, %v2254_v10  ;;  %2477 = vrcp.f32 %v3490_v42 }
 0x390   : > { %v1534_v18 = vmul.f32 %v1533_v19, %v3476_v40  ;;  %v1666_v0 = vadd.f32 %v3488_v11, %v3486_v63  ;;  %v3505_v26 = vmul.f32 %v1652_v53, %v1316_v7  ;;  %v1615_v3 = vadd.f32 0.0036580483, %v1614_v2 }
 0x391   : > { %v3498_v9 = vadd.f32 1.0, %v1511_v39  ;;  %v1317_v27 = vmul.f32 0.5, %v3236_v21  ;;  %v1577_v4 = vadd.f32 0.05243302, %v1576_v15  ;;  %v1497_v33 = vadd.f32 0.05243302, %v1496_v48 }
 0x392   : > { %v1546_v36 = vadd.f32 0.014752088, %v1545_v16  ;;  %v1667_v54 = vadd.f32 %v1666_v0, %v3505_v26  ;;  %v1535_v29 = vadd.f32 0.0036580483, %v1534_v18  ;;  %v1616_v24 = vmul.f32 %v1615_v3, %v3365_v44 }
 0x393   : > { %2479 = vrcp.f32 %v3498_v9  ;;  %v3510_v22 = vmul.f32 %v1653_v17, %v1317_v27  ;;  %v1578_v21 = vmul.f32 %v1577_v4, %v3343_v32  ;;  %v1498_v20 = vmul.f32 %v1497_v33, %v3414_v47 }
 0x394   : > { %v3512_v46 = vpop.eup %2475  ;;  %v1547_v61 = vmul.f32 %v1546_v36, %v3476_v40  ;;  %v1536_v51 = vmul.f32 %v1535_v29, %v3476_v40  ;;  %v1617_v34 = vadd.f32 0.05243302, %v1616_v24  ;;  %v1524_v15 = vand.u32 2147483648, %v3498_v9 }
 0x395   : > { %v3516_v30 = vpop.eup %2477  ;;  %v1668_v62 = vadd.f32 %v1667_v54, %v3510_v22  ;;  %v1594_v14 = vmul.f32 %v3512_v46, %v3484_v45  ;;  %v1579_v23 = vadd.f32 0.18741608, %v1578_v21  ;;  %v1499_v50 = vadd.f32 0.18741608, %v1498_v20 }
 0x396   : > { %v1548_v8 = vadd.f32 0.112945676, %v1547_v61  ;;  %v1634_v43 = vmul.f32 %v3516_v30, %v3490_v42  ;;  %v1537_v58 = vadd.f32 0.05243302, %v1536_v51  ;;  %v1618_v52 = vmul.f32 %v1617_v34, %v3365_v44 }
 0x397   : > { %1669 = vadd.xlane.f32.xlu2 %v1668_v62  ;;  %v1595_v55 = vsub.f32 1.0, %v1594_v14  ;;  %v1580_v37 = vmul.f32 %v1579_v23, %v3343_v32  ;;  %v1500_v19 = vmul.f32 %v1499_v50, %v3414_v47  ;;  %vm1518_vm13 = vweird.f32 %v3498_v9 }
 0x398   : > { %v1549_v35 = vmul.f32 %v1548_v8, %v3476_v40  ;;  %v1635_v6 = vsub.f32 1.0, %v1634_v43  ;;  %v1538_v12 = vmul.f32 %v1537_v58, %v3476_v40  ;;  %v1619_v7 = vadd.f32 0.18741608, %v1618_v52 }
 0x399   : > { %v2480_v31 = vpop.eup %2479  ;;  %v1596_v2 = vmul.f32 %v3512_v46, %v1595_v55  ;;  %v1522_v32 = vand.u32 2147483647, %v3498_v9  ;;  %v1581_v47 = vadd.f32 1.1283791, %v1580_v37  ;;  %vm1599_vm14 = vweird.f32 %v3512_v46 }
 0x39a   : > { %v1514_v60 = vmul.f32 %v2480_v31, %v3498_v9  ;;  %v1550_v41 = vadd.f32 0.4994258, %v1549_v35  ;;  %vm1519_vm12 = vweird.f32 %v2480_v31  ;;  %v1636_v48 = vmul.f32 %v3516_v30, %v1635_v6 }
 0x39b   : > { %vm3542_vm15 = vmor %vm1518_vm13, %vm1519_vm12  ;;  %v1597_v17 = vadd.f32 %v3512_v46, %v1596_v2  ;;  %v1501_v18 = vadd.f32 1.1283791, %v1500_v19  ;;  %v1539_v3 = vadd.f32 0.18741608, %v1538_v12  ;;  %vm1598_vm0 = vweird.f32 %v3484_v45 }
 0x39c   : > { %v1515_v49 = vsub.f32 1.0, %v1514_v60  ;;  %v1551_v10 = vmul.f32 %v1550_v41, %v3476_v40  ;;  %v1604_v27 = vand.u32 2147483648, %v3484_v45  ;;  %v1620_v9 = vmul.f32 %v1619_v7, %v3365_v44  ;;  %vm3557_vm3 = vmor %vm1598_vm0, %vm1599_vm14 }
 0x39d   : > { %v1525_v4 = vor.u32 1.1754944e-38, %v1524_v15  ;;  %v1602_v33 = vand.u32 2147483647, %v3484_v45  ;;  %v1637_v36 = vadd.f32 %v3516_v30, %v1636_v48  ;;  %vm1639_vm1 = vweird.f32 %v3516_v30 }
 0x39e   : > { %v1516_v56 = vmul.f32 %v2480_v31, %v1515_v49  ;;  %v3532_v53 = vadd.f32 1.0, %v1551_v10  ;;  %vm1523_vm2 = vcmp.eq.f32.partialorder %v1522_v32, 8.507059e+37  ;;  %vm1638_vm4 = vweird.f32 %v3490_v42 }
 0x39f   : > { %v1642_v24 = vand.u32 2147483647, %v3490_v42  ;;  %v1644_v44 = vand.u32 2147483648, %v3490_v42  ;;  %v1601_v45 = vsel %vm3557_vm3, %v3512_v46, %v1597_v17  ;;  %v1502_v62 = vmul.f32 %v1501_v18, %v3376_v59  ;;  %vm1640_vm5 = vmor %vm1638_vm4, %vm1639_vm1 }
 0x3a0   : > { %v1517_v39 = vadd.f32 %v2480_v31, %v1516_v56  ;;  %2481 = vrcp.f32 %v3532_v53  ;;  %v1582_v20 = vmul.f32 %v1581_v47, %v3326_v1  ;;  %v1605_v8 = vor.u32 1.1754944e-38, %v1604_v27 }
 0x3a1   : > { %v1621_v14 = vadd.f32 1.1283791, %v1620_v9  ;;  %vm1603_vm6 = vcmp.eq.f32.partialorder %v1602_v33, 8.507059e+37  ;;  %v1641_v42 = vsel %vm1640_vm5, %v3516_v30, %v1637_v36  ;;  %vm1643_vm7 = vcmp.eq.f32.partialorder %v1642_v24, 8.507059e+37 }
 0x3a2   : > { %v1521_v0 = vsel %vm3542_vm15, %v2480_v31, %v1517_v39  ;;  %v1540_v31 = vmul.f32 %v1539_v3, %v3476_v40  ;;  %v1606_v34 = vsel %vm1603_vm6, %v1605_v8, %v1601_v45  ;;  %v1645_v46 = vor.u32 1.1754944e-38, %v1644_v44 }
 0x3a3   : > { %v1526_v61 = vsel %vm1523_vm2, %v1525_v4, %v1521_v0  ;;  %v1564_v59 = vand.u32 2147483648, %v3532_v53  ;;  %v1562_v1 = vand.u32 2147483647, %v3532_v53  ;;  %v1622_v43 = vmul.f32 %v1621_v14, %v3331_v25 }
 0x3a4   : > { %v1527_v60 = vmul.f32 %v1526_v61, %v1502_v62  ;;  %v1541_v40 = vadd.f32 1.1283791, %v1540_v31  ;;  %v1646_v49 = vsel %vm1643_vm7, %v1645_v46, %v1641_v42  ;;  %v1607_v23 = vmul.f32 %v1606_v34, %v1582_v20 }
 0x3a5   : > { %vm1558_vm9 = vweird.f32 %v3532_v53  ;;  %v1565_v30 = vor.u32 1.1754944e-38, %v1564_v59  ;;  %v1647_v55 = vmul.f32 %v1646_v49, %v1622_v43  ;;  %vm1563_vm11 = vcmp.eq.f32.partialorder %v1562_v1, 8.507059e+37 }
 0x3a6   : > { %v2482_v54 = vpop.eup %2481  ;;  %v2255_v50 = vclamps-f32 %v1527_v60, 1.0  ;;  %v1542_v56 = vmul.f32 %v1541_v40, %v3464_v28  ;;  %v2257_v10 = vclamps-f32 %v1607_v23, 1.0  ;;  %v1318_v25 = vmul.f32 0.5, %v3356_v38 }
 0x3a7   : > { %v1554_v21 = vmul.f32 %v2482_v54, %v3532_v53  ;;  %vm1559_vm8 = vweird.f32 %v2482_v54  ;;  %v2258_v19 = vclamps-f32 %v1647_v55, 1.0  ;;  %v1319_v53 = vmul.f32 0.5, %v3433_v57 }
 0x3a8   : > { %vm1560_vm10 = vmor %vm1558_vm9, %vm1559_vm8  ;;  %v1654_v6 = vadd.f32 1.0, %v2255_v50  ;;  %v1656_v39 = vadd.f32 1.0, %v2257_v10  ;;  %v1320_v15 = vmul.f32 0.5, %v3310_v13  ;;  %v1321_v47 = vmul.f32 0.5, %v3319_v5 }
 0x3a9   : > { %v1555_v51 = vsub.f32 1.0, %v1554_v21  ;;  %v1657_v48 = vadd.f32 1.0, %v2258_v19  ;;  %v2809_v57 = vmov 512.0   ;;  %v2810_v23 = vmov 511.0   ;;  %v1943_v19 = vld [vmem:[#allocation10 + $0x78] sm:$0xff] }
 0x3aa   : > { %v3580_v12 = vmul.f32 %v1654_v6, %v1318_v25  ;;  %v3586_v32 = vmul.f32 %v1656_v39, %v1320_v15  ;;  %2483 = vrcp.f32 %v2809_v57  ;;  %v1959_v25 = vld [vmem:[#allocation10 + $0xf8] sm:$0xff]  ;;  %1996 = vmatpush.msrb.mxu2 %v1943_v19  ;;  %v1940_v57 = vld [vmem:[#allocation10 + $0x60] sm:$0xff] }
 0x3ab   : > { %v1556_v35 = vmul.f32 %v2482_v54, %v1555_v51  ;;  %v3591_v38 = vmul.f32 %v1657_v48, %v1321_v47  ;;  %2485 = vrcp.f32 %v2810_v23  ;;  %2019 = vmatpush.msrb.mxu3 %v1959_v25  ;;  %v1941_v48 = vld [vmem:[#allocation10 + $0x68] sm:$0xff]  ;;  %v3660_v19 = vld [vmem:[#allocation10 + $0x1d8] sm:$0xff] }
 0x3ac   : > { %v1957_v47 = vld [vmem:[#allocation10 + $0xe8] sm:$0xff] }
 0x3ad   : > { %v1557_v41 = vadd.f32 %v2482_v54, %v1556_v35  ;;  %v1933_v25 = vld [vmem:[#allocation10 + $0x28] sm:$0xff] }
 0x3af   : > { %v1561_v58 = vsel %vm1560_vm10, %v2482_v54, %v1557_v41 }
 0x3b0   : > { %v1566_v52 = vsel %vm1563_vm11, %v1565_v30, %v1561_v58  ;;  %v2484_v13 = vpop.eup %2483 }
 0x3b1   : > { %v1567_v37 = vmul.f32 %v1566_v52, %v1542_v56  ;;  %v1677_v0 = vmul.f32 512.0, %v2484_v13  ;;  %vm1681_vm12 = vweird.f32 %v2484_v13  ;;  %v2486_v50 = vpop.eup %2485 }
 0x3b2   : > { %v1712_v41 = vmul.f32 511.0, %v2486_v50  ;;  %vm1716_vm13 = vweird.f32 %v2486_v50 }
 0x3b3   : > { %v2256_v2 = vclamps-f32 %v1567_v37, 1.0  ;;  %v1678_v3 = vsub.f32 1.0, %v1677_v0 }
 0x3b4   : > { %v1713_v30 = vsub.f32 1.0, %v1712_v41 }
 0x3b5   : > { %v1655_v7 = vadd.f32 1.0, %v2256_v2  ;;  %v1679_v27 = vmul.f32 %v2484_v13, %v1678_v3  ;;  %v1939_v3 = vld [vmem:[#allocation10 + $0x58] sm:$0xff] }
 0x3b6   : > { %v1714_v55 = vmul.f32 %v2486_v50, %v1713_v30  ;;  %v1935_v30 = vld [vmem:[#allocation10 + $0x38] sm:$0xff] }
 0x3b7   : > { %v3584_v28 = vmul.f32 %v1655_v7, %v1319_v53  ;;  %v1680_v9 = vadd.f32 %v2484_v13, %v1679_v27  ;;  %v1942_v53 = vld [vmem:[#allocation10 + $0x70] sm:$0xff]  ;;  %v1955_v27 = vld [vmem:[#allocation10 + $0xd8] sm:$0xff] }
 0x3b8   : > { %v1715_v56 = vadd.f32 %v2486_v50, %v1714_v55  ;;  %v1958_v7 = vld [vmem:[#allocation10 + $0xf0] sm:$0xff]  ;;  %1997 = vmatpush.msrb.mxu2 %v1942_v53  ;;  %v1951_v55 = vld [vmem:[#allocation10 + $0xb8] sm:$0xff] }
 0x3b9   : > { %v1671_v16 = vadd.f32 %v3584_v28, %v3580_v12  ;;  %v1682_v4 = vsel %vm1681_vm12, %v2484_v13, %v1680_v9  ;;  %2020 = vmatpush.msrb.mxu3 %v1958_v7  ;;  %v1956_v13 = vld [vmem:[#allocation10 + $0xe0] sm:$0xff]  ;;  %v3666_v53 = vld [vmem:[#allocation10 + $0x1d0] sm:$0xff] }
 0x3ba   : > { %v3627_v58 = vsel %vm1716_vm13, %v2486_v50, %v1715_v56  ;;  %1998 = vmatpush.msrb.mxu2 %v1941_v48  ;;  %v3652_v56 = vld [vmem:[#allocation10 + $0x160] sm:$0xff]  ;;  %v3670_v48 = vld [vmem:[#allocation10 + $0x148] sm:$0xff] }
 0x3bb   : > { %v1672_v17 = vadd.f32 %v1671_v16, %v3586_v32  ;;  %2021 = vmatpush.msrb.mxu3 %v1957_v47  ;;  %v1932_v7 = vld [vmem:[#allocation10 + $0x20] sm:$0xff]  ;;  %v3672_v47 = vld [vmem:[#allocation10 + $0x1c8] sm:$0xff] }
 0x3bc   : > { %1999 = vmatpush.msrb.mxu2 %v1940_v57 }
 0x3bd   : > { %v1673_v18 = vadd.f32 %v1672_v17, %v3591_v38  ;;  %2022 = vmatpush.msrb.mxu3 %v1956_v13  ;;  %v3676_v13 = vld [vmem:[#allocation10 + $0x140] sm:$0xff] }
 0x3be   : > { %2000 = vmatpush.msrb.mxu2 %v1939_v3 }
 0x3bf   : > { %1674 = vadd.xlane.f32.xlu0 %v1673_v18  ;;  %2023 = vmatpush.msrb.mxu3 %v1955_v27 }
 0x40a   : > { %v1670_v5 = vpop.xlane.xlu2 %1669 }
 0x40b   : > { %v1683_v33 = vmul.f32 %v1682_v4, %v1670_v5  ;;  %v1938_v5 = vld [vmem:[#allocation10 + $0x50] sm:$0xff] }
 0x40c   : > { %2001 = vmatpush.msrb.mxu2 %v1938_v5 }
 0x40d   : > { %v1685_v36 = vsub.f32 %v3486_v63, %v1683_v33  ;;  %v1686_v54 = vsub.f32 %v3488_v11, %v1683_v33  ;;  %v1687_v29 = vsub.f32 %v3505_v26, %v1683_v33  ;;  %v1688_v24 = vsub.f32 %v3510_v22, %v1683_v33  ;;  %v1954_v33 = vld [vmem:[#allocation10 + $0xd0] sm:$0xff] }
 0x40e   : > { %2024 = vmatpush.msrb.mxu3 %v1954_v33 }
 0x40f   : > { %v3599_v44 = vmul.f32 %v1685_v36, %v1685_v36  ;;  %v3601_v61 = vmul.f32 %v1686_v54, %v1686_v54  ;;  %v3603_v45 = vmul.f32 %v1687_v29, %v1687_v29  ;;  %v3607_v31 = vmul.f32 %v1688_v24, %v1688_v24  ;;  %v3630_v54 = vld [vmem:[#allocation10 + $0x178] sm:$0xff] }
 0x410   : > { %v3632_v29 = vld [vmem:[#allocation10 + $0x1f8] sm:$0xff]  ;;  %2042 = vmatpush.msra.mxu0 %v3630_v54 }
 0x411   : > { %v1701_v62 = vadd.f32 %v3601_v61, %v3599_v44  ;;  %2065 = vmatpush.msra.mxu1 %v3632_v29 }
 0x413   : > { %v1702_v21 = vadd.f32 %v1701_v62, %v3603_v45 }
 0x415   : > { %v1703_v20 = vadd.f32 %v1702_v21, %v3607_v31 }
 0x417   : > { %1704 = vadd.xlane.f32.xlu1 %v1703_v20 }
 0x432   : > { %v1675_v8 = vpop.xlane.xlu0 %1674 }
 0x433   : > { %v1684_v14 = vmul.f32 %v1682_v4, %v1675_v8  ;;  %v1937_v8 = vld [vmem:[#allocation10 + $0x48] sm:$0xff] }
 0x434   : > { %2002 = vmatpush.msrb.mxu2 %v1937_v8  ;;  %v1945_v8 = vld [vmem:[#allocation10 + $0x88] sm:$0xff] }
 0x435   : > { %v1689_v42 = vsub.f32 %v3580_v12, %v1684_v14  ;;  %v1690_v60 = vsub.f32 %v3584_v28, %v1684_v14  ;;  %v1691_v51 = vsub.f32 %v3586_v32, %v1684_v14  ;;  %v1692_v34 = vsub.f32 %v3591_v38, %v1684_v14  ;;  %v1953_v14 = vld [vmem:[#allocation10 + $0xc8] sm:$0xff] }
 0x436   : > { %2025 = vmatpush.msrb.mxu3 %v1953_v14  ;;  %v3693_v14 = vld [vmem:[#allocation10 + $0x130] sm:$0xff] }
 0x437   : > { %v3615_v46 = vmul.f32 %v1689_v42, %v1689_v42  ;;  %v3617_v59 = vmul.f32 %v1690_v60, %v1690_v60  ;;  %v3619_v40 = vmul.f32 %v1691_v51, %v1691_v51  ;;  %v3623_v1 = vmul.f32 %v1692_v34, %v1692_v34  ;;  %v3640_v42 = vld [vmem:[#allocation10 + $0x170] sm:$0xff] }
 0x438   : > { %v3642_v60 = vld [vmem:[#allocation10 + $0x1f0] sm:$0xff]  ;;  %2043 = vmatpush.msra.mxu0 %v3640_v42 }
 0x439   : > { %v1706_v35 = vadd.f32 %v3617_v59, %v3615_v46  ;;  %2066 = vmatpush.msra.mxu1 %v3642_v60 }
 0x43b   : > { %v1707_v43 = vadd.f32 %v1706_v35, %v3619_v40 }
 0x43d   : > { %v1708_v49 = vadd.f32 %v1707_v43, %v3623_v1  ;;  %v3648_v43 = vld [vmem:[#allocation10 + $0x1e8] sm:$0xff] }
 0x43e   : > { %2067 = vmatpush.msra.mxu1 %v3648_v43 }
 0x43f   : > { %1709 = vadd.xlane.f32.xlu2 %v1708_v49 }
 0x48a   : > { %v1705_v52 = vpop.xlane.xlu1 %1704 }
 0x48b   : > { %v1718_v10 = vmul.f32 %v3627_v58, %v1705_v52  ;;  %v3654_v52 = vld [vmem:[#allocation10 + $0x1e0] sm:$0xff] }
 0x48c   : > { %2068 = vmatpush.msra.mxu1 %v3654_v52 }
 0x48d   : > { %v1720_v6 = vadd.f32 0.0001, %v1718_v10  ;;  %v1934_v10 = vld [vmem:[#allocation10 + $0x30] sm:$0xff] }
 0x48e   : > { %2069 = vmatpush.msra.mxu1 %v3660_v19 }
 0x48f   : > { %v1722_v37 = vmul.f32 4.0, %v1720_v6  ;;  %v1950_v6 = vld [vmem:[#allocation10 + $0xb0] sm:$0xff] }
 0x490   : > { %2070 = vmatpush.msra.mxu1 %v3666_v53 }
 0x491   : > { %2487 = vrcp.f32 %v1722_v37  ;;  %v1735_v16 = vand.u32 2147483648, %v1722_v37  ;;  %v1733_v18 = vand.u32 2147483647, %v1722_v37  ;;  %vm1729_vm15 = vweird.f32 %v1722_v37 }
 0x492   : > { %2071 = vmatpush.msra.mxu1 %v3672_v47 }
 0x493   : > { %v1736_v9 = vor.u32 1.1754944e-38, %v1735_v16  ;;  %vm1734_vm1 = vcmp.eq.f32.partialorder %v1733_v18, 8.507059e+37  ;;  %v1947_v18 = vld [vmem:[#allocation10 + $0x98] sm:$0xff] }
 0x497   : > { %v2488_v2 = vpop.eup %2487 }
 0x498   : > { %v1725_v39 = vmul.f32 %v2488_v2, %v1722_v37  ;;  %vm1730_vm14 = vweird.f32 %v2488_v2  ;;  %v3658_v37 = vld [vmem:[#allocation10 + $0x158] sm:$0xff] }
 0x499   : > { %vm1731_vm0 = vmor %vm1729_vm15, %vm1730_vm14 }
 0x49a   : > { %v1726_v15 = vsub.f32 1.0, %v1725_v39  ;;  %v3664_v39 = vld [vmem:[#allocation10 + $0x150] sm:$0xff] }
 0x49c   : > { %v1727_v17 = vmul.f32 %v2488_v2, %v1726_v15  ;;  %v1948_v15 = vld [vmem:[#allocation10 + $0xa0] sm:$0xff] }
 0x49e   : > { %v1728_v0 = vadd.f32 %v2488_v2, %v1727_v17  ;;  %v1931_v17 = vld [vmem:[#allocation10 + $0x18] sm:$0xff] }
 0x4a0   : > { %v1732_v4 = vsel %vm1731_vm0, %v2488_v2, %v1728_v0  ;;  %v1949_v2 = vld [vmem:[#allocation10 + $0xa8] sm:$0xff]  ;;  %v3678_v0 = vld [vmem:[#allocation10 + $0x1c0] sm:$0xff] }
 0x4a1   : > { %v1737_v36 = vsel %vm1734_vm1, %v1736_v9, %v1732_v4  ;;  %v1930_v9 = vld [vmem:[#allocation10 + $0x10] sm:$0xff]  ;;  %2072 = vmatpush.msra.mxu1 %v3678_v0 }
 0x4a2   : > { %v1738_v24 = vmul.f32 %v1737_v36, %v3599_v44  ;;  %v1739_v62 = vmul.f32 %v1737_v36, %v3601_v61  ;;  %v1740_v21 = vmul.f32 %v1737_v36, %v3603_v45  ;;  %v1741_v20 = vmul.f32 %v1737_v36, %v3607_v31  ;;  %v1936_v61 = vld [vmem:[#allocation10 + $0x40] sm:$0xff]  ;;  %v3646_v31 = vld [vmem:[#allocation10 + $0x168] sm:$0xff]  ;;  %v1946_v4 = vld [vmem:[#allocation10 + $0x90] sm:$0xff] }
 0x4a3   : > { %v1952_v45 = vld [vmem:[#allocation10 + $0xc0] sm:$0xff]  ;;  %2003 = vmatpush.msrb.mxu2 %v1936_v61  ;;  %2044 = vmatpush.msra.mxu0 %v3646_v31  ;;  %v3686_v36 = vld [vmem:[#allocation10 + $0x138] sm:$0xff] }
 0x4a4   : > { %v1760_v51 = vadd.f32 0.5, %v1738_v24  ;;  %v1761_v34 = vadd.f32 0.5, %v1739_v62  ;;  %v1762_v44 = vadd.f32 0.5, %v1740_v21  ;;  %v1763_v35 = vadd.f32 0.5, %v1741_v20  ;;  %2026 = vmatpush.msrb.mxu3 %v1952_v45  ;;  %v3688_v24 = vld [vmem:[#allocation10 + $0x1b8] sm:$0xff]  ;;  %v1929_v62 = vld [vmem:[#allocation10 + $0x8] sm:$0xff] }
 0x4a5   : > { %2004 = vmatpush.msrb.mxu2 %v1935_v30  ;;  %2045 = vmatpush.msra.mxu0 %v3652_v56  ;;  %v1944_v61 = vld [vmem:[#allocation10 + $0x80] sm:$0xff]  ;;  %v3704_v45 = vld [vmem:[#allocation10 + $0x128] sm:$0xff] }
 0x4a6   : > { %v2259_v49 = vmul.f32 -1.442695, %v1760_v51  ;;  %v2260_v23 = vmul.f32 -1.442695, %v1761_v34  ;;  %v2261_v50 = vmul.f32 -1.442695, %v1762_v44  ;;  %2027 = vmatpush.msrb.mxu3 %v1951_v55  ;;  %2073 = vmatpush.msra.mxu1 %v3688_v24 }
 0x4a7   : > { %v2262_v41 = vmul.f32 -1.442695, %v1763_v35  ;;  %2005 = vmatpush.msrb.mxu2 %v1934_v10  ;;  %2046 = vmatpush.msra.mxu0 %v3658_v37  ;;  %v3695_v51 = vld [vmem:[#allocation10 + $0x1b0] sm:$0xff]  ;;  %v1928_v35 = vld [vmem:[#allocation10] sm:$0xff] }
 0x4a8   : > { %2489 = vpow2.f32 %v2261_v50  ;;  %2028 = vmatpush.msrb.mxu3 %v1950_v6  ;;  %2074 = vmatpush.msra.mxu1 %v3695_v51  ;;  %v3722_v6 = vld [vmem:[#allocation10 + $0x1a0] sm:$0xff] }
 0x4a9   : > { %2491 = vpow2.f32 %v2262_v41  ;;  %2006 = vmatpush.msrb.mxu2 %v1933_v25  ;;  %2047 = vmatpush.msra.mxu0 %v3664_v39 }
 0x4aa   : > { %2493 = vpow2.f32 %v2259_v49  ;;  %2029 = vmatpush.msrb.mxu3 %v1949_v2 }
 0x4ab   : > { %2495 = vpow2.f32 %v2260_v23  ;;  %2007 = vmatpush.msrb.mxu2 %v1932_v7  ;;  %2048 = vmatpush.msra.mxu0 %v3670_v48  ;;  %v3711_v23 = vld [vmem:[#allocation10 + $0x120] sm:$0xff] }
 0x4ac   : > { %2030 = vmatpush.msrb.mxu3 %v1948_v15  ;;  %v3730_v15 = vld [vmem:[#allocation10 + $0x118] sm:$0xff] }
 0x4ad   : > { %2008 = vmatpush.msrb.mxu2 %v1931_v17  ;;  %2049 = vmatpush.msra.mxu0 %v3676_v13  ;;  %v3740_v17 = vld [vmem:[#allocation10 + $0x198] sm:$0xff] }
 0x4ae   : > { %v2490_v16 = vpop.eup %2489  ;;  %2031 = vmatpush.msrb.mxu3 %v1947_v18  ;;  %v3749_v18 = vld [vmem:[#allocation10 + $0x110] sm:$0xff] }
 0x4af   : > { %v2492_v57 = vpop.eup %2491  ;;  %v3680_v3 = vadd.f32 1.0, %v2490_v16  ;;  %2009 = vmatpush.msrb.mxu2 %v1930_v9  ;;  %2050 = vmatpush.msra.mxu0 %v3686_v36 }
 0x4b0   : > { %v2494_v27 = vpop.eup %2493  ;;  %v3682_v5 = vadd.f32 1.0, %v2492_v57  ;;  %2032 = vmatpush.msrb.mxu3 %v1946_v4 }
 0x4b1   : > { %v2496_v33 = vpop.eup %2495  ;;  %v3690_v21 = vadd.f32 1.0, %v2494_v27  ;;  %2497 = vrcp.f32 %v3680_v3  ;;  %2010 = vmatpush.msrb.mxu2 %v1929_v62  ;;  %2051 = vmatpush.msra.mxu0 %v3693_v14  ;;  %v1839_v30 = vand.u32 2147483647, %v3680_v3  ;;  %v1841_v2 = vand.u32 2147483648, %v3680_v3 }
 0x4b2   : > { %v1710_v20 = vpop.xlane.xlu2 %1709  ;;  %v3697_v34 = vadd.f32 1.0, %v2496_v33  ;;  %2499 = vrcp.f32 %v3682_v5  ;;  %2033 = vmatpush.msrb.mxu3 %v1945_v8  ;;  %vm1835_vm2 = vweird.f32 %v3680_v3  ;;  %vm1850_vm5 = vweird.f32 %v3682_v5 }
 0x4b3   : > { %v1719_v44 = vmul.f32 %v3627_v58, %v1710_v20  ;;  %2501 = vrcp.f32 %v3690_v21  ;;  %v3709_v58 = vld [vmem:[#allocation10 + $0x1a8] sm:$0xff]  ;;  %2011 = vmatpush.msrb.mxu2 %v1928_v35  ;;  %v1809_v50 = vand.u32 2147483647, %v3690_v21  ;;  %v1811_v41 = vand.u32 2147483648, %v3690_v21  ;;  %2052 = vmatpush.msra.mxu0 %v3704_v45 }
 0x4b4   : > { %2503 = vrcp.f32 %v3697_v34  ;;  %2034 = vmatpush.msrb.mxu3 %v1944_v61  ;;  %v1824_v25 = vand.u32 2147483647, %v3697_v34  ;;  %2075 = vmatpush.msra.mxu1 %v3709_v58  ;;  %vm1805_vm3 = vweird.f32 %v3690_v21  ;;  %vm1820_vm4 = vweird.f32 %v3697_v34 }
 0x4b5   : > { %v1721_v49 = vadd.f32 0.0001, %v1719_v44  ;;  %2274 = vmatpush.msra.mxu2 %v3630_v54  ;;  %2053 = vmatpush.msra.mxu0 %v3711_v23  ;;  %vm3753_vm6 = vcmp.eq.f32.partialorder %v1809_v50, 8.507059e+37  ;;  %v3757_v27 = vor.u32 1.1754944e-38, %v1811_v41  ;;  %v1826_v20 = vand.u32 2147483648, %v3697_v34  ;;  %v3784_v50 = vld [vmem:[#allocation10 + $0x188] sm:$0xff] }
 0x4b6   : > { %2290 = vmatpush.msra.mxu3 %v3632_v29  ;;  %2076 = vmatpush.msra.mxu1 %v3722_v6  ;;  %vm3767_vm7 = vcmp.eq.f32.partialorder %v1824_v25, 8.507059e+37  ;;  %vm3772_vm8 = vcmp.eq.f32.partialorder %v1839_v30, 8.507059e+37  ;;  %v1842_v44 = vor.u32 1.1754944e-38, %v1841_v2  ;;  %v1856_v30 = vand.u32 2147483648, %v3682_v5  ;;  %v3791_v25 = vld [vmem:[#allocation10 + $0x100] sm:$0xff] }
 0x4b7   : > { %v3716_v55 = vpop.eup %2497  ;;  %v3718_v10 = vmul.f32 4.0, %v1721_v49  ;;  %2275 = vmatpush.msra.mxu2 %v3640_v42  ;;  %2054 = vmatpush.msra.mxu0 %v3730_v15 }
 0x4b8   : > { %v3726_v7 = vpop.eup %2499  ;;  %v1831_v16 = vmul.f32 %v3716_v55, %v3680_v3  ;;  %2291 = vmatpush.msra.mxu3 %v3642_v60  ;;  %v3763_v60 = vld [vmem:[#allocation10 + $0x190] sm:$0xff]  ;;  %2077 = vmatpush.msra.mxu1 %v3740_v17  ;;  %vm1836_vm9 = vweird.f32 %v3716_v55  ;;  %v1857_v8 = vor.u32 1.1754944e-38, %v1856_v30 }
 0x4b9   : > { %v3735_v54 = vpop.eup %2501  ;;  %2505 = vrcp.f32 %v3718_v10  ;;  %v1846_v4 = vmul.f32 %v3726_v7, %v3682_v5  ;;  %2276 = vmatpush.msra.mxu2 %v3646_v31  ;;  %v3778_v31 = vld [vmem:[#allocation10 + $0x108] sm:$0xff]  ;;  %2055 = vmatpush.msra.mxu0 %v3749_v18  ;;  %vm1837_vm12 = vmor %vm1835_vm2, %vm1836_vm9  ;;  %vm1851_vm13 = vweird.f32 %v3726_v7 }
 0x4ba   : > { %v3745_v29 = vpop.eup %2503  ;;  %v1801_v42 = vmul.f32 %v3735_v54, %v3690_v21  ;;  %v1832_v9 = vsub.f32 1.0, %v1831_v16  ;;  %2292 = vmatpush.msra.mxu3 %v3648_v43  ;;  %vm1806_vm10 = vweird.f32 %v3735_v54  ;;  %v1854_v43 = vand.u32 2147483647, %v3682_v5  ;;  %2078 = vmatpush.msra.mxu1 %v3763_v60  ;;  %vm1852_vm1 = vmor %vm1850_vm5, %vm1851_vm13 }
 0x4bb   : > { %v1816_v33 = vmul.f32 %v3745_v29, %v3697_v34  ;;  %v1847_v49 = vsub.f32 1.0, %v1846_v4  ;;  %2277 = vmatpush.msra.mxu2 %v3652_v56  ;;  %vm1821_vm11 = vweird.f32 %v3745_v29  ;;  %2056 = vmatpush.msra.mxu0 %v3778_v31  ;;  %vm3817_vm14 = vmor %vm1805_vm3, %vm1806_vm10  ;;  %vm1747_vm3 = vweird.f32 %v3718_v10 }
 0x4bc   : > { %v1802_v35 = vsub.f32 1.0, %v1801_v42  ;;  %v1833_v61 = vmul.f32 %v3716_v55, %v1832_v9  ;;  %2293 = vmatpush.msra.mxu3 %v3654_v52  ;;  %v1751_v9 = vand.u32 2147483647, %v3718_v10  ;;  %v3800_v52 = vld [vmem:[#allocation10 + $0x180] sm:$0xff]  ;;  %2079 = vmatpush.msra.mxu1 %v3784_v50  ;;  %vm3829_vm15 = vmor %vm1820_vm4, %vm1821_vm11  ;;  %vm3836_vm0 = vcmp.eq.f32.partialorder %v1854_v43, 8.507059e+37 }
 0x4bd   : > { %v1817_v41 = vsub.f32 1.0, %v1816_v33  ;;  %v1848_v16 = vmul.f32 %v3726_v7, %v1847_v49  ;;  %2278 = vmatpush.msra.mxu2 %v3658_v37  ;;  %v1827_v33 = vor.u32 1.1754944e-38, %v1826_v20  ;;  %2057 = vmatpush.msra.mxu0 %v3791_v25 }
 0x4be   : > { %v1803_v2 = vmul.f32 %v3735_v54, %v1802_v35  ;;  %v1834_v56 = vadd.f32 %v3716_v55, %v1833_v61  ;;  %v1753_v61 = vand.u32 2147483648, %v3718_v10  ;;  %2294 = vmatpush.msra.mxu3 %v3660_v19  ;;  %2080 = vmatpush.msra.mxu1 %v3800_v52  ;;  %vm1752_vm5 = vcmp.eq.f32.partialorder %v1751_v9, 8.507059e+37 }
 0x4bf   : > { %v2506_v42 = vpop.eup %2505  ;;  %v1818_v4 = vmul.f32 %v3745_v29, %v1817_v41  ;;  %2279 = vmatpush.msra.mxu2 %v3664_v39  ;;  %v1849_v41 = vadd.f32 %v3726_v7, %v1848_v16 }
 0x4c0   : > { %v1743_v35 = vmul.f32 %v2506_v42, %v3718_v10  ;;  %v1804_v37 = vadd.f32 %v3735_v54, %v1803_v2  ;;  %v1838_v3 = vsel %vm1837_vm12, %v3716_v55, %v1834_v56  ;;  %2295 = vmatpush.msra.mxu3 %v3666_v53  ;;  %vm1748_vm2 = vweird.f32 %v2506_v42 }
 0x4c1   : > { %v1819_v19 = vadd.f32 %v3745_v29, %v1818_v4  ;;  %v1843_v21 = vsel %vm3772_vm8, %v1842_v44, %v1838_v3  ;;  %v1853_v43 = vsel %vm1852_vm1, %v3726_v7, %v1849_v41  ;;  %2280 = vmatpush.msra.mxu2 %v3670_v48  ;;  %vm1749_vm4 = vmor %vm1747_vm3, %vm1748_vm2 }
 0x4c2   : > { %v1744_v39 = vsub.f32 1.0, %v1743_v35  ;;  %v1808_v34 = vsel %vm3817_vm14, %v3735_v54, %v1804_v37  ;;  %v1922_v2 = vmul.f32 %v1843_v21, %v3505_v26  ;;  %v1858_v30 = vsel %vm3836_vm0, %v1857_v8, %v1853_v43  ;;  %2296 = vmatpush.msra.mxu3 %v3672_v47 }
 0x4c3   : > { %v1813_v44 = vsel %vm3753_vm6, %v3757_v27, %v1808_v34  ;;  %v1823_v53 = vsel %vm3829_vm15, %v3745_v29, %v1819_v19  ;;  %v1923_v27 = vmul.f32 %v1858_v30, %v3510_v22  ;;  %2281 = vmatpush.msra.mxu2 %v3676_v13 }
 0x4c4   : > { %v1745_v26 = vmul.f32 %v2506_v42, %v1744_v39  ;;  %v1920_v54 = vmul.f32 %v1813_v44, %v3486_v63  ;;  %v1828_v5 = vsel %vm3767_vm7, %v1827_v33, %v1823_v53  ;;  %2058 = vmatmul.f32.vlgmr.msra.gmra.mxu0 %v1922_v2  ;;  %v1754_v63 = vor.u32 1.1754944e-38, %v1753_v61  ;;  %2297 = vmatpush.msra.mxu3 %v3678_v0 }
 0x4c5   : > { %v1921_v57 = vmul.f32 %v1828_v5, %v3488_v11  ;;  %2081 = vmatmul.f32.vlgmr.msra.gmra.mxu1 %v1923_v27  ;;  %2282 = vmatpush.msra.mxu2 %v3686_v36 }
 0x4c6   : > { %v1746_v7 = vadd.f32 %v2506_v42, %v1745_v26  ;;  %2012 = vmatmul.f32.vlgmr.msrb.gmra.mxu2 %v1920_v54  ;;  %2298 = vmatpush.msra.mxu3 %v3688_v24 }
 0x4c7   : > { %2035 = vmatmul.f32.vlgmr.msrb.gmra.mxu3 %v1921_v57  ;;  %2283 = vmatpush.msra.mxu2 %v3693_v14 }
 0x4c8   : > { %v1750_v48 = vsel %vm1749_vm4, %v2506_v42, %v1746_v7  ;;  %2299 = vmatpush.msra.mxu3 %v3695_v51  ;;  %v2089_v51 = vld [vmem:[%s3960_s3 + $0x8] sm:$0xff] }
 0x4c9   : > { %v1755_v11 = vsel %vm1752_vm5, %v1754_v63, %v1750_v48  ;;  %2284 = vmatpush.msra.mxu2 %v3704_v45  ;;  %v2088_v45 = vld [vmem:[%s3960_s3] sm:$0xff]  ;;  %2097 = vperm.xlu0 %2455, %v2089_v51  }
 0x4ca   : > { %v1756_v22 = vmul.f32 %v1755_v11, %v3615_v46  ;;  %v1757_v47 = vmul.f32 %v1755_v11, %v3617_v59  ;;  %v1758_v13 = vmul.f32 %v1755_v11, %v3619_v40  ;;  %v1759_v10 = vmul.f32 %v1755_v11, %v3623_v1  ;;  %2300 = vmatpush.msra.mxu3 %v3709_v58 }
 0x4cb   : > { %2285 = vmatpush.msra.mxu2 %v3711_v23  ;;  %2092 = vperm.xlu2 %2454, %v2088_v45  }
 0x4cc   : > { %v1766_v29 = vadd.f32 0.5, %v1758_v13  ;;  %v1767_v62 = vadd.f32 0.5, %v1759_v10  ;;  %v1764_v0 = vadd.f32 0.5, %v1756_v22  ;;  %v1765_v56 = vadd.f32 0.5, %v1757_v47  ;;  %2301 = vmatpush.msra.mxu3 %v3722_v6 }
 0x4cd   : > { %2286 = vmatpush.msra.mxu2 %v3730_v15 }
 0x4ce   : > { %v2265_v36 = vmul.f32 -1.442695, %v1766_v29  ;;  %v2266_v46 = vmul.f32 -1.442695, %v1767_v62  ;;  %v2263_v59 = vmul.f32 -1.442695, %v1764_v0  ;;  %2302 = vmatpush.msra.mxu3 %v3740_v17 }
 0x4cf   : > { %v2264_v40 = vmul.f32 -1.442695, %v1765_v56  ;;  %2287 = vmatpush.msra.mxu2 %v3749_v18  ;;  %v2458_v29 = vld [vmem:[%s3967_s10] ss:$0 sm:$0xff] }
 0x4d0   : > { %2507 = vpow2.f32 %v2265_v36  ;;  %2303 = vmatpush.msra.mxu3 %v3763_v60 }
 0x4d1   : > { %2509 = vpow2.f32 %v2266_v46  ;;  %2288 = vmatpush.msra.mxu2 %v3778_v31 }
 0x4d2   : > { %2511 = vpow2.f32 %v2263_v59  ;;  %2304 = vmatpush.msra.mxu3 %v3784_v50 }
 0x4d3   : > { %2513 = vpow2.f32 %v2264_v40  ;;  %2289 = vmatpush.msra.mxu2 %v3791_v25 }
 0x4d4   : > { %2305 = vmatpush.msra.mxu3 %v3800_v52 }
 0x4d6   : > { %v2508_v1 = vpop.eup %2507 }
 0x4d7   : > { %v2510_v24 = vpop.eup %2509  ;;  %v3889_v14 = vadd.f32 1.0, %v2508_v1 }
 0x4d8   : > { %v2512_v58 = vpop.eup %2511  ;;  %v3898_v23 = vadd.f32 1.0, %v2510_v24  ;;  %v2523_v24 = vld [vmem:[%s2978_s28] sm:$0xff] }
 0x4d9   : > { %v2514_v6 = vpop.eup %2513  ;;  %v1796_v15 = vadd.f32 1.0, %v2512_v58  ;;  %2515 = vrcp.f32 %v3889_v14  ;;  %vm1895_vm8 = vweird.f32 %v3889_v14  ;;  %v1901_v39 = vand.u32 2147483648, %v3889_v14 }
 0x4da   : > { %v1797_v17 = vadd.f32 1.0, %v2514_v6  ;;  %2517 = vrcp.f32 %v3898_v23  ;;  %v1899_v57 = vand.u32 2147483647, %v3889_v14  ;;  %v1916_v27 = vand.u32 2147483648, %v3898_v23 }
 0x4db   : > { %2519 = vrcp.f32 %v1796_v15  ;;  %v1869_v35 = vand.u32 2147483647, %v1796_v15  ;;  %v1871_v61 = vand.u32 2147483648, %v1796_v15  ;;  %vm1865_vm9 = vweird.f32 %v1796_v15 }
 0x4dc   : > { %2521 = vrcp.f32 %v1797_v17  ;;  %v1884_v20 = vand.u32 2147483647, %v1797_v17  ;;  %v1886_v19 = vand.u32 2147483648, %v1797_v17  ;;  %vm1880_vm10 = vweird.f32 %v1797_v17 }
 0x4dd   : > { %vm1870_vm12 = vcmp.eq.f32.partialorder %v1869_v35, 8.507059e+37  ;;  %v1872_v34 = vor.u32 1.1754944e-38, %v1871_v61  ;;  %vm1910_vm2 = vweird.f32 %v3898_v23  ;;  %v1914_v63 = vand.u32 2147483647, %v3898_v23 }
 0x4de   : > { %vm1885_vm13 = vcmp.eq.f32.partialorder %v1884_v20, 8.507059e+37  ;;  %v1887_v44 = vor.u32 1.1754944e-38, %v1886_v19  ;;  %v1902_v11 = vor.u32 1.1754944e-38, %v1901_v39  ;;  %vm1900_vm4 = vcmp.eq.f32.partialorder %v1899_v57, 8.507059e+37 }
 0x4df   : > { %v2516_v18 = vpop.eup %2515  ;;  %v1917_v22 = vor.u32 1.1754944e-38, %v1916_v27  ;;  %vm1915_vm5 = vcmp.eq.f32.partialorder %v1914_v63, 8.507059e+37 }
 0x4e0   : > { %v2518_v60 = vpop.eup %2517  ;;  %v1891_v31 = vmul.f32 %v2516_v18, %v3889_v14  ;;  %vm1896_vm15 = vweird.f32 %v2516_v18 }
 0x4e1   : > { %v2520_v50 = vpop.eup %2519  ;;  %v1906_v25 = vmul.f32 %v2518_v60, %v3898_v23  ;;  %vm1911_vm0 = vweird.f32 %v2518_v60  ;;  %vm1897_vm1 = vmor %vm1895_vm8, %vm1896_vm15 }
 0x4e2   : > { %v2522_v16 = vpop.eup %2521  ;;  %v1861_v42 = vmul.f32 %v2520_v50, %v1796_v15  ;;  %v1892_v9 = vsub.f32 1.0, %v1891_v31  ;;  %vm1866_vm6 = vweird.f32 %v2520_v50  ;;  %vm1912_vm3 = vmor %vm1910_vm2, %vm1911_vm0 }
 0x4e3   : > { %v1876_v52 = vmul.f32 %v2522_v16, %v1797_v17  ;;  %v1907_v4 = vsub.f32 1.0, %v1906_v25  ;;  %vm1881_vm7 = vweird.f32 %v2522_v16  ;;  %vm1867_vm11 = vmor %vm1865_vm9, %vm1866_vm6 }
 0x4e4   : > { %v1862_v33 = vsub.f32 1.0, %v1861_v42  ;;  %v1893_v49 = vmul.f32 %v2516_v18, %v1892_v9  ;;  %vm1882_vm14 = vmor %vm1880_vm10, %vm1881_vm7 }
 0x4e5   : > { %v1877_v37 = vsub.f32 1.0, %v1876_v52  ;;  %v1908_v41 = vmul.f32 %v2518_v60, %v1907_v4 }
 0x4e6   : > { %v1863_v3 = vmul.f32 %v2520_v50, %v1862_v33  ;;  %v1894_v53 = vadd.f32 %v2516_v18, %v1893_v49 }
 0x4e7   : > { %v1878_v21 = vmul.f32 %v2522_v16, %v1877_v37  ;;  %v1909_v54 = vadd.f32 %v2518_v60, %v1908_v41 }
 0x4e8   : > { %v1864_v55 = vadd.f32 %v2520_v50, %v1863_v3  ;;  %v1898_v48 = vsel %vm1897_vm1, %v2516_v18, %v1894_v53 }
 0x4e9   : > { %v1879_v2 = vadd.f32 %v2522_v16, %v1878_v21  ;;  %v1903_v47 = vsel %vm1900_vm4, %v1902_v11, %v1898_v48 }
 0x4ea   : > { %v1868_v8 = vsel %vm1867_vm11, %v2520_v50, %v1864_v55  ;;  %v1926_v13 = vmul.f32 %v1903_v47, %v3586_v32  ;;  %v2524_v50 = vld [vmem:[%s2978_s28 + $0x8] sm:$0xff] }
 0x4eb   : > { %v1873_v43 = vsel %vm1870_vm12, %v1872_v34, %v1868_v8  ;;  %v1883_v26 = vsel %vm1882_vm14, %v2522_v16, %v1879_v2 }
 0x4ec   : > { %v1924_v5 = vmul.f32 %v1873_v43, %v3580_v12  ;;  %v1888_v30 = vsel %vm1885_vm13, %v1887_v44, %v1883_v26  ;;  %v1913_v12 = vsel %vm1912_vm3, %v2518_v60, %v1909_v54 }
 0x4ed   : > { %v1925_v7 = vmul.f32 %v1888_v30, %v3584_v28  ;;  %v1918_v28 = vsel %vm1915_vm5, %v1917_v22, %v1913_v12 }
 0x4ee   : > { %2015 = vmatmul.f32.gmra.mxu2 %v1924_v5  ;;  %v1927_v10 = vmul.f32 %v1918_v28, %v3591_v38 }
 0x4ef   : > { %2038 = vmatmul.f32.gmra.mxu3 %v1925_v7 }
 0x4f6   : > { %2061 = vmatmul.f32.vlgmr.msra.gmra.mxu2 %v1926_v13 }
 0x4f7   : > { %2084 = vmatmul.f32.vlgmr.msra.gmra.mxu3 %v1927_v10 }
 0x525   : > { %v2093_v1 = vpop.permute.xlu2 %2092 }
 0x53b   : > { %v2098_v18 = vpop.permute.xlu0 %2097 }
 0x541   : > { %v2059_v46 = vpop.f32.mrf.mxu0 }
 0x542   : > { %v2082_v40 = vpop.f32.mrf.mxu1 }
 0x549   : > { %v2013_v62 = vpop.f32.mrf.mxu2 }
 0x54a   : > { %v2014_v0 = vadd.f32 %v2458_v29, %v2013_v62  ;;  %v2036_v56 = vpop.f32.mrf.mxu3 }
 0x54c   : > { %v2037_v36 = vadd.f32 %v2036_v56, %v2014_v0 }
 0x54e   : > { %v2060_v59 = vadd.f32 %v2059_v46, %v2037_v36 }
 0x550   : > { %v2083_v32 = vadd.f32 %v2082_v40, %v2060_v59 }
 0x552   : > { %v2100_v38 = vmul.f32 %v2093_v1, %v2083_v32 }
 0x554   : > { %v2102_v14 = vadd.f32 %v2523_v24, %v2100_v38 }
 0x556   : > { %2104 = vst [vmem:[%s460_s29] sm:$0xff] %v2102_v14 }
 0x571   : > { %v2016_v51 = vpop.f32.mrf.mxu2 }
 0x572   : > { %v2039_v45 = vpop.f32.mrf.mxu3  ;;  %v2017_v58 = vadd.f32 %v2458_v29, %v2016_v51 }
 0x574   : > { %v2040_v23 = vadd.f32 %v2039_v45, %v2017_v58 }
 0x579   : > { %v2062_v6 = vpop.f32.mrf.mxu2 }
 0x57a   : > { %v2063_v15 = vadd.f32 %v2062_v6, %v2040_v23  ;;  %v2085_v17 = vpop.f32.mrf.mxu3 }
 0x57c   : > { %v2086_v60 = vadd.f32 %v2085_v17, %v2063_v15 }
 0x57e   : > { %v2101_v31 = vmul.f32 %v2098_v18, %v2086_v60 }
 0x580   : > { %v2103_v25 = vadd.f32 %v2524_v50, %v2101_v31 }
 0x582   : > { %2105 = vst [vmem:[%s460_s29 + $0x8] sm:$0xff] %v2103_v25 }
 0x583   : > { %2702 = shalt.err (!%p2699_p8)
}
 0x584   : > { %s2811_s28 = smov 128   ;;  %s2812_s19 = smov 8  }
 0x585   : > { %2326 = dma.vmem_to_hbm [thread:$0]  (%p2911_p5), %s2120_s15, 256, %s2122_s5, %s2107_s21, %s2811_s28, %s2811_s28, %s2812_s19  }
 0x586 PF: > { %s4013_s23 = sld [smem:[#allocation16_spill]]  ;;  %p2358_p9 = scmp.ge.s32.totalorder %s2749_s20, 2 }
 0x588   : > { %p2345_p10 = pnand %p2358_p9, %p2915_p6 }
 0x58a   : > { %p2346_p11 = pneg %p2345_p10 }
 0x58c   : > { %s2136_s25 = sand.u32 1, %s4013_s23  }
 0x58d   : > { %s2137_s22 = scalar_lea.sflag [#allocation4], %s2136_s25 }
 0x58e   : > { %2732 = dma.done.wait (%p2346_p11), %s2137_s22, 256  }
 0x58f   : > { %2734 = vsyncadd (%p2346_p11), %s2137_s22, 4294967040  ;;  %s4015_s20 = sld [smem:[#allocation18_spill]]  ;;  %s4018_s17 = smov %s2741_s18 }
 0x590   : > { %s4016_s30 = sld [smem:[#allocation17_spill]] }
 0x591   : > { %s4017_s19 = sld [smem:[#allocation19_spill]] }
 0x595   : > { %p24_p12 = scmp.ge.s32.totalorder %s4015_s20, 4  }
 0x596   : > { %s4019_s18 = smov %s4016_s30 }
 0x597   :  { %26 = sbr.rel (!%p24_p12) target bundleno = 9 (0x9), region = 168 }
 0x59c   :  { %2143 = vsyncpa [#allocation3], 1 }
 0x59d   :  { %2145 = vsyncpa [#allocation3 + $0x1], 1 }
 0x59e   :  { %2146 = vsyncpa [#allocation6], 1 }
 0x59f   :  { %2147 = vsyncpa [#allocation9], 1 }
 0x5a0   :  { %2148 = vsyncpa [#allocation4], 1 }
 0x5a1   :  { %2150 = vsyncpa [#allocation4 + $0x1], 1 }

</bundles_post_ra>
